<compile_context>
chip_gen: v7x
topology: tpu7x:2x2x1
jax: 0.10.0
libtpu: 0.0.40
codegen_flags: <defaults>
</compile_context>

<pallas_src>
import numpy as np
import jax
import jax.numpy as jnp
from jax import lax
from jax.experimental import pallas as pl
from jax.experimental.pallas import tpu as pltpu


# ----------------------------- model config ---------------------------------
INPUT_DIM = 128   # small, lane-aligned stand-in for the default 384
HIDDEN_DIM = 128  # small, lane-aligned stand-in for the default 512
NUM_LAYERS = 2
BATCH = 8
SEQ = 8


# ------------------------------ Pallas kernel -------------------------------
def lstm_predictor_kernel(
    x_ref,      # (T*B, Din)  f32   time-major flattened input          (VMEM)
    wih0_ref,   # (Din, 4H)   bf16  layer-0 input weights (i,f,o,g)     (VMEM)
    b0_ref,     # (1,   4H)   f32   bias_ih_l0 + bias_hh_l0             (VMEM)
    b1_ref,     # (1,   4H)   f32   bias_ih_l1 + bias_hh_l1             (VMEM)
    bfc_ref,    # (1,   Din)  f32   fc.bias                             (VMEM)
    wf_hbm,     # (2H,  8H)   bf16  fused [[Whh0^T, Wih1^T],[0, Whh1^T]] (HBM)
    wfc_hbm,    # (H,   Din)  bf16  fc.weight^T                          (HBM)
    out_ref,    # (B,   Din)  f32                                        (VMEM)
    gx_sc,      # VMEM (T*B, 4H) f32   precomputed layer-0 input gates
    wf_sc,      # VMEM (2H,  8H) bf16  fused recurrent weights
    wfc_sc,     # VMEM (H,   Din) bf16 fc weights
    dma_sem,    # DMA semaphores (2,)
):
    B = out_ref.shape[0]
    H = wfc_sc.shape[0]
    G = 4 * H
    T = x_ref.shape[0] // B

    # ---- start async weight prefetch (overlaps with the projection below) ----
    wf_cp = pltpu.make_async_copy(wf_hbm, wf_sc, dma_sem.at[0])
    wfc_cp = pltpu.make_async_copy(wfc_hbm, wfc_sc, dma_sem.at[1])
    wf_cp.start()
    wfc_cp.start()

    # ---- hoisted layer-0 input projection: ONE big MXU matmul off the serial
    #      recurrence path (rows T*B instead of B per step), bias b0 folded in.
    gx_sc[...] = (
        jnp.dot(x_ref[...].astype(jnp.bfloat16), wih0_ref[...],
                preferred_element_type=jnp.float32)
        + b0_ref[...]
    )

    # ---- fused recurrent weights must be resident before the time loop ------
    wf_cp.wait()
    wf = wf_sc[...]                                   # hoisted (loop-invariant)
    b1 = jnp.broadcast_to(b1_ref[...], (B, G))        # hoisted (no CSE in loops)

    def gate_math(gates):
        # packed gate order (i, f, o, g): one contiguous sigmoid slab + one tanh
        # sigmoid(x) = 1 / (1 + exp(-x)); exp + approx-rcp both issue on the EUP
        e = jnp.exp(-gates[:, : 3 * H])
        sig = pl.reciprocal(1.0 + e, approx=True)
        i = sig[:, 0 * H:1 * H]
        f = sig[:, 1 * H:2 * H]
        o = sig[:, 2 * H:3 * H]
        g = jnp.tanh(gates[:, 3 * H:])
        return i, f, o, g

    def step(t, carry):
        # r0 = h0_{t-1} @ Whh0^T  (B,4H), computed by the previous step's fused
        # matmul (wavefront), so layer 0 needs NO matmul on the serial path.
        r0, c0, h1, c1 = carry
        row = pl.multiple_of(t * B, B)
        gates0 = gx_sc[pl.ds(row, B), :] + r0
        i0, f0, o0, g0 = gate_math(gates0)
        c0 = f0 * c0 + i0 * g0
        h0 = o0 * jnp.tanh(c0)

        # ONE fused MXU call per step, K = 2H (fills the 256-deep contraction
        # on v6e/v7x):  [h0_t | h1_{t-1}] @ [[Whh0^T, Wih1^T],[0, Whh1^T]]
        lhs = jnp.concatenate([h0, h1], axis=-1).astype(jnp.bfloat16)
        fused = jnp.dot(lhs, wf, preferred_element_type=jnp.float32)
        r0_next = fused[:, :G]                     # layer-0 recurrent term, t+1
        gates1 = fused[:, G:] + b1                 # layer-1 gates, step t
        i1, f1, o1, g1 = gate_math(gates1)
        c1 = f1 * c1 + i1 * g1
        h1 = o1 * jnp.tanh(c1)
        return r0_next, c0, h1, c1

    zH = jnp.zeros((B, H), jnp.float32)
    zG = jnp.zeros((B, G), jnp.float32)            # h0_{-1} = 0  =>  r0_0 = 0
    # T=8 fixed: full unroll for LLO scheduling visibility (re-check vreg
    # pressure / switch to unroll=2 at production H=512 if spills show up).
    _, _, h1, _ = lax.fori_loop(0, T, step, (zG, zH, zH, zH), unroll=True)

    # ---- fc(last hidden of top layer) == fc(out[:, -1]) of the PyTorch module
    wfc_cp.wait()
    out_ref[...] = (
        jnp.dot(h1.astype(jnp.bfloat16), wfc_sc[...],
                preferred_element_type=jnp.float32)
        + bfc_ref[...]
    ).astype(out_ref.dtype)


def rnn_predictor_forward(x_btd, packed):
    """x_btd: (B, T, Din) batch-first, like the PyTorch module."""
    B, T, Din = x_btd.shape
    H = packed["wfc"].shape[0]
    # glue: batch-first (B,T,D) -> time-major flattened (T*B, D)
    x_flat = jnp.transpose(x_btd, (1, 0, 2)).reshape(T * B, Din)

    vmem = pl.BlockSpec(memory_space=pltpu.MemorySpace.VMEM)
    hbm = pl.BlockSpec(memory_space=pl.ANY)
    return pl.pallas_call(
        lstm_predictor_kernel,
        out_shape=jax.ShapeDtypeStruct((B, Din), jnp.float32),
        in_specs=[vmem, vmem, vmem, vmem, vmem, hbm, hbm],
        out_specs=vmem,
        scratch_shapes=[
            pltpu.VMEM((T * B, 4 * H), jnp.float32),   # gx
            pltpu.VMEM((2 * H, 8 * H), jnp.bfloat16),  # fused recurrent weights
            pltpu.VMEM((H, Din), jnp.bfloat16),        # fc weights
            pltpu.SemaphoreType.DMA((2,)),
        ],
        compiler_params=pltpu.CompilerParams(vmem_limit_bytes=32 << 20),
    )(
        x_flat,
        packed["wih0"], packed["b0"], packed["b1"], packed["bfc"],
        packed["wf"], packed["wfc"],
    )


# ----------------------- deterministic parameter init -----------------------
def init_params(key, input_dim, hidden_dim):
    """Raw PyTorch-layout params, U(-1/sqrt(H), 1/sqrt(H)) init (gate order i,f,g,o)."""
    bound = 1.0 / np.sqrt(hidden_dim)
    ks = jax.random.split(key, 10)

    def u(k, shape):
        return jax.random.uniform(k, shape, jnp.float32, -bound, bound)

    return {
        "wih0": u(ks[0], (4 * hidden_dim, input_dim)),
        "whh0": u(ks[1], (4 * hidden_dim, hidden_dim)),
        "bih0": u(ks[2], (4 * hidden_dim,)),
        "bhh0": u(ks[3], (4 * hidden_dim,)),
        "wih1": u(ks[4], (4 * hidden_dim, hidden_dim)),
        "whh1": u(ks[5], (4 * hidden_dim, hidden_dim)),
        "bih1": u(ks[6], (4 * hidden_dim,)),
        "bhh1": u(ks[7], (4 * hidden_dim,)),
        "wfc":  u(ks[8], (input_dim, hidden_dim)),   # Linear(hidden, input)
        "bfc":  u(ks[9], (input_dim,)),
    }


def _reorder_ifog(w):
    """Permute PyTorch gate blocks (i,f,g,o) along axis 0 to kernel order (i,f,o,g)."""
    i, f, g, o = jnp.split(w, 4, axis=0)
    return jnp.concatenate([i, f, o, g], axis=0)


def pack_params(raw):
    """Offline packing: transpose, permute gates, build the fused wavefront
    weight [[Whh0^T, Wih1^T],[0, Whh1^T]] (zero block packed as real zeros),
    cast matmul weights to bf16, fuse biases."""
    H = raw["whh0"].shape[1]
    wih0 = _reorder_ifog(raw["wih0"]).T                          # (Din, 4H)
    whh0T = _reorder_ifog(raw["whh0"]).T                         # (H,   4H)
    wih1T = _reorder_ifog(raw["wih1"]).T                         # (H,   4H)
    whh1T = _reorder_ifog(raw["whh1"]).T                         # (H,   4H)
    top = jnp.concatenate([whh0T, wih1T], axis=1)                # (H,   8H)
    bot = jnp.concatenate([jnp.zeros((H, 4 * H), jnp.float32), whh1T], axis=1)
    wf = jnp.concatenate([top, bot], axis=0)                     # (2H,  8H)
    b0 = _reorder_ifog(raw["bih0"] + raw["bhh0"])[None, :]       # (1,   4H)
    b1 = _reorder_ifog(raw["bih1"] + raw["bhh1"])[None, :]       # (1,   4H)
    return {
        "wih0": wih0.astype(jnp.bfloat16),
        "wf": wf.astype(jnp.bfloat16),
        "b0": b0, "b1": b1,
        "wfc": raw["wfc"].T.astype(jnp.bfloat16),                # (H, Din)
        "bfc": raw["bfc"][None, :],
    }


# ----------------------------- pure-JAX reference ----------------------------
def reference_forward(x_btd, raw):
    """Straight PyTorch-semantics LSTM (gate order i,f,g,o) + fc(last hidden), f32."""
    B, T, Din = x_btd.shape
    H = raw["whh0"].shape[1]

    def cell(inp, h, c, w_ih, w_hh, b_ih, b_hh):
        g = inp @ w_ih.T + h @ w_hh.T + b_ih + b_hh
        i = jax.nn.sigmoid(g[:, 0 * H:1 * H])
        f = jax.nn.sigmoid(g[:, 1 * H:2 * H])
        gg = jnp.tanh(g[:, 2 * H:3 * H])
        o = jax.nn.sigmoid(g[:, 3 * H:4 * H])
        c = f * c + i * gg
        return o * jnp.tanh(c), c

    h0 = jnp.zeros((B, H)); c0 = jnp.zeros((B, H))
    h1 = jnp.zeros((B, H)); c1 = jnp.zeros((B, H))
    for t in range(T):
        h0, c0 = cell(x_btd[:, t], h0, c0,
                      raw["wih0"], raw["whh0"], raw["bih0"], raw["bhh0"])
        h1, c1 = cell(h0, h1, c1,
                      raw["wih1"], raw["whh1"], raw["bih1"], raw["bhh1"])
    return h1 @ raw["wfc"].T + raw["bfc"]


# ---------------------------------- main -------------------------------------
if __name__ == "__main__":
    key = jax.random.PRNGKey(0)
    k_param, k_x = jax.random.split(key)
    raw = init_params(k_param, INPUT_DIM, HIDDEN_DIM)
    packed = pack_params(raw)
    x = jax.random.normal(k_x, (BATCH, SEQ, INPUT_DIM), jnp.float32)

    out = jax.block_until_ready(rnn_predictor_forward(x, packed))
    ref = reference_forward(x, raw)

    assert out.shape == (BATCH, INPUT_DIM)
    # bf16 weights in the kernel vs f32 reference: relaxed tolerance (precision,
    # not a bug — flagged in the perf review).
    np.testing.assert_allclose(np.asarray(out), np.asarray(ref), rtol=5e-2, atol=5e-2)

    print("KERNEL_OK")
</pallas_src>

<mosaic_0001>
module attributes {stable_mosaic.version = 11 : i64} {
  func.func @lstm_predictor_kernel(%arg0: memref<64x128xf32, #tpu.memory_space<vmem>>, %arg1: memref<128x512xbf16, #tpu.memory_space<vmem>>, %arg2: memref<1x512xf32, #tpu.memory_space<vmem>>, %arg3: memref<1x512xf32, #tpu.memory_space<vmem>>, %arg4: memref<1x128xf32, #tpu.memory_space<vmem>>, %arg5: memref<256x1024xbf16, #tpu.memory_space<any>>, %arg6: memref<128x128xbf16, #tpu.memory_space<any>>, %arg7: memref<8x128xf32, #tpu.memory_space<vmem>>, %arg8: memref<64x512xf32, #tpu.memory_space<vmem>>, %arg9: memref<256x1024xbf16, #tpu.memory_space<vmem>>, %arg10: memref<128x128xbf16, #tpu.memory_space<vmem>>, %arg11: memref<2x!tpu.dma_semaphore, #tpu.memory_space<semaphore_mem>>) attributes {dimension_semantics = [], scalar_prefetch = 0 : i64, scratch_operands = 4 : i64, tpu.core_type = #tpu.core_type<tc>} {
    %c0_i32 = arith.constant 0 : i32
    %0 = tpu.memref_slice %arg11[%c0_i32] : memref<2x!tpu.dma_semaphore, #tpu.memory_space<semaphore_mem>> -> memref<1x!tpu.dma_semaphore, #tpu.memory_space<semaphore_mem>>
    %1 = tpu.memref_squeeze %0 : memref<1x!tpu.dma_semaphore, #tpu.memory_space<semaphore_mem>> -> memref<!tpu.dma_semaphore, #tpu.memory_space<semaphore_mem>>
    tpu.enqueue_dma source(%arg5 : memref<256x1024xbf16, #tpu.memory_space<any>>) target(%arg9 : memref<256x1024xbf16, #tpu.memory_space<vmem>>) target_semaphore(%1 : memref<!tpu.dma_semaphore, #tpu.memory_space<semaphore_mem>>)
    %c1_i32 = arith.constant 1 : i32
    %2 = tpu.memref_slice %arg11[%c1_i32] : memref<2x!tpu.dma_semaphore, #tpu.memory_space<semaphore_mem>> -> memref<1x!tpu.dma_semaphore, #tpu.memory_space<semaphore_mem>>
    %3 = tpu.memref_squeeze %2 : memref<1x!tpu.dma_semaphore, #tpu.memory_space<semaphore_mem>> -> memref<!tpu.dma_semaphore, #tpu.memory_space<semaphore_mem>>
    tpu.enqueue_dma source(%arg6 : memref<128x128xbf16, #tpu.memory_space<any>>) target(%arg10 : memref<128x128xbf16, #tpu.memory_space<vmem>>) target_semaphore(%3 : memref<!tpu.dma_semaphore, #tpu.memory_space<semaphore_mem>>)
    %c0 = arith.constant 0 : index
    %c0_0 = arith.constant 0 : index
    %4 = vector.load %arg0[%c0, %c0_0] : memref<64x128xf32, #tpu.memory_space<vmem>>, vector<64x128xf32>
    %5 = arith.truncf %4 : vector<64x128xf32> to vector<64x128xbf16>
    %c0_1 = arith.constant 0 : index
    %c0_2 = arith.constant 0 : index
    %6 = vector.load %arg1[%c0_1, %c0_2] : memref<128x512xbf16, #tpu.memory_space<vmem>>, vector<128x512xbf16>
    %cst = arith.constant dense<0.000000e+00> : vector<64x512xf32>
    %7 = tpu.matmul %5, %6, %cst {dimension_numbers = #tpu.dot_dimension_numbers<[1], [0], [0], [1], [0, 0, 1, 1], [], []>} : vector<64x128xbf16>, vector<128x512xbf16>, vector<64x512xf32> -> vector<64x512xf32>
    %c0_3 = arith.constant 0 : index
    %c0_4 = arith.constant 0 : index
    %8 = vector.load %arg2[%c0_3, %c0_4] : memref<1x512xf32, #tpu.memory_space<vmem>>, vector<1x512xf32>
    %9 = vector.broadcast %8 : vector<1x512xf32> to vector<64x512xf32>
    %10 = arith.addf %7, %9 : vector<64x512xf32>
    %c0_5 = arith.constant 0 : index
    %c0_6 = arith.constant 0 : index
    %11 = vector.load %arg8[%c0_5, %c0_6] : memref<64x512xf32, #tpu.memory_space<vmem>>, vector<64x512xf32>
    tpu.vector_store %arg8[%c0_5, %c0_6], %10 {strides = array<i32>} : memref<64x512xf32, #tpu.memory_space<vmem>>, vector<64x512xf32>,
    %c0_i32_7 = arith.constant 0 : i32
    %12 = tpu.memref_slice %arg11[%c0_i32_7] : memref<2x!tpu.dma_semaphore, #tpu.memory_space<semaphore_mem>> -> memref<1x!tpu.dma_semaphore, #tpu.memory_space<semaphore_mem>>
    %13 = tpu.memref_squeeze %12 : memref<1x!tpu.dma_semaphore, #tpu.memory_space<semaphore_mem>> -> memref<!tpu.dma_semaphore, #tpu.memory_space<semaphore_mem>>
    tpu.wait_dma2 semaphore(%13 : memref<!tpu.dma_semaphore, #tpu.memory_space<semaphore_mem>>) src(%arg5 : memref<256x1024xbf16, #tpu.memory_space<any>>) dst(%arg9 : memref<256x1024xbf16, #tpu.memory_space<vmem>>)
    %c0_8 = arith.constant 0 : index
    %c0_9 = arith.constant 0 : index
    %14 = vector.load %arg9[%c0_8, %c0_9] : memref<256x1024xbf16, #tpu.memory_space<vmem>>, vector<256x1024xbf16>
    %c0_10 = arith.constant 0 : index
    %c0_11 = arith.constant 0 : index
    %15 = vector.load %arg3[%c0_10, %c0_11] : memref<1x512xf32, #tpu.memory_space<vmem>>, vector<1x512xf32>
    %16 = vector.shape_cast %15 : vector<1x512xf32> to vector<1x512xf32>
    %17 = vector.broadcast %16 : vector<1x512xf32> to vector<8x512xf32>
    %cst_12 = arith.constant 0.000000e+00 : f32
    %18 = vector.broadcast %cst_12 : f32 to vector<8x128xf32>
    %cst_13 = arith.constant 0.000000e+00 : f32
    %19 = vector.broadcast %cst_13 : f32 to vector<8x512xf32>
    %c0_i32_14 = arith.constant 0 : i32
    %c8_i32 = arith.constant 8 : i32
    %20 = arith.muli %c0_i32_14, %c8_i32 : i32
    %21 = tpu.assume_multiple %20, 8 : i32
    %22 = arith.index_cast %21 : i32 to index
    %c0_15 = arith.constant 0 : index
    %23 = vector.load %arg8[%22, %c0_15] : memref<64x512xf32, #tpu.memory_space<vmem>>, vector<8x512xf32>
    %24 = arith.addf %23, %19 : vector<8x512xf32>
    %25 = vector.extract_strided_slice %24 {offsets = [0, 0], sizes = [8, 384], strides = [1, 1]} : vector<8x512xf32> to vector<8x384xf32>
    %cst_16 = arith.constant 0.000000e+00 : f32
    %26 = vector.broadcast %cst_16 : f32 to vector<8x384xf32>
    %27 = arith.subf %26, %25 : vector<8x384xf32>
    %28 = math.exp %27 : vector<8x384xf32>
    %cst_17 = arith.constant 1.000000e+00 : f32
    %29 = vector.broadcast %cst_17 : f32 to vector<8x384xf32>
    %30 = arith.addf %29, %28 : vector<8x384xf32>
    %31 = tpu.reciprocal %30 {approx = true} : vector<8x384xf32> -> vector<8x384xf32>
    %32 = vector.extract_strided_slice %31 {offsets = [0, 0], sizes = [8, 128], strides = [1, 1]} : vector<8x384xf32> to vector<8x128xf32>
    %33 = vector.extract_strided_slice %31 {offsets = [0, 128], sizes = [8, 128], strides = [1, 1]} : vector<8x384xf32> to vector<8x128xf32>
    %34 = vector.extract_strided_slice %31 {offsets = [0, 256], sizes = [8, 128], strides = [1, 1]} : vector<8x384xf32> to vector<8x128xf32>
    %35 = vector.extract_strided_slice %24 {offsets = [0, 384], sizes = [8, 128], strides = [1, 1]} : vector<8x512xf32> to vector<8x128xf32>
    %36 = math.tanh %35 : vector<8x128xf32>
    %37 = arith.mulf %33, %18 : vector<8x128xf32>
    %38 = arith.mulf %32, %36 : vector<8x128xf32>
    %39 = arith.addf %37, %38 : vector<8x128xf32>
    %40 = math.tanh %39 : vector<8x128xf32>
    %41 = arith.mulf %34, %40 : vector<8x128xf32>
    %42 = tpu.concatenate %41, %18 in 1 : vector<8x128xf32>, vector<8x128xf32> -> vector<8x256xf32>
    %43 = arith.truncf %42 : vector<8x256xf32> to vector<8x256xbf16>
    %cst_18 = arith.constant dense<0.000000e+00> : vector<8x1024xf32>
    %44 = tpu.matmul %43, %14, %cst_18 {dimension_numbers = #tpu.dot_dimension_numbers<[1], [0], [0], [1], [0, 0, 1, 1], [], []>} : vector<8x256xbf16>, vector<256x1024xbf16>, vector<8x1024xf32> -> vector<8x1024xf32>
    %45 = vector.extract_strided_slice %44 {offsets = [0, 0], sizes = [8, 512], strides = [1, 1]} : vector<8x1024xf32> to vector<8x512xf32>
    %46 = vector.extract_strided_slice %44 {offsets = [0, 512], sizes = [8, 512], strides = [1, 1]} : vector<8x1024xf32> to vector<8x512xf32>
    %47 = arith.addf %46, %17 : vector<8x512xf32>
    %48 = vector.extract_strided_slice %47 {offsets = [0, 0], sizes = [8, 384], strides = [1, 1]} : vector<8x512xf32> to vector<8x384xf32>
    %cst_19 = arith.constant 0.000000e+00 : f32
    %49 = vector.broadcast %cst_19 : f32 to vector<8x384xf32>
    %50 = arith.subf %49, %48 : vector<8x384xf32>
    %51 = math.exp %50 : vector<8x384xf32>
    %cst_20 = arith.constant 1.000000e+00 : f32
    %52 = vector.broadcast %cst_20 : f32 to vector<8x384xf32>
    %53 = arith.addf %52, %51 : vector<8x384xf32>
    %54 = tpu.reciprocal %53 {approx = true} : vector<8x384xf32> -> vector<8x384xf32>
    %55 = vector.extract_strided_slice %54 {offsets = [0, 0], sizes = [8, 128], strides = [1, 1]} : vector<8x384xf32> to vector<8x128xf32>
    %56 = vector.extract_strided_slice %54 {offsets = [0, 128], sizes = [8, 128], strides = [1, 1]} : vector<8x384xf32> to vector<8x128xf32>
    %57 = vector.extract_strided_slice %54 {offsets = [0, 256], sizes = [8, 128], strides = [1, 1]} : vector<8x384xf32> to vector<8x128xf32>
    %58 = vector.extract_strided_slice %47 {offsets = [0, 384], sizes = [8, 128], strides = [1, 1]} : vector<8x512xf32> to vector<8x128xf32>
    %59 = math.tanh %58 : vector<8x128xf32>
    %60 = arith.mulf %56, %18 : vector<8x128xf32>
    %61 = arith.mulf %55, %59 : vector<8x128xf32>
    %62 = arith.addf %60, %61 : vector<8x128xf32>
    %63 = math.tanh %62 : vector<8x128xf32>
    %64 = arith.mulf %57, %63 : vector<8x128xf32>
    %c1_i32_21 = arith.constant 1 : i32
    %c8_i32_22 = arith.constant 8 : i32
    %65 = arith.muli %c1_i32_21, %c8_i32_22 : i32
    %66 = tpu.assume_multiple %65, 8 : i32
    %67 = arith.index_cast %66 : i32 to index
    %c0_23 = arith.constant 0 : index
    %68 = vector.load %arg8[%67, %c0_23] : memref<64x512xf32, #tpu.memory_space<vmem>>, vector<8x512xf32>
    %69 = arith.addf %68, %45 : vector<8x512xf32>
    %70 = vector.extract_strided_slice %69 {offsets = [0, 0], sizes = [8, 384], strides = [1, 1]} : vector<8x512xf32> to vector<8x384xf32>
    %cst_24 = arith.constant 0.000000e+00 : f32
    %71 = vector.broadcast %cst_24 : f32 to vector<8x384xf32>
    %72 = arith.subf %71, %70 : vector<8x384xf32>
    %73 = math.exp %72 : vector<8x384xf32>
    %cst_25 = arith.constant 1.000000e+00 : f32
    %74 = vector.broadcast %cst_25 : f32 to vector<8x384xf32>
    %75 = arith.addf %74, %73 : vector<8x384xf32>
    %76 = tpu.reciprocal %75 {approx = true} : vector<8x384xf32> -> vector<8x384xf32>
    %77 = vector.extract_strided_slice %76 {offsets = [0, 0], sizes = [8, 128], strides = [1, 1]} : vector<8x384xf32> to vector<8x128xf32>
    %78 = vector.extract_strided_slice %76 {offsets = [0, 128], sizes = [8, 128], strides = [1, 1]} : vector<8x384xf32> to vector<8x128xf32>
    %79 = vector.extract_strided_slice %76 {offsets = [0, 256], sizes = [8, 128], strides = [1, 1]} : vector<8x384xf32> to vector<8x128xf32>
    %80 = vector.extract_strided_slice %69 {offsets = [0, 384], sizes = [8, 128], strides = [1, 1]} : vector<8x512xf32> to vector<8x128xf32>
    %81 = math.tanh %80 : vector<8x128xf32>
    %82 = arith.mulf %78, %39 : vector<8x128xf32>
    %83 = arith.mulf %77, %81 : vector<8x128xf32>
    %84 = arith.addf %82, %83 : vector<8x128xf32>
    %85 = math.tanh %84 : vector<8x128xf32>
    %86 = arith.mulf %79, %85 : vector<8x128xf32>
    %87 = tpu.concatenate %86, %64 in 1 : vector<8x128xf32>, vector<8x128xf32> -> vector<8x256xf32>
    %88 = arith.truncf %87 : vector<8x256xf32> to vector<8x256xbf16>
    %cst_26 = arith.constant dense<0.000000e+00> : vector<8x1024xf32>
    %89 = tpu.matmul %88, %14, %cst_26 {dimension_numbers = #tpu.dot_dimension_numbers<[1], [0], [0], [1], [0, 0, 1, 1], [], []>} : vector<8x256xbf16>, vector<256x1024xbf16>, vector<8x1024xf32> -> vector<8x1024xf32>
    %90 = vector.extract_strided_slice %89 {offsets = [0, 0], sizes = [8, 512], strides = [1, 1]} : vector<8x1024xf32> to vector<8x512xf32>
    %91 = vector.extract_strided_slice %89 {offsets = [0, 512], sizes = [8, 512], strides = [1, 1]} : vector<8x1024xf32> to vector<8x512xf32>
    %92 = arith.addf %91, %17 : vector<8x512xf32>
    %93 = vector.extract_strided_slice %92 {offsets = [0, 0], sizes = [8, 384], strides = [1, 1]} : vector<8x512xf32> to vector<8x384xf32>
    %cst_27 = arith.constant 0.000000e+00 : f32
    %94 = vector.broadcast %cst_27 : f32 to vector<8x384xf32>
    %95 = arith.subf %94, %93 : vector<8x384xf32>
    %96 = math.exp %95 : vector<8x384xf32>
    %cst_28 = arith.constant 1.000000e+00 : f32
    %97 = vector.broadcast %cst_28 : f32 to vector<8x384xf32>
    %98 = arith.addf %97, %96 : vector<8x384xf32>
    %99 = tpu.reciprocal %98 {approx = true} : vector<8x384xf32> -> vector<8x384xf32>
    %100 = vector.extract_strided_slice %99 {offsets = [0, 0], sizes = [8, 128], strides = [1, 1]} : vector<8x384xf32> to vector<8x128xf32>
    %101 = vector.extract_strided_slice %99 {offsets = [0, 128], sizes = [8, 128], strides = [1, 1]} : vector<8x384xf32> to vector<8x128xf32>
    %102 = vector.extract_strided_slice %99 {offsets = [0, 256], sizes = [8, 128], strides = [1, 1]} : vector<8x384xf32> to vector<8x128xf32>
    %103 = vector.extract_strided_slice %92 {offsets = [0, 384], sizes = [8, 128], strides = [1, 1]} : vector<8x512xf32> to vector<8x128xf32>
    %104 = math.tanh %103 : vector<8x128xf32>
    %105 = arith.mulf %101, %62 : vector<8x128xf32>
    %106 = arith.mulf %100, %104 : vector<8x128xf32>
    %107 = arith.addf %105, %106 : vector<8x128xf32>
    %108 = math.tanh %107 : vector<8x128xf32>
    %109 = arith.mulf %102, %108 : vector<8x128xf32>
    %c2_i32 = arith.constant 2 : i32
    %c8_i32_29 = arith.constant 8 : i32
    %110 = arith.muli %c2_i32, %c8_i32_29 : i32
    %111 = tpu.assume_multiple %110, 8 : i32
    %112 = arith.index_cast %111 : i32 to index
    %c0_30 = arith.constant 0 : index
    %113 = vector.load %arg8[%112, %c0_30] : memref<64x512xf32, #tpu.memory_space<vmem>>, vector<8x512xf32>
    %114 = arith.addf %113, %90 : vector<8x512xf32>
    %115 = vector.extract_strided_slice %114 {offsets = [0, 0], sizes = [8, 384], strides = [1, 1]} : vector<8x512xf32> to vector<8x384xf32>
    %cst_31 = arith.constant 0.000000e+00 : f32
    %116 = vector.broadcast %cst_31 : f32 to vector<8x384xf32>
    %117 = arith.subf %116, %115 : vector<8x384xf32>
    %118 = math.exp %117 : vector<8x384xf32>
    %cst_32 = arith.constant 1.000000e+00 : f32
    %119 = vector.broadcast %cst_32 : f32 to vector<8x384xf32>
    %120 = arith.addf %119, %118 : vector<8x384xf32>
    %121 = tpu.reciprocal %120 {approx = true} : vector<8x384xf32> -> vector<8x384xf32>
    %122 = vector.extract_strided_slice %121 {offsets = [0, 0], sizes = [8, 128], strides = [1, 1]} : vector<8x384xf32> to vector<8x128xf32>
    %123 = vector.extract_strided_slice %121 {offsets = [0, 128], sizes = [8, 128], strides = [1, 1]} : vector<8x384xf32> to vector<8x128xf32>
    %124 = vector.extract_strided_slice %121 {offsets = [0, 256], sizes = [8, 128], strides = [1, 1]} : vector<8x384xf32> to vector<8x128xf32>
    %125 = vector.extract_strided_slice %114 {offsets = [0, 384], sizes = [8, 128], strides = [1, 1]} : vector<8x512xf32> to vector<8x128xf32>
    %126 = math.tanh %125 : vector<8x128xf32>
    %127 = arith.mulf %123, %84 : vector<8x128xf32>
    %128 = arith.mulf %122, %126 : vector<8x128xf32>
    %129 = arith.addf %127, %128 : vector<8x128xf32>
    %130 = math.tanh %129 : vector<8x128xf32>
    %131 = arith.mulf %124, %130 : vector<8x128xf32>
    %132 = tpu.concatenate %131, %109 in 1 : vector<8x128xf32>, vector<8x128xf32> -> vector<8x256xf32>
    %133 = arith.truncf %132 : vector<8x256xf32> to vector<8x256xbf16>
    %cst_33 = arith.constant dense<0.000000e+00> : vector<8x1024xf32>
    %134 = tpu.matmul %133, %14, %cst_33 {dimension_numbers = #tpu.dot_dimension_numbers<[1], [0], [0], [1], [0, 0, 1, 1], [], []>} : vector<8x256xbf16>, vector<256x1024xbf16>, vector<8x1024xf32> -> vector<8x1024xf32>
    %135 = vector.extract_strided_slice %134 {offsets = [0, 0], sizes = [8, 512], strides = [1, 1]} : vector<8x1024xf32> to vector<8x512xf32>
    %136 = vector.extract_strided_slice %134 {offsets = [0, 512], sizes = [8, 512], strides = [1, 1]} : vector<8x1024xf32> to vector<8x512xf32>
    %137 = arith.addf %136, %17 : vector<8x512xf32>
    %138 = vector.extract_strided_slice %137 {offsets = [0, 0], sizes = [8, 384], strides = [1, 1]} : vector<8x512xf32> to vector<8x384xf32>
    %cst_34 = arith.constant 0.000000e+00 : f32
    %139 = vector.broadcast %cst_34 : f32 to vector<8x384xf32>
    %140 = arith.subf %139, %138 : vector<8x384xf32>
    %141 = math.exp %140 : vector<8x384xf32>
    %cst_35 = arith.constant 1.000000e+00 : f32
    %142 = vector.broadcast %cst_35 : f32 to vector<8x384xf32>
    %143 = arith.addf %142, %141 : vector<8x384xf32>
    %144 = tpu.reciprocal %143 {approx = true} : vector<8x384xf32> -> vector<8x384xf32>
    %145 = vector.extract_strided_slice %144 {offsets = [0, 0], sizes = [8, 128], strides = [1, 1]} : vector<8x384xf32> to vector<8x128xf32>
    %146 = vector.extract_strided_slice %144 {offsets = [0, 128], sizes = [8, 128], strides = [1, 1]} : vector<8x384xf32> to vector<8x128xf32>
    %147 = vector.extract_strided_slice %144 {offsets = [0, 256], sizes = [8, 128], strides = [1, 1]} : vector<8x384xf32> to vector<8x128xf32>
    %148 = vector.extract_strided_slice %137 {offsets = [0, 384], sizes = [8, 128], strides = [1, 1]} : vector<8x512xf32> to vector<8x128xf32>
    %149 = math.tanh %148 : vector<8x128xf32>
    %150 = arith.mulf %146, %107 : vector<8x128xf32>
    %151 = arith.mulf %145, %149 : vector<8x128xf32>
    %152 = arith.addf %150, %151 : vector<8x128xf32>
    %153 = math.tanh %152 : vector<8x128xf32>
    %154 = arith.mulf %147, %153 : vector<8x128xf32>
    %c3_i32 = arith.constant 3 : i32
    %c8_i32_36 = arith.constant 8 : i32
    %155 = arith.muli %c3_i32, %c8_i32_36 : i32
    %156 = tpu.assume_multiple %155, 8 : i32
    %157 = arith.index_cast %156 : i32 to index
    %c0_37 = arith.constant 0 : index
    %158 = vector.load %arg8[%157, %c0_37] : memref<64x512xf32, #tpu.memory_space<vmem>>, vector<8x512xf32>
    %159 = arith.addf %158, %135 : vector<8x512xf32>
    %160 = vector.extract_strided_slice %159 {offsets = [0, 0], sizes = [8, 384], strides = [1, 1]} : vector<8x512xf32> to vector<8x384xf32>
    %cst_38 = arith.constant 0.000000e+00 : f32
    %161 = vector.broadcast %cst_38 : f32 to vector<8x384xf32>
    %162 = arith.subf %161, %160 : vector<8x384xf32>
    %163 = math.exp %162 : vector<8x384xf32>
    %cst_39 = arith.constant 1.000000e+00 : f32
    %164 = vector.broadcast %cst_39 : f32 to vector<8x384xf32>
    %165 = arith.addf %164, %163 : vector<8x384xf32>
    %166 = tpu.reciprocal %165 {approx = true} : vector<8x384xf32> -> vector<8x384xf32>
    %167 = vector.extract_strided_slice %166 {offsets = [0, 0], sizes = [8, 128], strides = [1, 1]} : vector<8x384xf32> to vector<8x128xf32>
    %168 = vector.extract_strided_slice %166 {offsets = [0, 128], sizes = [8, 128], strides = [1, 1]} : vector<8x384xf32> to vector<8x128xf32>
    %169 = vector.extract_strided_slice %166 {offsets = [0, 256], sizes = [8, 128], strides = [1, 1]} : vector<8x384xf32> to vector<8x128xf32>
    %170 = vector.extract_strided_slice %159 {offsets = [0, 384], sizes = [8, 128], strides = [1, 1]} : vector<8x512xf32> to vector<8x128xf32>
    %171 = math.tanh %170 : vector<8x128xf32>
    %172 = arith.mulf %168, %129 : vector<8x128xf32>
    %173 = arith.mulf %167, %171 : vector<8x128xf32>
    %174 = arith.addf %172, %173 : vector<8x128xf32>
    %175 = math.tanh %174 : vector<8x128xf32>
    %176 = arith.mulf %169, %175 : vector<8x128xf32>
    %177 = tpu.concatenate %176, %154 in 1 : vector<8x128xf32>, vector<8x128xf32> -> vector<8x256xf32>
    %178 = arith.truncf %177 : vector<8x256xf32> to vector<8x256xbf16>
    %cst_40 = arith.constant dense<0.000000e+00> : vector<8x1024xf32>
    %179 = tpu.matmul %178, %14, %cst_40 {dimension_numbers = #tpu.dot_dimension_numbers<[1], [0], [0], [1], [0, 0, 1, 1], [], []>} : vector<8x256xbf16>, vector<256x1024xbf16>, vector<8x1024xf32> -> vector<8x1024xf32>
    %180 = vector.extract_strided_slice %179 {offsets = [0, 0], sizes = [8, 512], strides = [1, 1]} : vector<8x1024xf32> to vector<8x512xf32>
    %181 = vector.extract_strided_slice %179 {offsets = [0, 512], sizes = [8, 512], strides = [1, 1]} : vector<8x1024xf32> to vector<8x512xf32>
    %182 = arith.addf %181, %17 : vector<8x512xf32>
    %183 = vector.extract_strided_slice %182 {offsets = [0, 0], sizes = [8, 384], strides = [1, 1]} : vector<8x512xf32> to vector<8x384xf32>
    %cst_41 = arith.constant 0.000000e+00 : f32
    %184 = vector.broadcast %cst_41 : f32 to vector<8x384xf32>
    %185 = arith.subf %184, %183 : vector<8x384xf32>
    %186 = math.exp %185 : vector<8x384xf32>
    %cst_42 = arith.constant 1.000000e+00 : f32
    %187 = vector.broadcast %cst_42 : f32 to vector<8x384xf32>
    %188 = arith.addf %187, %186 : vector<8x384xf32>
    %189 = tpu.reciprocal %188 {approx = true} : vector<8x384xf32> -> vector<8x384xf32>
    %190 = vector.extract_strided_slice %189 {offsets = [0, 0], sizes = [8, 128], strides = [1, 1]} : vector<8x384xf32> to vector<8x128xf32>
    %191 = vector.extract_strided_slice %189 {offsets = [0, 128], sizes = [8, 128], strides = [1, 1]} : vector<8x384xf32> to vector<8x128xf32>
    %192 = vector.extract_strided_slice %189 {offsets = [0, 256], sizes = [8, 128], strides = [1, 1]} : vector<8x384xf32> to vector<8x128xf32>
    %193 = vector.extract_strided_slice %182 {offsets = [0, 384], sizes = [8, 128], strides = [1, 1]} : vector<8x512xf32> to vector<8x128xf32>
    %194 = math.tanh %193 : vector<8x128xf32>
    %195 = arith.mulf %191, %152 : vector<8x128xf32>
    %196 = arith.mulf %190, %194 : vector<8x128xf32>
    %197 = arith.addf %195, %196 : vector<8x128xf32>
    %198 = math.tanh %197 : vector<8x128xf32>
    %199 = arith.mulf %192, %198 : vector<8x128xf32>
    %c4_i32 = arith.constant 4 : i32
    %c8_i32_43 = arith.constant 8 : i32
    %200 = arith.muli %c4_i32, %c8_i32_43 : i32
    %201 = tpu.assume_multiple %200, 8 : i32
    %202 = arith.index_cast %201 : i32 to index
    %c0_44 = arith.constant 0 : index
    %203 = vector.load %arg8[%202, %c0_44] : memref<64x512xf32, #tpu.memory_space<vmem>>, vector<8x512xf32>
    %204 = arith.addf %203, %180 : vector<8x512xf32>
    %205 = vector.extract_strided_slice %204 {offsets = [0, 0], sizes = [8, 384], strides = [1, 1]} : vector<8x512xf32> to vector<8x384xf32>
    %cst_45 = arith.constant 0.000000e+00 : f32
    %206 = vector.broadcast %cst_45 : f32 to vector<8x384xf32>
    %207 = arith.subf %206, %205 : vector<8x384xf32>
    %208 = math.exp %207 : vector<8x384xf32>
    %cst_46 = arith.constant 1.000000e+00 : f32
    %209 = vector.broadcast %cst_46 : f32 to vector<8x384xf32>
    %210 = arith.addf %209, %208 : vector<8x384xf32>
    %211 = tpu.reciprocal %210 {approx = true} : vector<8x384xf32> -> vector<8x384xf32>
    %212 = vector.extract_strided_slice %211 {offsets = [0, 0], sizes = [8, 128], strides = [1, 1]} : vector<8x384xf32> to vector<8x128xf32>
    %213 = vector.extract_strided_slice %211 {offsets = [0, 128], sizes = [8, 128], strides = [1, 1]} : vector<8x384xf32> to vector<8x128xf32>
    %214 = vector.extract_strided_slice %211 {offsets = [0, 256], sizes = [8, 128], strides = [1, 1]} : vector<8x384xf32> to vector<8x128xf32>
    %215 = vector.extract_strided_slice %204 {offsets = [0, 384], sizes = [8, 128], strides = [1, 1]} : vector<8x512xf32> to vector<8x128xf32>
    %216 = math.tanh %215 : vector<8x128xf32>
    %217 = arith.mulf %213, %174 : vector<8x128xf32>
    %218 = arith.mulf %212, %216 : vector<8x128xf32>
    %219 = arith.addf %217, %218 : vector<8x128xf32>
    %220 = math.tanh %219 : vector<8x128xf32>
    %221 = arith.mulf %214, %220 : vector<8x128xf32>
    %222 = tpu.concatenate %221, %199 in 1 : vector<8x128xf32>, vector<8x128xf32> -> vector<8x256xf32>
    %223 = arith.truncf %222 : vector<8x256xf32> to vector<8x256xbf16>
    %cst_47 = arith.constant dense<0.000000e+00> : vector<8x1024xf32>
    %224 = tpu.matmul %223, %14, %cst_47 {dimension_numbers = #tpu.dot_dimension_numbers<[1], [0], [0], [1], [0, 0, 1, 1], [], []>} : vector<8x256xbf16>, vector<256x1024xbf16>, vector<8x1024xf32> -> vector<8x1024xf32>
    %225 = vector.extract_strided_slice %224 {offsets = [0, 0], sizes = [8, 512], strides = [1, 1]} : vector<8x1024xf32> to vector<8x512xf32>
    %226 = vector.extract_strided_slice %224 {offsets = [0, 512], sizes = [8, 512], strides = [1, 1]} : vector<8x1024xf32> to vector<8x512xf32>
    %227 = arith.addf %226, %17 : vector<8x512xf32>
    %228 = vector.extract_strided_slice %227 {offsets = [0, 0], sizes = [8, 384], strides = [1, 1]} : vector<8x512xf32> to vector<8x384xf32>
    %cst_48 = arith.constant 0.000000e+00 : f32
    %229 = vector.broadcast %cst_48 : f32 to vector<8x384xf32>
    %230 = arith.subf %229, %228 : vector<8x384xf32>
    %231 = math.exp %230 : vector<8x384xf32>
    %cst_49 = arith.constant 1.000000e+00 : f32
    %232 = vector.broadcast %cst_49 : f32 to vector<8x384xf32>
    %233 = arith.addf %232, %231 : vector<8x384xf32>
    %234 = tpu.reciprocal %233 {approx = true} : vector<8x384xf32> -> vector<8x384xf32>
    %235 = vector.extract_strided_slice %234 {offsets = [0, 0], sizes = [8, 128], strides = [1, 1]} : vector<8x384xf32> to vector<8x128xf32>
    %236 = vector.extract_strided_slice %234 {offsets = [0, 128], sizes = [8, 128], strides = [1, 1]} : vector<8x384xf32> to vector<8x128xf32>
    %237 = vector.extract_strided_slice %234 {offsets = [0, 256], sizes = [8, 128], strides = [1, 1]} : vector<8x384xf32> to vector<8x128xf32>
    %238 = vector.extract_strided_slice %227 {offsets = [0, 384], sizes = [8, 128], strides = [1, 1]} : vector<8x512xf32> to vector<8x128xf32>
    %239 = math.tanh %238 : vector<8x128xf32>
    %240 = arith.mulf %236, %197 : vector<8x128xf32>
    %241 = arith.mulf %235, %239 : vector<8x128xf32>
    %242 = arith.addf %240, %241 : vector<8x128xf32>
    %243 = math.tanh %242 : vector<8x128xf32>
    %244 = arith.mulf %237, %243 : vector<8x128xf32>
    %c5_i32 = arith.constant 5 : i32
    %c8_i32_50 = arith.constant 8 : i32
    %245 = arith.muli %c5_i32, %c8_i32_50 : i32
    %246 = tpu.assume_multiple %245, 8 : i32
    %247 = arith.index_cast %246 : i32 to index
    %c0_51 = arith.constant 0 : index
    %248 = vector.load %arg8[%247, %c0_51] : memref<64x512xf32, #tpu.memory_space<vmem>>, vector<8x512xf32>
    %249 = arith.addf %248, %225 : vector<8x512xf32>
    %250 = vector.extract_strided_slice %249 {offsets = [0, 0], sizes = [8, 384], strides = [1, 1]} : vector<8x512xf32> to vector<8x384xf32>
    %cst_52 = arith.constant 0.000000e+00 : f32
    %251 = vector.broadcast %cst_52 : f32 to vector<8x384xf32>
    %252 = arith.subf %251, %250 : vector<8x384xf32>
    %253 = math.exp %252 : vector<8x384xf32>
    %cst_53 = arith.constant 1.000000e+00 : f32
    %254 = vector.broadcast %cst_53 : f32 to vector<8x384xf32>
    %255 = arith.addf %254, %253 : vector<8x384xf32>
    %256 = tpu.reciprocal %255 {approx = true} : vector<8x384xf32> -> vector<8x384xf32>
    %257 = vector.extract_strided_slice %256 {offsets = [0, 0], sizes = [8, 128], strides = [1, 1]} : vector<8x384xf32> to vector<8x128xf32>
    %258 = vector.extract_strided_slice %256 {offsets = [0, 128], sizes = [8, 128], strides = [1, 1]} : vector<8x384xf32> to vector<8x128xf32>
    %259 = vector.extract_strided_slice %256 {offsets = [0, 256], sizes = [8, 128], strides = [1, 1]} : vector<8x384xf32> to vector<8x128xf32>
    %260 = vector.extract_strided_slice %249 {offsets = [0, 384], sizes = [8, 128], strides = [1, 1]} : vector<8x512xf32> to vector<8x128xf32>
    %261 = math.tanh %260 : vector<8x128xf32>
    %262 = arith.mulf %258, %219 : vector<8x128xf32>
    %263 = arith.mulf %257, %261 : vector<8x128xf32>
    %264 = arith.addf %262, %263 : vector<8x128xf32>
    %265 = math.tanh %264 : vector<8x128xf32>
    %266 = arith.mulf %259, %265 : vector<8x128xf32>
    %267 = tpu.concatenate %266, %244 in 1 : vector<8x128xf32>, vector<8x128xf32> -> vector<8x256xf32>
    %268 = arith.truncf %267 : vector<8x256xf32> to vector<8x256xbf16>
    %cst_54 = arith.constant dense<0.000000e+00> : vector<8x1024xf32>
    %269 = tpu.matmul %268, %14, %cst_54 {dimension_numbers = #tpu.dot_dimension_numbers<[1], [0], [0], [1], [0, 0, 1, 1], [], []>} : vector<8x256xbf16>, vector<256x1024xbf16>, vector<8x1024xf32> -> vector<8x1024xf32>
    %270 = vector.extract_strided_slice %269 {offsets = [0, 0], sizes = [8, 512], strides = [1, 1]} : vector<8x1024xf32> to vector<8x512xf32>
    %271 = vector.extract_strided_slice %269 {offsets = [0, 512], sizes = [8, 512], strides = [1, 1]} : vector<8x1024xf32> to vector<8x512xf32>
    %272 = arith.addf %271, %17 : vector<8x512xf32>
    %273 = vector.extract_strided_slice %272 {offsets = [0, 0], sizes = [8, 384], strides = [1, 1]} : vector<8x512xf32> to vector<8x384xf32>
    %cst_55 = arith.constant 0.000000e+00 : f32
    %274 = vector.broadcast %cst_55 : f32 to vector<8x384xf32>
    %275 = arith.subf %274, %273 : vector<8x384xf32>
    %276 = math.exp %275 : vector<8x384xf32>
    %cst_56 = arith.constant 1.000000e+00 : f32
    %277 = vector.broadcast %cst_56 : f32 to vector<8x384xf32>
    %278 = arith.addf %277, %276 : vector<8x384xf32>
    %279 = tpu.reciprocal %278 {approx = true} : vector<8x384xf32> -> vector<8x384xf32>
    %280 = vector.extract_strided_slice %279 {offsets = [0, 0], sizes = [8, 128], strides = [1, 1]} : vector<8x384xf32> to vector<8x128xf32>
    %281 = vector.extract_strided_slice %279 {offsets = [0, 128], sizes = [8, 128], strides = [1, 1]} : vector<8x384xf32> to vector<8x128xf32>
    %282 = vector.extract_strided_slice %279 {offsets = [0, 256], sizes = [8, 128], strides = [1, 1]} : vector<8x384xf32> to vector<8x128xf32>
    %283 = vector.extract_strided_slice %272 {offsets = [0, 384], sizes = [8, 128], strides = [1, 1]} : vector<8x512xf32> to vector<8x128xf32>
    %284 = math.tanh %283 : vector<8x128xf32>
    %285 = arith.mulf %281, %242 : vector<8x128xf32>
    %286 = arith.mulf %280, %284 : vector<8x128xf32>
    %287 = arith.addf %285, %286 : vector<8x128xf32>
    %288 = math.tanh %287 : vector<8x128xf32>
    %289 = arith.mulf %282, %288 : vector<8x128xf32>
    %c6_i32 = arith.constant 6 : i32
    %c8_i32_57 = arith.constant 8 : i32
    %290 = arith.muli %c6_i32, %c8_i32_57 : i32
    %291 = tpu.assume_multiple %290, 8 : i32
    %292 = arith.index_cast %291 : i32 to index
    %c0_58 = arith.constant 0 : index
    %293 = vector.load %arg8[%292, %c0_58] : memref<64x512xf32, #tpu.memory_space<vmem>>, vector<8x512xf32>
    %294 = arith.addf %293, %270 : vector<8x512xf32>
    %295 = vector.extract_strided_slice %294 {offsets = [0, 0], sizes = [8, 384], strides = [1, 1]} : vector<8x512xf32> to vector<8x384xf32>
    %cst_59 = arith.constant 0.000000e+00 : f32
    %296 = vector.broadcast %cst_59 : f32 to vector<8x384xf32>
    %297 = arith.subf %296, %295 : vector<8x384xf32>
    %298 = math.exp %297 : vector<8x384xf32>
    %cst_60 = arith.constant 1.000000e+00 : f32
    %299 = vector.broadcast %cst_60 : f32 to vector<8x384xf32>
    %300 = arith.addf %299, %298 : vector<8x384xf32>
    %301 = tpu.reciprocal %300 {approx = true} : vector<8x384xf32> -> vector<8x384xf32>
    %302 = vector.extract_strided_slice %301 {offsets = [0, 0], sizes = [8, 128], strides = [1, 1]} : vector<8x384xf32> to vector<8x128xf32>
    %303 = vector.extract_strided_slice %301 {offsets = [0, 128], sizes = [8, 128], strides = [1, 1]} : vector<8x384xf32> to vector<8x128xf32>
    %304 = vector.extract_strided_slice %301 {offsets = [0, 256], sizes = [8, 128], strides = [1, 1]} : vector<8x384xf32> to vector<8x128xf32>
    %305 = vector.extract_strided_slice %294 {offsets = [0, 384], sizes = [8, 128], strides = [1, 1]} : vector<8x512xf32> to vector<8x128xf32>
    %306 = math.tanh %305 : vector<8x128xf32>
    %307 = arith.mulf %303, %264 : vector<8x128xf32>
    %308 = arith.mulf %302, %306 : vector<8x128xf32>
    %309 = arith.addf %307, %308 : vector<8x128xf32>
    %310 = math.tanh %309 : vector<8x128xf32>
    %311 = arith.mulf %304, %310 : vector<8x128xf32>
    %312 = tpu.concatenate %311, %289 in 1 : vector<8x128xf32>, vector<8x128xf32> -> vector<8x256xf32>
    %313 = arith.truncf %312 : vector<8x256xf32> to vector<8x256xbf16>
    %cst_61 = arith.constant dense<0.000000e+00> : vector<8x1024xf32>
    %314 = tpu.matmul %313, %14, %cst_61 {dimension_numbers = #tpu.dot_dimension_numbers<[1], [0], [0], [1], [0, 0, 1, 1], [], []>} : vector<8x256xbf16>, vector<256x1024xbf16>, vector<8x1024xf32> -> vector<8x1024xf32>
    %315 = vector.extract_strided_slice %314 {offsets = [0, 0], sizes = [8, 512], strides = [1, 1]} : vector<8x1024xf32> to vector<8x512xf32>
    %316 = vector.extract_strided_slice %314 {offsets = [0, 512], sizes = [8, 512], strides = [1, 1]} : vector<8x1024xf32> to vector<8x512xf32>
    %317 = arith.addf %316, %17 : vector<8x512xf32>
    %318 = vector.extract_strided_slice %317 {offsets = [0, 0], sizes = [8, 384], strides = [1, 1]} : vector<8x512xf32> to vector<8x384xf32>
    %cst_62 = arith.constant 0.000000e+00 : f32
    %319 = vector.broadcast %cst_62 : f32 to vector<8x384xf32>
    %320 = arith.subf %319, %318 : vector<8x384xf32>
    %321 = math.exp %320 : vector<8x384xf32>
    %cst_63 = arith.constant 1.000000e+00 : f32
    %322 = vector.broadcast %cst_63 : f32 to vector<8x384xf32>
    %323 = arith.addf %322, %321 : vector<8x384xf32>
    %324 = tpu.reciprocal %323 {approx = true} : vector<8x384xf32> -> vector<8x384xf32>
    %325 = vector.extract_strided_slice %324 {offsets = [0, 0], sizes = [8, 128], strides = [1, 1]} : vector<8x384xf32> to vector<8x128xf32>
    %326 = vector.extract_strided_slice %324 {offsets = [0, 128], sizes = [8, 128], strides = [1, 1]} : vector<8x384xf32> to vector<8x128xf32>
    %327 = vector.extract_strided_slice %324 {offsets = [0, 256], sizes = [8, 128], strides = [1, 1]} : vector<8x384xf32> to vector<8x128xf32>
    %328 = vector.extract_strided_slice %317 {offsets = [0, 384], sizes = [8, 128], strides = [1, 1]} : vector<8x512xf32> to vector<8x128xf32>
    %329 = math.tanh %328 : vector<8x128xf32>
    %330 = arith.mulf %326, %287 : vector<8x128xf32>
    %331 = arith.mulf %325, %329 : vector<8x128xf32>
    %332 = arith.addf %330, %331 : vector<8x128xf32>
    %333 = math.tanh %332 : vector<8x128xf32>
    %334 = arith.mulf %327, %333 : vector<8x128xf32>
    %c7_i32 = arith.constant 7 : i32
    %c8_i32_64 = arith.constant 8 : i32
    %335 = arith.muli %c7_i32, %c8_i32_64 : i32
    %336 = tpu.assume_multiple %335, 8 : i32
    %337 = arith.index_cast %336 : i32 to index
    %c0_65 = arith.constant 0 : index
    %338 = vector.load %arg8[%337, %c0_65] : memref<64x512xf32, #tpu.memory_space<vmem>>, vector<8x512xf32>
    %339 = arith.addf %338, %315 : vector<8x512xf32>
    %340 = vector.extract_strided_slice %339 {offsets = [0, 0], sizes = [8, 384], strides = [1, 1]} : vector<8x512xf32> to vector<8x384xf32>
    %cst_66 = arith.constant 0.000000e+00 : f32
    %341 = vector.broadcast %cst_66 : f32 to vector<8x384xf32>
    %342 = arith.subf %341, %340 : vector<8x384xf32>
    %343 = math.exp %342 : vector<8x384xf32>
    %cst_67 = arith.constant 1.000000e+00 : f32
    %344 = vector.broadcast %cst_67 : f32 to vector<8x384xf32>
    %345 = arith.addf %344, %343 : vector<8x384xf32>
    %346 = tpu.reciprocal %345 {approx = true} : vector<8x384xf32> -> vector<8x384xf32>
    %347 = vector.extract_strided_slice %346 {offsets = [0, 0], sizes = [8, 128], strides = [1, 1]} : vector<8x384xf32> to vector<8x128xf32>
    %348 = vector.extract_strided_slice %346 {offsets = [0, 128], sizes = [8, 128], strides = [1, 1]} : vector<8x384xf32> to vector<8x128xf32>
    %349 = vector.extract_strided_slice %346 {offsets = [0, 256], sizes = [8, 128], strides = [1, 1]} : vector<8x384xf32> to vector<8x128xf32>
    %350 = vector.extract_strided_slice %339 {offsets = [0, 384], sizes = [8, 128], strides = [1, 1]} : vector<8x512xf32> to vector<8x128xf32>
    %351 = math.tanh %350 : vector<8x128xf32>
    %352 = arith.mulf %348, %309 : vector<8x128xf32>
    %353 = arith.mulf %347, %351 : vector<8x128xf32>
    %354 = arith.addf %352, %353 : vector<8x128xf32>
    %355 = math.tanh %354 : vector<8x128xf32>
    %356 = arith.mulf %349, %355 : vector<8x128xf32>
    %357 = tpu.concatenate %356, %334 in 1 : vector<8x128xf32>, vector<8x128xf32> -> vector<8x256xf32>
    %358 = arith.truncf %357 : vector<8x256xf32> to vector<8x256xbf16>
    %cst_68 = arith.constant dense<0.000000e+00> : vector<8x1024xf32>
    %359 = tpu.matmul %358, %14, %cst_68 {dimension_numbers = #tpu.dot_dimension_numbers<[1], [0], [0], [1], [0, 0, 1, 1], [], []>} : vector<8x256xbf16>, vector<256x1024xbf16>, vector<8x1024xf32> -> vector<8x1024xf32>
    %360 = vector.extract_strided_slice %359 {offsets = [0, 0], sizes = [8, 512], strides = [1, 1]} : vector<8x1024xf32> to vector<8x512xf32>
    %361 = vector.extract_strided_slice %359 {offsets = [0, 512], sizes = [8, 512], strides = [1, 1]} : vector<8x1024xf32> to vector<8x512xf32>
    %362 = arith.addf %361, %17 : vector<8x512xf32>
    %363 = vector.extract_strided_slice %362 {offsets = [0, 0], sizes = [8, 384], strides = [1, 1]} : vector<8x512xf32> to vector<8x384xf32>
    %cst_69 = arith.constant 0.000000e+00 : f32
    %364 = vector.broadcast %cst_69 : f32 to vector<8x384xf32>
    %365 = arith.subf %364, %363 : vector<8x384xf32>
    %366 = math.exp %365 : vector<8x384xf32>
    %cst_70 = arith.constant 1.000000e+00 : f32
    %367 = vector.broadcast %cst_70 : f32 to vector<8x384xf32>
    %368 = arith.addf %367, %366 : vector<8x384xf32>
    %369 = tpu.reciprocal %368 {approx = true} : vector<8x384xf32> -> vector<8x384xf32>
    %370 = vector.extract_strided_slice %369 {offsets = [0, 0], sizes = [8, 128], strides = [1, 1]} : vector<8x384xf32> to vector<8x128xf32>
    %371 = vector.extract_strided_slice %369 {offsets = [0, 128], sizes = [8, 128], strides = [1, 1]} : vector<8x384xf32> to vector<8x128xf32>
    %372 = vector.extract_strided_slice %369 {offsets = [0, 256], sizes = [8, 128], strides = [1, 1]} : vector<8x384xf32> to vector<8x128xf32>
    %373 = vector.extract_strided_slice %362 {offsets = [0, 384], sizes = [8, 128], strides = [1, 1]} : vector<8x512xf32> to vector<8x128xf32>
    %374 = math.tanh %373 : vector<8x128xf32>
    %375 = arith.mulf %371, %332 : vector<8x128xf32>
    %376 = arith.mulf %370, %374 : vector<8x128xf32>
    %377 = arith.addf %375, %376 : vector<8x128xf32>
    %378 = math.tanh %377 : vector<8x128xf32>
    %379 = arith.mulf %372, %378 : vector<8x128xf32>
    %c8_i32_71 = arith.constant 8 : i32
    %c1_i32_72 = arith.constant 1 : i32
    %380 = tpu.memref_slice %arg11[%c1_i32_72] : memref<2x!tpu.dma_semaphore, #tpu.memory_space<semaphore_mem>> -> memref<1x!tpu.dma_semaphore, #tpu.memory_space<semaphore_mem>>
    %381 = tpu.memref_squeeze %380 : memref<1x!tpu.dma_semaphore, #tpu.memory_space<semaphore_mem>> -> memref<!tpu.dma_semaphore, #tpu.memory_space<semaphore_mem>>
    tpu.wait_dma2 semaphore(%381 : memref<!tpu.dma_semaphore, #tpu.memory_space<semaphore_mem>>) src(%arg6 : memref<128x128xbf16, #tpu.memory_space<any>>) dst(%arg10 : memref<128x128xbf16, #tpu.memory_space<vmem>>)
    %382 = arith.truncf %379 : vector<8x128xf32> to vector<8x128xbf16>
    %c0_73 = arith.constant 0 : index
    %c0_74 = arith.constant 0 : index
    %383 = vector.load %arg10[%c0_73, %c0_74] : memref<128x128xbf16, #tpu.memory_space<vmem>>, vector<128x128xbf16>
    %cst_75 = arith.constant dense<0.000000e+00> : vector<8x128xf32>
    %384 = tpu.matmul %382, %383, %cst_75 {dimension_numbers = #tpu.dot_dimension_numbers<[1], [0], [0], [1], [0, 0, 1, 1], [], []>} : vector<8x128xbf16>, vector<128x128xbf16>, vector<8x128xf32> -> vector<8x128xf32>
    %c0_76 = arith.constant 0 : index
    %c0_77 = arith.constant 0 : index
    %385 = vector.load %arg4[%c0_76, %c0_77] : memref<1x128xf32, #tpu.memory_space<vmem>>, vector<1x128xf32>
    %386 = vector.broadcast %385 : vector<1x128xf32> to vector<8x128xf32>
    %387 = arith.addf %384, %386 : vector<8x128xf32>
    %c0_78 = arith.constant 0 : index
    %c0_79 = arith.constant 0 : index
    %388 = vector.load %arg7[%c0_78, %c0_79] : memref<8x128xf32, #tpu.memory_space<vmem>>, vector<8x128xf32>
    tpu.vector_store %arg7[%c0_78, %c0_79], %387 {strides = array<i32>} : memref<8x128xf32, #tpu.memory_space<vmem>>, vector<8x128xf32>,
    return
  }
}

</mosaic_0001>

<bundles_post_ra>
// kernel: tpu_custom_call.1
= control target key start
LH: loop header
LB: loop body
LE: loop exit
PB: predicated region body
PF: predicated region fallthrough
CT: control target
= control target key end

     0   :  { %12 = vsyncpa [#allocation7], 0  ;;  %s5157_s0 = inlined_call_operand.hbm [shape: f32[64,128], index: 0, kind: input, shape index: {}]   ;;  %s5158_s1 = inlined_call_operand.hbm [shape: bf16[128,512], index: 1, kind: input, shape index: {}]   ;;  %s5159_s2 = inlined_call_operand.vmem [shape: f32[1,512], index: 2, kind: input, shape index: {}]   ;;  %s5160_s3 = inlined_call_operand.vmem [shape: f32[1,512], index: 3, kind: input, shape index: {}]   ;;  %s5161_s4 = inlined_call_operand.vmem [shape: f32[1,128], index: 4, kind: input, shape index: {}]   ;;  %s5162_s5 = inlined_call_operand.hbm [shape: bf16[256,1024], index: 5, kind: input, shape index: {}]   ;;  %s5163_s6 = inlined_call_operand.hbm [shape: bf16[128,128], index: 6, kind: input, shape index: {}]   ;;  %s5164_s7 = inlined_call_operand.hbm [shape: f32[8,128], index: 7, kind: output, shape index: {}]  }
   0x1   :  { %13 = vsyncpa [#allocation10], 0 }
   0x2   :  { %14 = vsyncpa [#allocation8], 0  ;;  %s3200_s24 = smov [#allocation6]   ;;  %s3102_s28 = scalar_lea.hbm %s5157_s0, 1024 }
   0x3   :  { %s20_s25 = sshll.u32 %s3200_s24, 4  ;;  %p3103_p0 = scmp.ne.s32.totalorder %s5157_s0, %s3102_s28  ;;  %s21_s25 = int_to_ptr.vmem [resolvable:$true] %s20_s25 }
   0x4   :  { %p3106_p1 = scmp.lt.u32.totalorder %s3102_s28, %s5157_s0 }
   0x6   :  { %p3108_p2 = pnand %p3106_p1, %p3103_p0 }
   0x8   :  { %3111 = shalt.err (!%p3108_p2)
}
   0x9   :  { %s3112_s10 = scalar_lea.vmem %s21_s25, 1024  ;;  %p3117_p4 = scmp.lt.s32.totalorder %s21_s25, %s21_s25 }
   0xa   :  { %p3113_p3 = scmp.ne.s32.totalorder %s21_s25, %s3112_s10  ;;  %p3118_p5 = scmp.lt.s32.totalorder %s3112_s10, %s3112_s10 }
   0xc   :  { %p3119_p6 = por %p3118_p5, %p3117_p4 }
   0xe   :  { %p3120_p7 = pnand %p3119_p6, %p3113_p3 }
  0x10   :  { %3123 = shalt.err (!%p3120_p7)
}
  0x11   :  { %s3201_s11 = smov 128   ;;  %s3202_s12 = smov 8  }
  0x12   :  { %26 = dma.hbm_to_vmem [thread:$0]  %s5157_s0, 1024, %s21_s25, [#allocation7], %s3201_s11, %s3201_s11, %s3202_s12  }
  0x13   :  { %s3203_s15 = smov [#allocation9]   ;;  %s3124_s19 = scalar_lea.hbm %s5158_s1, 4096 }
  0x14   :  { %s32_s16 = sshll.u32 %s3203_s15, 4  ;;  %p3125_p8 = scmp.ne.s32.totalorder %s5158_s1, %s3124_s19  ;;  %s33_s16 = int_to_ptr.vmem [resolvable:$true] %s32_s16 }
  0x15   :  { %p3128_p9 = scmp.lt.u32.totalorder %s3124_s19, %s5158_s1 }
  0x17   :  { %p3130_p10 = pnand %p3128_p9, %p3125_p8 }
  0x19   :  { %3133 = shalt.err (!%p3130_p10)
}
  0x1a   :  { %s3134_s24 = scalar_lea.vmem %s33_s16, 4096  ;;  %p3139_p12 = scmp.lt.s32.totalorder %s33_s16, %s33_s16 }
  0x1b   :  { %p3135_p11 = scmp.ne.s32.totalorder %s33_s16, %s3134_s24  ;;  %p3140_p13 = scmp.lt.s32.totalorder %s3134_s24, %s3134_s24 }
  0x1d   :  { %p3141_p0 = por %p3140_p13, %p3139_p12 }
  0x1f   :  { %p3142_p1 = pnand %p3141_p0, %p3135_p11 }
  0x21   :  { %3145 = shalt.err (!%p3142_p1)
}
  0x22   :  { %s3204_s0 = smov 256   ;;  %s3205_s25 = smov 16  }
  0x23   :  { %38 = dma.hbm_to_vmem [thread:$0]  %s5158_s1, 4096, %s33_s16, [#allocation10], %s3204_s0, %s3204_s0, %s3205_s25  }
  0x24   :  { %3190 = dma.done.wait [#allocation7], 1024  }
  0x25   :  { %3191 = vsyncadd [#allocation7], 4294966272 }
  0x26   :  { %3192 = dma.done.wait [#allocation10], 4096  }
  0x27   :  { %3193 = vsyncadd [#allocation10], 4294963200  ;;  %s56_s28 = sld [smem:[#allocation0]]   ;;  %s3206_s29 = smov 1024   ;;  %v3207_v0 = vmov 0  }
  0x28   :  { %68 = sst [smem:[#allocation13]] %s3206_s29  ;;  %357 = vmatprep.mubr.bf16.mxu0 %v3207_v0  ;;  %430 = vmatprep.mubr.bf16.mxu1 %v3207_v0  ;;  %s3208_s30 = smov 64  }
  0x29   :  { %70 = sst [smem:[#allocation13 + $0x1]] %s3206_s29  ;;  %s3209_s1 = smov 2  }
  0x2a   :  { %72 = sst [smem:[#allocation13 + $0x2]] %s3202_s12  ;;  %s3210_s8 = smov [#allocation3]  }
  0x2b   :  { %74 = sst [smem:[#allocation13 + $0x3]] %s3208_s30  ;;  %s64_s9 = sshll.u32 %s3210_s8, 4  ;;  %s65_s9 = int_to_ptr.vmem [resolvable:$true] %s64_s9 }
  0x2c   :  { %76 = sst [smem:[#allocation13 + $0x4]] %s3201_s11  ;;  %s3211_s13 = smov 512  }
  0x2d   :  { %78 = sst [smem:[#allocation13 + $0x5]] %s3209_s1  ;;  %s2456_s10 = sshll.u32 %s56_s28, 26 }
  0x2e   :  { %80 = sst [smem:[#allocation13 + $0x6]] %s3211_s13  ;;  %s2457_s14 = sadd.s32 134217728, %s2456_s10 }
  0x2f   :  { %82 = sst [smem:[#allocation13 + $0x7]] %s3208_s30  ;;  %s3212_s15 = smov 4  }
  0x30   :  { %84 = sst [smem:[#allocation13 + $0x8]] %s3212_s15  ;;  %s3213_s16 = smov [#allocation5]  }
  0x31   :  { %s3214_s17 = smov [#allocation12]   ;;  %s3146_s21 = scalar_lea.hbm %s5163_s6, 1024 }
  0x32   :  { %86 = dma.general %s5162_s5, 16384, %s65_s9, %s3213_s16, %s3214_s17, [#allocation13], %s2457_s14, 0  }
  0x33   :  { %v2542_v1 = vld [vmem:[#allocation9 + $0x4] ss:$16 sps:$4 sm:$0xff]   ;;  %v2544_v2 = vld [vmem:[#allocation9 + $0xc] ss:$16 sps:$4 sm:$0xff]   ;;  %v2546_v3 = vld [vmem:[#allocation9] ss:$16 sps:$4 sm:$0xff]   ;;  %p3147_p2 = scmp.ne.s32.totalorder %s5163_s6, %s3146_s21  ;;  %p3150_p3 = scmp.lt.u32.totalorder %s3146_s21, %s5163_s6 }
  0x34   :  { %325 = vmatprep.subr.bf16.mxu0 %v2542_v1  ;;  %v2547_v4 = vld [vmem:[#allocation9 + $0x8] ss:$16 sps:$4 sm:$0xff]   ;;  %398 = vmatprep.subr.bf16.mxu1 %v2544_v2  ;;  %v2548_v5 = vld [vmem:[#allocation9 + $0x24] ss:$16 sps:$4 sm:$0xff]   ;;  %v2550_v6 = vld [vmem:[#allocation9 + $0x2c] ss:$16 sps:$4 sm:$0xff]  }
  0x35   :  { %326 = vmatpush1.bf16.msra.mxu0 %v2546_v3  ;;  %399 = vmatpush1.bf16.msra.mxu1 %v2547_v4  ;;  %v2552_v7 = vld [vmem:[#allocation9 + $0x20] ss:$16 sps:$4 sm:$0xff]   ;;  %v2553_v8 = vld [vmem:[#allocation9 + $0x28] ss:$16 sps:$4 sm:$0xff]   ;;  %v2554_v9 = vld [vmem:[#allocation9 + $0x44] ss:$16 sps:$4 sm:$0xff]   ;;  %p3152_p4 = pnand %p3150_p3, %p3147_p2 }
  0x36   :  { %327 = vmatprep.subr.bf16.mxu0 %v2548_v5  ;;  %400 = vmatprep.subr.bf16.mxu1 %v2550_v6  ;;  %v2556_v10 = vld [vmem:[#allocation9 + $0x4c] ss:$16 sps:$4 sm:$0xff]   ;;  %v2558_v11 = vld [vmem:[#allocation9 + $0x40] ss:$16 sps:$4 sm:$0xff]   ;;  %v2559_v12 = vld [vmem:[#allocation9 + $0x48] ss:$16 sps:$4 sm:$0xff]  }
  0x37   :  { %v2560_v13 = vld [vmem:[#allocation9 + $0x64] ss:$16 sps:$4 sm:$0xff]   ;;  %v2562_v14 = vld [vmem:[#allocation9 + $0x6c] ss:$16 sps:$4 sm:$0xff]   ;;  %v2564_v15 = vld [vmem:[#allocation9 + $0x60] ss:$16 sps:$4 sm:$0xff]  }
  0x38   :  { %v2565_v16 = vld [vmem:[#allocation9 + $0x68] ss:$16 sps:$4 sm:$0xff]   ;;  %v2566_v17 = vld [vmem:[#allocation9 + $0x84] ss:$16 sps:$4 sm:$0xff]   ;;  %v2568_v18 = vld [vmem:[#allocation9 + $0x8c] ss:$16 sps:$4 sm:$0xff]  }
  0x39   :  { %328 = vmatpush1.bf16.msra.mxu0 %v2552_v7  ;;  %401 = vmatpush1.bf16.msra.mxu1 %v2553_v8  ;;  %v2570_v19 = vld [vmem:[#allocation9 + $0x80] ss:$16 sps:$4 sm:$0xff]   ;;  %v2571_v20 = vld [vmem:[#allocation9 + $0x88] ss:$16 sps:$4 sm:$0xff]   ;;  %v2572_v21 = vld [vmem:[#allocation9 + $0xa4] ss:$16 sps:$4 sm:$0xff]  }
  0x3a   :  { %329 = vmatprep.subr.bf16.mxu0 %v2554_v9  ;;  %402 = vmatprep.subr.bf16.mxu1 %v2556_v10  ;;  %v2574_v22 = vld [vmem:[#allocation9 + $0xac] ss:$16 sps:$4 sm:$0xff]   ;;  %v2576_v23 = vld [vmem:[#allocation9 + $0xa0] ss:$16 sps:$4 sm:$0xff]   ;;  %v2577_v24 = vld [vmem:[#allocation9 + $0xa8] ss:$16 sps:$4 sm:$0xff]  }
  0x3b   :  { %v2578_v25 = vld [vmem:[#allocation9 + $0xc4] ss:$16 sps:$4 sm:$0xff]   ;;  %v2580_v26 = vld [vmem:[#allocation9 + $0xcc] ss:$16 sps:$4 sm:$0xff]   ;;  %v2582_v27 = vld [vmem:[#allocation9 + $0xc0] ss:$16 sps:$4 sm:$0xff]  }
  0x3c   :  { %v2583_v28 = vld [vmem:[#allocation9 + $0xc8] ss:$16 sps:$4 sm:$0xff]   ;;  %v2584_v29 = vld [vmem:[#allocation9 + $0xe4] ss:$16 sps:$4 sm:$0xff]   ;;  %v2586_v30 = vld [vmem:[#allocation9 + $0xec] ss:$16 sps:$4 sm:$0xff]  }
  0x3d   :  { %330 = vmatpush1.bf16.msra.mxu0 %v2558_v11  ;;  %403 = vmatpush1.bf16.msra.mxu1 %v2559_v12  ;;  %v2588_v31 = vld [vmem:[#allocation9 + $0xe0] ss:$16 sps:$4 sm:$0xff]   ;;  %v2589_v32 = vld [vmem:[#allocation9 + $0xe8] ss:$16 sps:$4 sm:$0xff]   ;;  %s3215_s5 = smov [#allocation4]  }
  0x3e   :  { %331 = vmatprep.subr.bf16.mxu0 %v2560_v13  ;;  %404 = vmatprep.subr.bf16.mxu1 %v2562_v14  ;;  %v99_v33 = vld [vmem:[#allocation6] sm:$0xff]  ;;  %v100_v34 = vld [vmem:[#allocation6 + $0x8] sm:$0xff]  ;;  %v101_v36 = vld [vmem:[#allocation6 + $0x10] sm:$0xff]  ;;  %s95_s11 = sshll.u32 %s3215_s5, 4  ;;  %s96_s11 = int_to_ptr.vmem [resolvable:$true] %s95_s11 }
  0x3f   :  { %v107_v35 = vpack.c.bf16 %v100_v34, %v99_v33  ;;  %v102_v37 = vld [vmem:[#allocation6 + $0x18] sm:$0xff]  ;;  %v103_v39 = vld [vmem:[#allocation6 + $0x20] sm:$0xff]  ;;  %v104_v40 = vld [vmem:[#allocation6 + $0x28] sm:$0xff] }
  0x40   :  { %v108_v38 = vpack.c.bf16 %v102_v37, %v101_v36  ;;  %v109_v41 = vpack.c.bf16 %v104_v40, %v103_v39  ;;  %v105_v42 = vld [vmem:[#allocation6 + $0x30] sm:$0xff]  ;;  %v106_v43 = vld [vmem:[#allocation6 + $0x38] sm:$0xff] }
  0x41   :  { %332 = vmatpush1.bf16.msra.mxu0 %v2564_v15  ;;  %405 = vmatpush1.bf16.msra.mxu1 %v2565_v16  ;;  %v110_v44 = vpack.c.bf16 %v106_v43, %v105_v42 }
  0x42   :  { %333 = vmatprep.subr.bf16.mxu0 %v2566_v17  ;;  %406 = vmatprep.subr.bf16.mxu1 %v2568_v18 }
  0x45   :  { %334 = vmatpush1.bf16.msra.mxu0 %v2570_v19  ;;  %407 = vmatpush1.bf16.msra.mxu1 %v2571_v20 }
  0x46   :  { %335 = vmatprep.subr.bf16.mxu0 %v2572_v21  ;;  %408 = vmatprep.subr.bf16.mxu1 %v2574_v22 }
  0x49   :  { %336 = vmatpush1.bf16.msra.mxu0 %v2576_v23  ;;  %409 = vmatpush1.bf16.msra.mxu1 %v2577_v24 }
  0x4a   :  { %337 = vmatprep.subr.bf16.mxu0 %v2578_v25  ;;  %410 = vmatprep.subr.bf16.mxu1 %v2580_v26 }
  0x4d   :  { %338 = vmatpush1.bf16.msra.mxu0 %v2582_v27  ;;  %411 = vmatpush1.bf16.msra.mxu1 %v2583_v28 }
  0x4e   :  { %339 = vmatprep.subr.bf16.mxu0 %v2584_v29  ;;  %412 = vmatprep.subr.bf16.mxu1 %v2586_v30 }
  0x51   :  { %340 = vmatpush1.bf16.msra.mxu0 %v2588_v31  ;;  %413 = vmatpush1.bf16.msra.mxu1 %v2589_v32 }
  0x54   :  { %358 = vmatmul.mubr.bf16.vlgmr.msra.gmra.mrb[0].mxu0 %v107_v35  ;;  %431 = vmatmul.mubr.bf16.vlgmr.msra.gmra.mrb[0].mxu1 %v107_v35 }
  0x55   :  { %367 = vmatprep.mubr.bf16.mxu0 %v3207_v0  ;;  %440 = vmatprep.mubr.bf16.mxu1 %v3207_v0 }
  0x5c   :  { %368 = vmatmul.mubr.bf16.gmra.mrb[4].mxu0 %v108_v38  ;;  %441 = vmatmul.mubr.bf16.gmra.mrb[4].mxu1 %v108_v38 }
  0x5d   :  { %377 = vmatprep.mubr.bf16.mxu0 %v3207_v0  ;;  %450 = vmatprep.mubr.bf16.mxu1 %v3207_v0 }
  0x64   :  { %378 = vmatmul.mubr.bf16.gmra.mrb[8].mxu0 %v109_v41  ;;  %451 = vmatmul.mubr.bf16.gmra.mrb[8].mxu1 %v109_v41 }
  0x65   :  { %387 = vmatprep.mubr.bf16.mxu0 %v3207_v0  ;;  %460 = vmatprep.mubr.bf16.mxu1 %v3207_v0 }
  0x6c   :  { %388 = vmatmul.mubr.bf16.gmra.mrb[12].mxu0 %v110_v44  ;;  %461 = vmatmul.mubr.bf16.gmra.mrb[12].mxu1 %v110_v44 }
  0x6d   :  { %3155 = shalt.err (!%p3152_p4)  }
  0x6e   :  { %s3156_s25 = scalar_lea.vmem %s96_s11, 1024  ;;  %p3161_p6 = scmp.lt.s32.totalorder %s96_s11, %s96_s11 }
  0x6f   :  { %p3157_p5 = scmp.ne.s32.totalorder %s96_s11, %s3156_s25  ;;  %p3162_p7 = scmp.lt.s32.totalorder %s3156_s25, %s3156_s25 }
  0x71   :  { %p3163_p8 = por %p3162_p7, %p3161_p6 }
  0x73   :  { %p3164_p9 = pnand %p3163_p8, %p3157_p5 }
  0x75   :  { %3167 = shalt.err (!%p3164_p9)  }
  0x76   :  { %98 = dma.hbm_to_vmem [thread:$0]  %s5163_s6, 1024, %s96_s11, [#allocation5 + $0x1]  ;;  %v145_v45 = vlaneseq  ;;  %v143_v49 = vld [vmem:[%s5159_s2] sm:$0xf] }
  0x78   :  { %v3312_v46 = vshrl.u32 %v145_v45, 7 }
  0x7a   :  { %5503 = vst [vmem:[#allocation23_spill] sm:$0xff] %v3312_v46  ;;  %v5168_v47 = vsub.s32 0, %v3312_v46  ;;  %v5166_v48 = vsub.s32 2, %v3312_v46  ;;  %v5167_v50 = vsub.s32 1, %v3312_v46  ;;  %v5165_v51 = vsub.s32 3, %v3312_v46 }
  0x7c   :  { %v148_v52 = vrot.slane %v143_v49, %v5168_v47  ;;  %v156_v53 = vrot.slane %v143_v49, %v5166_v48  ;;  %v3327_v54 = vrot.slane %v143_v49, %v5167_v50  ;;  %v3331_v55 = vrot.slane %v143_v49, %v5165_v51 }
 0x127   :  { %v359_v56 = vpop.f32.mrb[0].mxu0  ;;  %v432_v57 = vpop.f32.mrb[0].mxu1 }
 0x128   :  { %v3333_v58 = vadd.f32 %v359_v56, %v148_v52  ;;  %v3335_v59 = vadd.f32 %v432_v57, %v156_v53  ;;  %v361_v60 = vpop.f32.mrb[1].mxu0  ;;  %v434_v61 = vpop.f32.mrb[1].mxu1 }
 0x129   :  { %v3338_v62 = vadd.f32 %v361_v60, %v3327_v54  ;;  %v3341_v63 = vadd.f32 %v434_v61, %v3331_v55  ;;  %v363_v0 = vpop.f32.mrb[2].mxu0  ;;  %v436_v1 = vpop.f32.mrb[2].mxu1 }
 0x12a   :  { %v3343_v2 = vadd.f32 %v363_v0, %v148_v52  ;;  %v3345_v3 = vadd.f32 %v436_v1, %v156_v53  ;;  %v365_v4 = vpop.f32.mrb[3].mxu0  ;;  %v438_v5 = vpop.f32.mrb[3].mxu1 }
 0x12b   :  { %v3348_v6 = vadd.f32 %v365_v4, %v3327_v54  ;;  %v3351_v7 = vadd.f32 %v438_v5, %v3331_v55 }
 0x12c   :  { %5504 = vst [vmem:[#allocation24_spill] sm:$0xff] %v3343_v2  ;;  %5505 = vst [vmem:[#allocation25_spill] sm:$0xff] %v3345_v3 }
 0x12d   :  { %5506 = vst [vmem:[#allocation26_spill] sm:$0xff] %v3348_v6  ;;  %5507 = vst [vmem:[#allocation27_spill] sm:$0xff] %v3351_v7 }
 0x12f   :  { %v369_v8 = vpop.f32.mrb[4].mxu0  ;;  %v442_v9 = vpop.f32.mrb[4].mxu1 }
 0x130   :  { %v3353_v10 = vadd.f32 %v369_v8, %v148_v52  ;;  %v3355_v11 = vadd.f32 %v442_v9, %v156_v53  ;;  %v371_v12 = vpop.f32.mrb[5].mxu0  ;;  %v444_v13 = vpop.f32.mrb[5].mxu1 }
 0x131   :  { %v3358_v14 = vadd.f32 %v371_v12, %v3327_v54  ;;  %v3361_v15 = vadd.f32 %v444_v13, %v3331_v55  ;;  %v373_v16 = vpop.f32.mrb[6].mxu0  ;;  %v446_v17 = vpop.f32.mrb[6].mxu1 }
 0x132   :  { %5508 = vst [vmem:[#allocation28_spill] sm:$0xff] %v3353_v10  ;;  %5509 = vst [vmem:[#allocation29_spill] sm:$0xff] %v3355_v11  ;;  %v3363_v18 = vadd.f32 %v373_v16, %v148_v52  ;;  %v3365_v19 = vadd.f32 %v446_v17, %v156_v53  ;;  %v375_v20 = vpop.f32.mrb[7].mxu0  ;;  %v448_v21 = vpop.f32.mrb[7].mxu1 }
 0x133   :  { %5510 = vst [vmem:[#allocation30_spill] sm:$0xff] %v3358_v14  ;;  %5511 = vst [vmem:[#allocation31_spill] sm:$0xff] %v3361_v15  ;;  %v3368_v22 = vadd.f32 %v375_v20, %v3327_v54  ;;  %v3371_v23 = vadd.f32 %v448_v21, %v3331_v55 }
 0x134   :  { %5512 = vst [vmem:[#allocation32_spill] sm:$0xff] %v3363_v18  ;;  %5513 = vst [vmem:[#allocation33_spill] sm:$0xff] %v3365_v19 }
 0x135   :  { %5514 = vst [vmem:[#allocation34_spill] sm:$0xff] %v3368_v22  ;;  %5515 = vst [vmem:[#allocation35_spill] sm:$0xff] %v3371_v23 }
 0x137   :  { %v379_v24 = vpop.f32.mrb[8].mxu0  ;;  %v452_v25 = vpop.f32.mrb[8].mxu1 }
 0x138   :  { %v3373_v26 = vadd.f32 %v379_v24, %v148_v52  ;;  %v3375_v27 = vadd.f32 %v452_v25, %v156_v53  ;;  %v381_v28 = vpop.f32.mrb[9].mxu0  ;;  %v454_v29 = vpop.f32.mrb[9].mxu1 }
 0x139   :  { %v3378_v30 = vadd.f32 %v381_v28, %v3327_v54  ;;  %v3381_v31 = vadd.f32 %v454_v29, %v3331_v55  ;;  %v383_v32 = vpop.f32.mrb[10].mxu0  ;;  %v456_v33 = vpop.f32.mrb[10].mxu1 }
 0x13a   :  { %5516 = vst [vmem:[#allocation36_spill] sm:$0xff] %v3373_v26  ;;  %5517 = vst [vmem:[#allocation37_spill] sm:$0xff] %v3375_v27  ;;  %v3383_v34 = vadd.f32 %v383_v32, %v148_v52  ;;  %v3385_v35 = vadd.f32 %v456_v33, %v156_v53  ;;  %v385_v36 = vpop.f32.mrb[11].mxu0  ;;  %v458_v37 = vpop.f32.mrb[11].mxu1 }
 0x13b   :  { %5518 = vst [vmem:[#allocation38_spill] sm:$0xff] %v3378_v30  ;;  %5519 = vst [vmem:[#allocation39_spill] sm:$0xff] %v3381_v31  ;;  %v3388_v38 = vadd.f32 %v385_v36, %v3327_v54  ;;  %v3391_v39 = vadd.f32 %v458_v37, %v3331_v55 }
 0x13c   :  { %5520 = vst [vmem:[#allocation40_spill] sm:$0xff] %v3383_v34  ;;  %5521 = vst [vmem:[#allocation41_spill] sm:$0xff] %v3385_v35 }
 0x13d   :  { %5522 = vst [vmem:[#allocation42_spill] sm:$0xff] %v3388_v38  ;;  %5523 = vst [vmem:[#allocation43_spill] sm:$0xff] %v3391_v39 }
 0x13f   :  { %v389_v40 = vpop.f32.mrb[12].mxu0  ;;  %v462_v41 = vpop.f32.mrb[12].mxu1 }
 0x140   :  { %v3393_v42 = vadd.f32 %v389_v40, %v148_v52  ;;  %v3395_v43 = vadd.f32 %v462_v41, %v156_v53  ;;  %v391_v44 = vpop.f32.mrb[13].mxu0  ;;  %v464_v45 = vpop.f32.mrb[13].mxu1 }
 0x141   :  { %v3398_v49 = vadd.f32 %v391_v44, %v3327_v54  ;;  %v3401_v56 = vadd.f32 %v464_v45, %v3331_v55  ;;  %v393_v57 = vpop.f32.mrb[14].mxu0  ;;  %v466_v60 = vpop.f32.mrb[14].mxu1 }
 0x142   :  { %5524 = vst [vmem:[#allocation44_spill] sm:$0xff] %v3393_v42  ;;  %5525 = vst [vmem:[#allocation45_spill] sm:$0xff] %v3395_v43  ;;  %v3403_v61 = vadd.f32 %v393_v57, %v148_v52  ;;  %v3405_v0 = vadd.f32 %v466_v60, %v156_v53  ;;  %v395_v1 = vpop.f32.mrb[15].mxu0  ;;  %v468_v4 = vpop.f32.mrb[15].mxu1 }
 0x143   :  { %5526 = vst [vmem:[#allocation46_spill] sm:$0xff] %v3398_v49  ;;  %5527 = vst [vmem:[#allocation47_spill] sm:$0xff] %v3401_v56  ;;  %v3408_v5 = vadd.f32 %v395_v1, %v3327_v54  ;;  %v3411_v8 = vadd.f32 %v468_v4, %v3331_v55 }
 0x144   :  { %5528 = vst [vmem:[#allocation48_spill] sm:$0xff] %v3403_v61  ;;  %5529 = vst [vmem:[#allocation49_spill] sm:$0xff] %v3405_v0 }
 0x145   :  { %5530 = vst [vmem:[#allocation50_spill] sm:$0xff] %v3408_v5  ;;  %5531 = vst [vmem:[#allocation51_spill] sm:$0xff] %v3411_v8 }
 0x146   :  { %3194 = dma.done.wait [#allocation5], 16384 }
 0x147   :  { %3195 = vsyncadd [#allocation5], 4294950912  ;;  %v5169_v9 = vmov 0.0|0.0   ;;  %v668_v52 = vsub.f32 0.0, %v3333_v58  ;;  %v669_v53 = vsub.f32 0.0, %v3338_v62  ;;  %v3417_v12 = vld [vmem:[#allocation3 + $0x8] sm:$0xff] }
 0x148   :  { %723 = vmatprep.mubr.bf16.mxu0 %v5169_v9  ;;  %764 = vmatprep.mubr.bf16.mxu1 %v5169_v9  ;;  %v3419_v13 = vld [vmem:[#allocation3] sm:$0xff]  ;;  %v3421_v54 = vld [vmem:[#allocation3 + $0x48] sm:$0xff]  ;;  %v3425_v16 = vld [vmem:[#allocation3 + $0x18] sm:$0xff] }
 0x149   :  { %691 = vmatprep.subr.bf16.mxu0 %v3417_v12  ;;  %v671_v55 = vmul.f32 1.442695, %v668_v52  ;;  %v673_v17 = vmul.f32 1.442695, %v669_v53  ;;  %v3428_v20 = vld [vmem:[#allocation3 + $0x40] sm:$0xff]  ;;  %732 = vmatprep.subr.bf16.mxu1 %v3425_v16  ;;  %v3431_v58 = vld [vmem:[#allocation3 + $0x10] sm:$0xff] }
 0x14a   :  { %692 = vmatpush1.bf16.msra.mxu0 %v3419_v13  ;;  %v3433_v62 = vld [vmem:[#allocation3 + $0x88] sm:$0xff]  ;;  %733 = vmatpush1.bf16.msra.mxu1 %v3431_v58  ;;  %v3436_v21 = vld [vmem:[#allocation3 + $0x58] sm:$0xff]  ;;  %v3439_v24 = vld [vmem:[#allocation3 + $0x50] sm:$0xff]  ;;  %v670_v52 = vsub.f32 0.0, %v3335_v59 }
 0x14b   :  { %693 = vmatprep.subr.bf16.mxu0 %v3421_v54  ;;  %734 = vmatprep.subr.bf16.mxu1 %v3436_v21  ;;  %2590 = vpow2.f32 %v671_v55  ;;  %v3442_v25 = vld [vmem:[#allocation3 + $0x98] sm:$0xff]  ;;  %v3445_v28 = vld [vmem:[#allocation3 + $0x80] sm:$0xff]  ;;  %v3447_v29 = vld [vmem:[#allocation3 + $0xc8] sm:$0xff] }
 0x14c   :  { %2592 = vpow2.f32 %v673_v17  ;;  %v3451_v32 = vld [vmem:[#allocation3 + $0x90] sm:$0xff]  ;;  %v3454_v33 = vld [vmem:[#allocation3 + $0xd8] sm:$0xff]  ;;  %v3457_v36 = vld [vmem:[#allocation3 + $0xc0] sm:$0xff]  ;;  %v675_v59 = vmul.f32 1.442695, %v670_v52 }
 0x14d   :  { %v3459_v37 = vld [vmem:[#allocation3 + $0x108] sm:$0xff]  ;;  %v3463_v40 = vld [vmem:[#allocation3 + $0xd0] sm:$0xff]  ;;  %v3466_v41 = vld [vmem:[#allocation3 + $0x118] sm:$0xff]  ;;  %2594 = vtanh.f32 %v3341_v63 }
 0x14e   :  { %694 = vmatpush1.bf16.msra.mxu0 %v3428_v20  ;;  %735 = vmatpush1.bf16.msra.mxu1 %v3439_v24  ;;  %v3469_v45 = vld [vmem:[#allocation3 + $0x100] sm:$0xff]  ;;  %v3471_v60 = vld [vmem:[#allocation3 + $0x148] sm:$0xff]  ;;  %v3475_v1 = vld [vmem:[#allocation3 + $0x110] sm:$0xff] }
 0x14f   :  { %695 = vmatprep.subr.bf16.mxu0 %v3433_v62  ;;  %736 = vmatprep.subr.bf16.mxu1 %v3442_v25  ;;  %v3478_v4 = vld [vmem:[#allocation3 + $0x158] sm:$0xff]  ;;  %v3482_v55 = vld [vmem:[#allocation3 + $0x140] sm:$0xff]  ;;  %v3484_v51 = vld [vmem:[#allocation3 + $0x188] sm:$0xff] }
 0x150   :  { %v3488_v48 = vld [vmem:[#allocation3 + $0x150] sm:$0xff]  ;;  %v3492_v50 = vld [vmem:[#allocation3 + $0x198] sm:$0xff]  ;;  %v3507_v52 = vld [vmem:[#allocation3 + $0x1c0] sm:$0xff] }
 0x151   :  { %v3501_v47 = vld [vmem:[#allocation3 + $0x190] sm:$0xff]  ;;  %v3504_v63 = vld [vmem:[#allocation3 + $0x1d8] sm:$0xff]  ;;  %v3521_v5 = vld [vmem:[#allocation3 + $0x248] sm:$0xff] }
 0x152   :  { %696 = vmatpush1.bf16.msra.mxu0 %v3445_v28  ;;  %737 = vmatpush1.bf16.msra.mxu1 %v3451_v32  ;;  %v3516_v9 = vld [vmem:[#allocation3 + $0x218] sm:$0xff]  ;;  %5532 = vst [vmem:[#allocation52_spill] sm:$0xff] %v3521_v5  ;;  %v3525_v43 = vld [vmem:[#allocation3 + $0x210] sm:$0xff]  ;;  %v3531_v49 = vld [vmem:[#allocation3 + $0x240] sm:$0xff] }
 0x153   :  { %697 = vmatprep.subr.bf16.mxu0 %v3447_v29  ;;  %738 = vmatprep.subr.bf16.mxu1 %v3454_v33  ;;  %5533 = vst [vmem:[#allocation53_spill] sm:$0xff] %v3525_v43  ;;  %v3528_v56 = vld [vmem:[#allocation3 + $0x258] sm:$0xff]  ;;  %5535 = vst [vmem:[#allocation55_spill] sm:$0xff] %v3531_v49  ;;  %v3533_v35 = vld [vmem:[#allocation3 + $0x288] sm:$0xff] }
 0x154   :  { %5534 = vst [vmem:[#allocation54_spill] sm:$0xff] %v3528_v56  ;;  %5536 = vst [vmem:[#allocation56_spill] sm:$0xff] %v3533_v35  ;;  %v3537_v34 = vld [vmem:[#allocation3 + $0x250] sm:$0xff]  ;;  %v3540_v27 = vld [vmem:[#allocation3 + $0x298] sm:$0xff] }
 0x155   :  { %v2591_v44 = vpop.eup %2590  ;;  %5537 = vst [vmem:[#allocation57_spill] sm:$0xff] %v3537_v34  ;;  %5538 = vst [vmem:[#allocation58_spill] sm:$0xff] %v3540_v27  ;;  %v3543_v31 = vld [vmem:[#allocation3 + $0x280] sm:$0xff]  ;;  %v3545_v26 = vld [vmem:[#allocation3 + $0x2c8] sm:$0xff] }
 0x156   :  { %698 = vmatpush1.bf16.msra.mxu0 %v3457_v36  ;;  %v2593_v57 = vpop.eup %2592  ;;  %739 = vmatpush1.bf16.msra.mxu1 %v3463_v40  ;;  %v677_v53 = vadd.f32 1.0, %v2591_v44  ;;  %v3495_v44 = vld [vmem:[#allocation3 + $0x180] sm:$0xff]  ;;  %5539 = vst [vmem:[#allocation59_spill] sm:$0xff] %v3543_v31  ;;  %5540 = vst [vmem:[#allocation60_spill] sm:$0xff] %v3545_v26  ;;  %v3572_v22 = vld [vmem:[#allocation3 + $0x348] sm:$0xff] }
 0x157   :  { %699 = vmatprep.subr.bf16.mxu0 %v3459_v37  ;;  %740 = vmatprep.subr.bf16.mxu1 %v3466_v41  ;;  %v678_v17 = vadd.f32 1.0, %v2593_v57  ;;  %v3497_v57 = vld [vmem:[#allocation3 + $0x1c8] sm:$0xff]  ;;  %v2595_v8 = vpop.eup %2594  ;;  %v3570_v23 = vld [vmem:[#allocation3 + $0x300] sm:$0xff]  ;;  %5549 = vst [vmem:[#allocation69_spill] sm:$0xff] %v3572_v22  ;;  %v3579_v18 = vld [vmem:[#allocation3 + $0x358] sm:$0xff] }
 0x158   :  { %2596 = vrcp.f32 %v677_v53  ;;  %v3509_v53 = vld [vmem:[#allocation3 + $0x208] sm:$0xff]  ;;  %5548 = vst [vmem:[#allocation68_spill] sm:$0xff] %v3570_v23  ;;  %5551 = vst [vmem:[#allocation71_spill] sm:$0xff] %v3579_v18  ;;  %v3582_v11 = vld [vmem:[#allocation3 + $0x340] sm:$0xff] }
 0x159   :  { %2598 = vrcp.f32 %v678_v17  ;;  %v3513_v17 = vld [vmem:[#allocation3 + $0x1d0] sm:$0xff]  ;;  %5552 = vst [vmem:[#allocation72_spill] sm:$0xff] %v3582_v11  ;;  %v3584_v15 = vld [vmem:[#allocation3 + $0x388] sm:$0xff]  ;;  %v3591_v46 = vld [vmem:[#allocation3 + $0x398] sm:$0xff] }
 0x15a   :  { %700 = vmatpush1.bf16.msra.mxu0 %v3469_v45  ;;  %741 = vmatpush1.bf16.msra.mxu1 %v3475_v1  ;;  %2600 = vpow2.f32 %v675_v59  ;;  %v3519_v59 = vld [vmem:[#allocation3 + $0x200] sm:$0xff]  ;;  %5553 = vst [vmem:[#allocation73_spill] sm:$0xff] %v3584_v15  ;;  %v3588_v10 = vld [vmem:[#allocation3 + $0x350] sm:$0xff]  ;;  %5555 = vst [vmem:[#allocation75_spill] sm:$0xff] %v3591_v46 }
 0x15b   :  { %701 = vmatprep.subr.bf16.mxu0 %v3471_v60  ;;  %742 = vmatprep.subr.bf16.mxu1 %v3478_v4  ;;  %5554 = vst [vmem:[#allocation74_spill] sm:$0xff] %v3588_v10  ;;  %v3596_v7 = vld [vmem:[#allocation3 + $0x3c8] sm:$0xff]  ;;  %v3600_v2 = vld [vmem:[#allocation3 + $0x390] sm:$0xff] }
 0x15c   :  { %5557 = vst [vmem:[#allocation77_spill] sm:$0xff] %v3596_v7  ;;  %5558 = vst [vmem:[#allocation78_spill] sm:$0xff] %v3600_v2 }
 0x15e   :  { %702 = vmatpush1.bf16.msra.mxu0 %v3482_v55  ;;  %743 = vmatpush1.bf16.msra.mxu1 %v3488_v48 }
 0x15f   :  { %703 = vmatprep.subr.bf16.mxu0 %v3484_v51  ;;  %744 = vmatprep.subr.bf16.mxu1 %v3492_v50 }
 0x162   :  { %704 = vmatpush1.bf16.msra.mxu0 %v3495_v44  ;;  %745 = vmatpush1.bf16.msra.mxu1 %v3501_v47  ;;  %v2597_v0 = vpop.eup %2596 }
 0x163   :  { %705 = vmatprep.subr.bf16.mxu0 %v3497_v57  ;;  %746 = vmatprep.subr.bf16.mxu1 %v3504_v63  ;;  %v2599_v61 = vpop.eup %2598  ;;  %v685_v38 = vmul.f32 %v2597_v0, %v2595_v8  ;;  %v3554_v0 = vld [vmem:[#allocation3 + $0x2d8] sm:$0xff]  ;;  %v3557_v8 = vld [vmem:[#allocation3 + $0x2c0] sm:$0xff] }
 0x164   :  { %v2601_v42 = vpop.eup %2600  ;;  %v684_v39 = vmul.f32 0.0, %v2599_v61  ;;  %v3551_v61 = vld [vmem:[#allocation3 + $0x290] sm:$0xff]  ;;  %5543 = vst [vmem:[#allocation63_spill] sm:$0xff] %v3554_v0  ;;  %5544 = vst [vmem:[#allocation64_spill] sm:$0xff] %v3557_v8 }
 0x165   :  { %v679_v30 = vadd.f32 1.0, %v2601_v42  ;;  %5542 = vst [vmem:[#allocation62_spill] sm:$0xff] %v3551_v61  ;;  %v3559_v42 = vld [vmem:[#allocation3 + $0x308] sm:$0xff] }
 0x166   :  { %706 = vmatpush1.bf16.msra.mxu0 %v3507_v52  ;;  %747 = vmatpush1.bf16.msra.mxu1 %v3513_v17  ;;  %v3548_v19 = vadd.f32 %v685_v38, %v684_v39  ;;  %5545 = vst [vmem:[#allocation65_spill] sm:$0xff] %v3559_v42  ;;  %v3564_v38 = vld [vmem:[#allocation3 + $0x2d0] sm:$0xff]  ;;  %v3567_v39 = vld [vmem:[#allocation3 + $0x318] sm:$0xff] }
 0x167   :  { %707 = vmatprep.subr.bf16.mxu0 %v3509_v53  ;;  %748 = vmatprep.subr.bf16.mxu1 %v3516_v9  ;;  %2602 = vrcp.f32 %v679_v30  ;;  %5546 = vst [vmem:[#allocation66_spill] sm:$0xff] %v3564_v38  ;;  %5547 = vst [vmem:[#allocation67_spill] sm:$0xff] %v3567_v39  ;;  %v3576_v30 = vld [vmem:[#allocation3 + $0x310] sm:$0xff] }
 0x168   :  { %5541 = vst [vmem:[#allocation61_spill] sm:$0xff] %v3548_v19  ;;  %2604 = vtanh.f32 %v3548_v19  ;;  %5550 = vst [vmem:[#allocation70_spill] sm:$0xff] %v3576_v30  ;;  %v3594_v19 = vld [vmem:[#allocation3 + $0x380] sm:$0xff] }
 0x169   :  { %5556 = vst [vmem:[#allocation76_spill] sm:$0xff] %v3594_v19 }
 0x16a   :  { %708 = vmatpush1.bf16.msra.mxu0 %v3519_v59  ;;  %749 = vmatpush1.bf16.msra.mxu1 %v3525_v43 }
 0x16b   :  { %709 = vmatprep.subr.bf16.mxu0 %v3521_v5  ;;  %750 = vmatprep.subr.bf16.mxu1 %v3528_v56 }
 0x16e   :  { %710 = vmatpush1.bf16.msra.mxu0 %v3531_v49  ;;  %751 = vmatpush1.bf16.msra.mxu1 %v3537_v34 }
 0x16f   :  { %711 = vmatprep.subr.bf16.mxu0 %v3533_v35  ;;  %752 = vmatprep.subr.bf16.mxu1 %v3540_v27 }
 0x171   :  { %v2603_v14 = vpop.eup %2602 }
 0x172   :  { %712 = vmatpush1.bf16.msra.mxu0 %v3543_v31  ;;  %753 = vmatpush1.bf16.msra.mxu1 %v3551_v61  ;;  %v2605_v3 = vpop.eup %2604 }
 0x173   :  { %713 = vmatprep.subr.bf16.mxu0 %v3545_v26  ;;  %754 = vmatprep.subr.bf16.mxu1 %v3554_v0  ;;  %v688_v6 = vmul.f32 %v2605_v3, %v2603_v14  ;;  %v3614_v3 = vld [vmem:[#allocation3 + $0x3d0] sm:$0xff]  ;;  %v3617_v14 = vld [vmem:[#allocation3 + $0x38] sm:$0xff] }
 0x174   :  { %5562 = vst [vmem:[#allocation82_spill] sm:$0xff] %v3614_v3  ;;  %5563 = vst [vmem:[#allocation83_spill] sm:$0xff] %v3617_v14 }
 0x176   :  { %714 = vmatpush1.bf16.msra.mxu0 %v3557_v8  ;;  %755 = vmatpush1.bf16.msra.mxu1 %v3564_v38 }
 0x177   :  { %715 = vmatprep.subr.bf16.mxu0 %v3559_v42  ;;  %756 = vmatprep.subr.bf16.mxu1 %v3567_v39 }
 0x17a   :  { %716 = vmatpush1.bf16.msra.mxu0 %v3570_v23  ;;  %757 = vmatpush1.bf16.msra.mxu1 %v3576_v30  ;;  %v3611_v30 = vpack.c.bf16 %v688_v6, %v688_v6  ;;  %v3627_v6 = vld [vmem:[#allocation3 + $0x30] sm:$0xff] }
 0x17b   :  { %717 = vmatprep.subr.bf16.mxu0 %v3572_v22  ;;  %758 = vmatprep.subr.bf16.mxu1 %v3579_v18  ;;  %v3603_v18 = vld [vmem:[#allocation3 + $0x3d8] sm:$0xff]  ;;  %5566 = vst [vmem:[#allocation86_spill] sm:$0xff] %v3627_v6 }
 0x17c   :  { %5559 = vst [vmem:[#allocation79_spill] sm:$0xff] %v3603_v18 }
 0x17e   :  { %718 = vmatpush1.bf16.msra.mxu0 %v3582_v11  ;;  %759 = vmatpush1.bf16.msra.mxu1 %v3588_v10  ;;  %v3606_v11 = vld [vmem:[#allocation3 + $0x3c0] sm:$0xff] }
 0x17f   :  { %719 = vmatprep.subr.bf16.mxu0 %v3584_v15  ;;  %760 = vmatprep.subr.bf16.mxu1 %v3591_v46  ;;  %5560 = vst [vmem:[#allocation80_spill] sm:$0xff] %v3606_v11  ;;  %v3608_v15 = vld [vmem:[#allocation3 + $0x28] sm:$0xff] }
 0x180   :  { %5561 = vst [vmem:[#allocation81_spill] sm:$0xff] %v3608_v15 }
 0x182   :  { %720 = vmatpush1.bf16.msra.mxu0 %v3594_v19  ;;  %761 = vmatpush1.bf16.msra.mxu1 %v3600_v2  ;;  %v3620_v19 = vld [vmem:[#allocation3 + $0x20] sm:$0xff]  ;;  %v3637_v2 = vld [vmem:[#allocation3 + $0xa8] sm:$0xff] }
 0x183   :  { %721 = vmatprep.subr.bf16.mxu0 %v3596_v7  ;;  %762 = vmatprep.subr.bf16.mxu1 %v3603_v18  ;;  %5564 = vst [vmem:[#allocation84_spill] sm:$0xff] %v3620_v19  ;;  %v3622_v7 = vld [vmem:[#allocation3 + $0x68] sm:$0xff]  ;;  %v3630_v18 = vld [vmem:[#allocation3 + $0x78] sm:$0xff]  ;;  %5570 = vst [vmem:[#allocation89_spill] sm:$0xff] %v3637_v2 }
 0x184   :  { %5565 = vst [vmem:[#allocation85_spill] sm:$0xff] %v3622_v7  ;;  %5567 = vst [vmem:[#allocation87_spill] sm:$0xff] %v3630_v18 }
 0x186   :  { %722 = vmatpush1.bf16.msra.mxu0 %v3606_v11  ;;  %763 = vmatpush1.bf16.msra.mxu1 %v3614_v3  ;;  %v5568_v11 = vmov 0.0|0.0   ;;  %v3650_v3 = vld [vmem:[#allocation3 + $0xe8] sm:$0xff] }
 0x187   :  { %773 = vmatprep.subr.bf16.mxu0 %v3608_v15  ;;  %814 = vmatprep.subr.bf16.mxu1 %v3617_v14  ;;  %v3634_v15 = vld [vmem:[#allocation3 + $0x60] sm:$0xff]  ;;  %v3642_v14 = vld [vmem:[#allocation3 + $0x70] sm:$0xff]  ;;  %5574 = vst [vmem:[#allocation93_spill] sm:$0xff] %v3650_v3 }
 0x188   :  { %5569 = vst [vmem:[#allocation88_spill] sm:$0xff] %v3634_v15  ;;  %5571 = vst [vmem:[#allocation90_spill] sm:$0xff] %v3642_v14 }
 0x189   :  { %724 = vmatmul.mubr.bf16.vlgmr.msra.gmra.mrb[16].mxu0 %v3611_v30  ;;  %765 = vmatmul.mubr.bf16.vlgmr.msra.gmra.mrb[16].mxu1 %v3611_v30 }
 0x18a   :  { %774 = vmatpush1.bf16.msra.mxu0 %v3620_v19  ;;  %805 = vmatprep.mubr.bf16.mxu0 %v5568_v11  ;;  %v3645_v19 = vld [vmem:[#allocation3 + $0xb8] sm:$0xff] }
 0x18b   :  { %775 = vmatprep.subr.bf16.mxu0 %v3622_v7  ;;  %815 = vmatpush1.bf16.msra.mxu1 %v3627_v6  ;;  %5572 = vst [vmem:[#allocation91_spill] sm:$0xff] %v3645_v19  ;;  %v3648_v7 = vld [vmem:[#allocation3 + $0xa0] sm:$0xff]  ;;  %v3654_v6 = vld [vmem:[#allocation3 + $0xb0] sm:$0xff] }
 0x18c   :  { %846 = vmatprep.mubr.bf16.mxu1 %v5568_v11  ;;  %816 = vmatprep.subr.bf16.mxu1 %v3630_v18  ;;  %5573 = vst [vmem:[#allocation92_spill] sm:$0xff] %v3648_v7  ;;  %5575 = vst [vmem:[#allocation94_spill] sm:$0xff] %v3654_v6  ;;  %v3657_v11 = vld [vmem:[#allocation3 + $0xf8] sm:$0xff]  ;;  %v3662_v18 = vld [vmem:[#allocation3 + $0x128] sm:$0xff] }
 0x18d   :  { %5576 = vst [vmem:[#allocation95_spill] sm:$0xff] %v3657_v11  ;;  %5578 = vst [vmem:[#allocation97_spill] sm:$0xff] %v3662_v18 }
 0x18e   :  { %776 = vmatpush1.bf16.msra.mxu0 %v3634_v15  ;;  %v3660_v15 = vld [vmem:[#allocation3 + $0xe0] sm:$0xff] }
 0x18f   :  { %777 = vmatprep.subr.bf16.mxu0 %v3637_v2  ;;  %817 = vmatpush1.bf16.msra.mxu1 %v3642_v14  ;;  %5577 = vst [vmem:[#allocation96_spill] sm:$0xff] %v3660_v15  ;;  %v3666_v2 = vld [vmem:[#allocation3 + $0xf0] sm:$0xff]  ;;  %v3674_v14 = vld [vmem:[#allocation3 + $0x168] sm:$0xff] }
 0x190   :  { %818 = vmatprep.subr.bf16.mxu1 %v3645_v19  ;;  %5579 = vst [vmem:[#allocation98_spill] sm:$0xff] %v3666_v2  ;;  %v3669_v19 = vld [vmem:[#allocation3 + $0x138] sm:$0xff]  ;;  %5582 = vst [vmem:[#allocation101_spill] sm:$0xff] %v3674_v14 }
 0x191   :  { %5580 = vst [vmem:[#allocation99_spill] sm:$0xff] %v3669_v19 }
 0x192   :  { %778 = vmatpush1.bf16.msra.mxu0 %v3648_v7  ;;  %v3672_v7 = vld [vmem:[#allocation3 + $0x120] sm:$0xff] }
 0x193   :  { %779 = vmatprep.subr.bf16.mxu0 %v3650_v3  ;;  %819 = vmatpush1.bf16.msra.mxu1 %v3654_v6  ;;  %5581 = vst [vmem:[#allocation100_spill] sm:$0xff] %v3672_v7  ;;  %v3678_v3 = vld [vmem:[#allocation3 + $0x130] sm:$0xff]  ;;  %v3686_v6 = vld [vmem:[#allocation3 + $0x1a8] sm:$0xff] }
 0x194   :  { %820 = vmatprep.subr.bf16.mxu1 %v3657_v11  ;;  %5583 = vst [vmem:[#allocation102_spill] sm:$0xff] %v3678_v3  ;;  %v3681_v11 = vld [vmem:[#allocation3 + $0x178] sm:$0xff]  ;;  %5586 = vst [vmem:[#allocation105_spill] sm:$0xff] %v3686_v6 }
 0x195   :  { %5584 = vst [vmem:[#allocation103_spill] sm:$0xff] %v3681_v11 }
 0x196   :  { %780 = vmatpush1.bf16.msra.mxu0 %v3660_v15  ;;  %v3684_v15 = vld [vmem:[#allocation3 + $0x160] sm:$0xff] }
 0x197   :  { %781 = vmatprep.subr.bf16.mxu0 %v3662_v18  ;;  %821 = vmatpush1.bf16.msra.mxu1 %v3666_v2  ;;  %5585 = vst [vmem:[#allocation104_spill] sm:$0xff] %v3684_v15  ;;  %v3690_v18 = vld [vmem:[#allocation3 + $0x170] sm:$0xff]  ;;  %v3698_v2 = vld [vmem:[#allocation3 + $0x1e8] sm:$0xff] }
 0x198   :  { %822 = vmatprep.subr.bf16.mxu1 %v3669_v19  ;;  %5587 = vst [vmem:[#allocation106_spill] sm:$0xff] %v3690_v18  ;;  %v3693_v19 = vld [vmem:[#allocation3 + $0x1b8] sm:$0xff]  ;;  %5590 = vst [vmem:[#allocation109_spill] sm:$0xff] %v3698_v2 }
 0x199   :  { %5588 = vst [vmem:[#allocation107_spill] sm:$0xff] %v3693_v19 }
 0x19a   :  { %782 = vmatpush1.bf16.msra.mxu0 %v3672_v7  ;;  %v3696_v7 = vld [vmem:[#allocation3 + $0x1a0] sm:$0xff] }
 0x19b   :  { %783 = vmatprep.subr.bf16.mxu0 %v3674_v14  ;;  %823 = vmatpush1.bf16.msra.mxu1 %v3678_v3  ;;  %5589 = vst [vmem:[#allocation108_spill] sm:$0xff] %v3696_v7  ;;  %v3702_v14 = vld [vmem:[#allocation3 + $0x1b0] sm:$0xff]  ;;  %v3710_v3 = vld [vmem:[#allocation3 + $0x228] sm:$0xff] }
 0x19c   :  { %824 = vmatprep.subr.bf16.mxu1 %v3681_v11  ;;  %5591 = vst [vmem:[#allocation110_spill] sm:$0xff] %v3702_v14  ;;  %v3705_v11 = vld [vmem:[#allocation3 + $0x1f8] sm:$0xff]  ;;  %5594 = vst [vmem:[#allocation113_spill] sm:$0xff] %v3710_v3 }
 0x19d   :  { %5592 = vst [vmem:[#allocation111_spill] sm:$0xff] %v3705_v11 }
 0x19e   :  { %784 = vmatpush1.bf16.msra.mxu0 %v3684_v15  ;;  %v3708_v15 = vld [vmem:[#allocation3 + $0x1e0] sm:$0xff] }
 0x19f   :  { %785 = vmatprep.subr.bf16.mxu0 %v3686_v6  ;;  %825 = vmatpush1.bf16.msra.mxu1 %v3690_v18  ;;  %5593 = vst [vmem:[#allocation112_spill] sm:$0xff] %v3708_v15  ;;  %v3714_v6 = vld [vmem:[#allocation3 + $0x1f0] sm:$0xff]  ;;  %v3722_v18 = vld [vmem:[#allocation3 + $0x268] sm:$0xff] }
 0x1a0   :  { %826 = vmatprep.subr.bf16.mxu1 %v3693_v19  ;;  %5595 = vst [vmem:[#allocation114_spill] sm:$0xff] %v3714_v6  ;;  %v3717_v19 = vld [vmem:[#allocation3 + $0x238] sm:$0xff]  ;;  %5598 = vst [vmem:[#allocation117_spill] sm:$0xff] %v3722_v18 }
 0x1a1   :  { %5596 = vst [vmem:[#allocation115_spill] sm:$0xff] %v3717_v19 }
 0x1a2   :  { %786 = vmatpush1.bf16.msra.mxu0 %v3696_v7  ;;  %v3720_v7 = vld [vmem:[#allocation3 + $0x220] sm:$0xff] }
 0x1a3   :  { %787 = vmatprep.subr.bf16.mxu0 %v3698_v2  ;;  %827 = vmatpush1.bf16.msra.mxu1 %v3702_v14  ;;  %5597 = vst [vmem:[#allocation116_spill] sm:$0xff] %v3720_v7  ;;  %v3726_v2 = vld [vmem:[#allocation3 + $0x230] sm:$0xff]  ;;  %v3734_v14 = vld [vmem:[#allocation3 + $0x2a8] sm:$0xff] }
 0x1a4   :  { %828 = vmatprep.subr.bf16.mxu1 %v3705_v11  ;;  %5599 = vst [vmem:[#allocation118_spill] sm:$0xff] %v3726_v2  ;;  %v3729_v11 = vld [vmem:[#allocation3 + $0x278] sm:$0xff]  ;;  %5602 = vst [vmem:[#allocation121_spill] sm:$0xff] %v3734_v14 }
 0x1a5   :  { %5600 = vst [vmem:[#allocation119_spill] sm:$0xff] %v3729_v11 }
 0x1a6   :  { %788 = vmatpush1.bf16.msra.mxu0 %v3708_v15  ;;  %v3732_v15 = vld [vmem:[#allocation3 + $0x260] sm:$0xff] }
 0x1a7   :  { %789 = vmatprep.subr.bf16.mxu0 %v3710_v3  ;;  %829 = vmatpush1.bf16.msra.mxu1 %v3714_v6  ;;  %5601 = vst [vmem:[#allocation120_spill] sm:$0xff] %v3732_v15  ;;  %v3738_v3 = vld [vmem:[#allocation3 + $0x270] sm:$0xff]  ;;  %v3746_v6 = vld [vmem:[#allocation3 + $0x2e8] sm:$0xff] }
 0x1a8   :  { %830 = vmatprep.subr.bf16.mxu1 %v3717_v19  ;;  %5603 = vst [vmem:[#allocation122_spill] sm:$0xff] %v3738_v3  ;;  %v3741_v19 = vld [vmem:[#allocation3 + $0x2b8] sm:$0xff]  ;;  %5606 = vst [vmem:[#allocation125_spill] sm:$0xff] %v3746_v6 }
 0x1a9   :  { %5604 = vst [vmem:[#allocation123_spill] sm:$0xff] %v3741_v19 }
 0x1aa   :  { %790 = vmatpush1.bf16.msra.mxu0 %v3720_v7  ;;  %v3744_v7 = vld [vmem:[#allocation3 + $0x2a0] sm:$0xff] }
 0x1ab   :  { %791 = vmatprep.subr.bf16.mxu0 %v3722_v18  ;;  %831 = vmatpush1.bf16.msra.mxu1 %v3726_v2  ;;  %5605 = vst [vmem:[#allocation124_spill] sm:$0xff] %v3744_v7  ;;  %v3750_v18 = vld [vmem:[#allocation3 + $0x2b0] sm:$0xff]  ;;  %v3758_v2 = vld [vmem:[#allocation3 + $0x328] sm:$0xff] }
 0x1ac   :  { %832 = vmatprep.subr.bf16.mxu1 %v3729_v11  ;;  %5607 = vst [vmem:[#allocation126_spill] sm:$0xff] %v3750_v18  ;;  %v3753_v11 = vld [vmem:[#allocation3 + $0x2f8] sm:$0xff]  ;;  %5610 = vst [vmem:[#allocation129_spill] sm:$0xff] %v3758_v2 }
 0x1ad   :  { %5608 = vst [vmem:[#allocation127_spill] sm:$0xff] %v3753_v11 }
 0x1ae   :  { %792 = vmatpush1.bf16.msra.mxu0 %v3732_v15  ;;  %v3756_v15 = vld [vmem:[#allocation3 + $0x2e0] sm:$0xff] }
 0x1af   :  { %793 = vmatprep.subr.bf16.mxu0 %v3734_v14  ;;  %833 = vmatpush1.bf16.msra.mxu1 %v3738_v3  ;;  %5609 = vst [vmem:[#allocation128_spill] sm:$0xff] %v3756_v15  ;;  %v3762_v14 = vld [vmem:[#allocation3 + $0x2f0] sm:$0xff]  ;;  %v3770_v3 = vld [vmem:[#allocation3 + $0x368] sm:$0xff] }
 0x1b0   :  { %834 = vmatprep.subr.bf16.mxu1 %v3741_v19  ;;  %5611 = vst [vmem:[#allocation130_spill] sm:$0xff] %v3762_v14  ;;  %v3765_v19 = vld [vmem:[#allocation3 + $0x338] sm:$0xff]  ;;  %5614 = vst [vmem:[#allocation133_spill] sm:$0xff] %v3770_v3 }
 0x1b1   :  { %5612 = vst [vmem:[#allocation131_spill] sm:$0xff] %v3765_v19 }
 0x1b2   :  { %794 = vmatpush1.bf16.msra.mxu0 %v3744_v7  ;;  %v3768_v7 = vld [vmem:[#allocation3 + $0x320] sm:$0xff] }
 0x1b3   :  { %795 = vmatprep.subr.bf16.mxu0 %v3746_v6  ;;  %835 = vmatpush1.bf16.msra.mxu1 %v3750_v18  ;;  %5613 = vst [vmem:[#allocation132_spill] sm:$0xff] %v3768_v7  ;;  %v3774_v6 = vld [vmem:[#allocation3 + $0x330] sm:$0xff]  ;;  %v3782_v18 = vld [vmem:[#allocation3 + $0x3a8] sm:$0xff] }
 0x1b4   :  { %836 = vmatprep.subr.bf16.mxu1 %v3753_v11  ;;  %v3777_v11 = vld [vmem:[#allocation3 + $0x378] sm:$0xff]  ;;  %5617 = vst [vmem:[#allocation136_spill] sm:$0xff] %v3782_v18 }
 0x1b5   :  { %5615 = vst [vmem:[#allocation134_spill] sm:$0xff] %v3777_v11 }
 0x1b6   :  { %796 = vmatpush1.bf16.msra.mxu0 %v3756_v15  ;;  %v3780_v15 = vld [vmem:[#allocation3 + $0x360] sm:$0xff] }
 0x1b7   :  { %797 = vmatprep.subr.bf16.mxu0 %v3758_v2  ;;  %837 = vmatpush1.bf16.msra.mxu1 %v3762_v14  ;;  %5616 = vst [vmem:[#allocation135_spill] sm:$0xff] %v3780_v15  ;;  %v3786_v2 = vld [vmem:[#allocation3 + $0x370] sm:$0xff]  ;;  %v3794_v14 = vld [vmem:[#allocation3 + $0x3e8] sm:$0xff] }
 0x1b8   :  { %838 = vmatprep.subr.bf16.mxu1 %v3765_v19  ;;  %v3789_v19 = vld [vmem:[#allocation3 + $0x3b8] sm:$0xff] }
 0x1ba   :  { %798 = vmatpush1.bf16.msra.mxu0 %v3768_v7  ;;  %v3792_v7 = vld [vmem:[#allocation3 + $0x3a0] sm:$0xff] }
 0x1bb   :  { %799 = vmatprep.subr.bf16.mxu0 %v3770_v3  ;;  %839 = vmatpush1.bf16.msra.mxu1 %v3774_v6  ;;  %5618 = vst [vmem:[#allocation137_spill] sm:$0xff] %v3792_v7  ;;  %v3798_v3 = vld [vmem:[#allocation3 + $0x3b0] sm:$0xff] }
 0x1bc   :  { %840 = vmatprep.subr.bf16.mxu1 %v3777_v11  ;;  %v3801_v11 = vld [vmem:[#allocation3 + $0x3f8] sm:$0xff] }
 0x1bd   :  { %5619 = vst [vmem:[#allocation138_spill] sm:$0xff] %v3801_v11 }
 0x1be   :  { %800 = vmatpush1.bf16.msra.mxu0 %v3780_v15  ;;  %v3804_v15 = vld [vmem:[#allocation3 + $0x3e0] sm:$0xff] }
 0x1bf   :  { %801 = vmatprep.subr.bf16.mxu0 %v3782_v18  ;;  %841 = vmatpush1.bf16.msra.mxu1 %v3786_v2  ;;  %v3808_v18 = vld [vmem:[#allocation3 + $0x3f0] sm:$0xff] }
 0x1c0   :  { %842 = vmatprep.subr.bf16.mxu1 %v3789_v19  ;;  %5620 = vst [vmem:[#allocation139_spill] sm:$0xff] %v3808_v18 }
 0x1c2   :  { %802 = vmatpush1.bf16.msra.mxu0 %v3792_v7 }
 0x1c3   :  { %803 = vmatprep.subr.bf16.mxu0 %v3794_v14  ;;  %843 = vmatpush1.bf16.msra.mxu1 %v3798_v3 }
 0x1c4   :  { %844 = vmatprep.subr.bf16.mxu1 %v3801_v11 }
 0x1c6   :  { %804 = vmatpush1.bf16.msra.mxu0 %v3804_v15 }
 0x1c7   :  { %914 = vmatprep.subr.bf16.mxu0 %v3417_v12  ;;  %845 = vmatpush1.bf16.msra.mxu1 %v3808_v18  ;;  %v5621_v12 = vld [vmem:[#allocation70_spill] sm:$0xff] }
 0x1c8   :  { %955 = vmatprep.subr.bf16.mxu1 %v3425_v16 }
 0x1c9   :  { %806 = vmatmul.mubr.bf16.vlgmr.msra.gmra.mrb[20].mxu0 %v3611_v30 }
 0x1ca   :  { %915 = vmatpush1.bf16.msra.mxu0 %v3419_v13  ;;  %847 = vmatmul.mubr.bf16.vlgmr.msra.gmra.mrb[20].mxu1 %v3611_v30  ;;  %v5622_v13 = vld [vmem:[#allocation71_spill] sm:$0xff]  ;;  %v5625_v30 = vld [vmem:[#allocation76_spill] sm:$0xff] }
 0x1cb   :  { %916 = vmatprep.subr.bf16.mxu0 %v3421_v54  ;;  %956 = vmatpush1.bf16.msra.mxu1 %v3431_v58  ;;  %v5623_v54 = vld [vmem:[#allocation72_spill] sm:$0xff] }
 0x1cc   :  { %957 = vmatprep.subr.bf16.mxu1 %v3436_v21 }
 0x1ce   :  { %917 = vmatpush1.bf16.msra.mxu0 %v3428_v20  ;;  %v5624_v20 = vld [vmem:[#allocation73_spill] sm:$0xff] }
 0x1cf   :  { %918 = vmatprep.subr.bf16.mxu0 %v3433_v62  ;;  %958 = vmatpush1.bf16.msra.mxu1 %v3439_v24 }
 0x1d0   :  { %959 = vmatprep.subr.bf16.mxu1 %v3442_v25 }
 0x1d2   :  { %919 = vmatpush1.bf16.msra.mxu0 %v3445_v28 }
 0x1d3   :  { %920 = vmatprep.subr.bf16.mxu0 %v3447_v29  ;;  %960 = vmatpush1.bf16.msra.mxu1 %v3451_v32 }
 0x1d4   :  { %961 = vmatprep.subr.bf16.mxu1 %v3454_v33 }
 0x1d6   :  { %921 = vmatpush1.bf16.msra.mxu0 %v3457_v36 }
 0x1d7   :  { %922 = vmatprep.subr.bf16.mxu0 %v3459_v37  ;;  %962 = vmatpush1.bf16.msra.mxu1 %v3463_v40 }
 0x1d8   :  { %963 = vmatprep.subr.bf16.mxu1 %v3466_v41 }
 0x1da   :  { %923 = vmatpush1.bf16.msra.mxu0 %v3469_v45 }
 0x1db   :  { %924 = vmatprep.subr.bf16.mxu0 %v3471_v60  ;;  %964 = vmatpush1.bf16.msra.mxu1 %v3475_v1 }
 0x1dc   :  { %965 = vmatprep.subr.bf16.mxu1 %v3478_v4 }
 0x1de   :  { %925 = vmatpush1.bf16.msra.mxu0 %v3482_v55 }
 0x1df   :  { %926 = vmatprep.subr.bf16.mxu0 %v3484_v51  ;;  %966 = vmatpush1.bf16.msra.mxu1 %v3488_v48 }
 0x1e0   :  { %967 = vmatprep.subr.bf16.mxu1 %v3492_v50 }
 0x1e2   :  { %927 = vmatpush1.bf16.msra.mxu0 %v3495_v44 }
 0x1e3   :  { %928 = vmatprep.subr.bf16.mxu0 %v3497_v57  ;;  %968 = vmatpush1.bf16.msra.mxu1 %v3501_v47 }
 0x1e4   :  { %969 = vmatprep.subr.bf16.mxu1 %v3504_v63 }
 0x1e6   :  { %929 = vmatpush1.bf16.msra.mxu0 %v3507_v52 }
 0x1e7   :  { %930 = vmatprep.subr.bf16.mxu0 %v3509_v53  ;;  %970 = vmatpush1.bf16.msra.mxu1 %v3513_v17 }
 0x1e8   :  { %971 = vmatprep.subr.bf16.mxu1 %v3516_v9 }
 0x1ea   :  { %931 = vmatpush1.bf16.msra.mxu0 %v3519_v59 }
 0x1eb   :  { %932 = vmatprep.subr.bf16.mxu0 %v3521_v5  ;;  %972 = vmatpush1.bf16.msra.mxu1 %v3525_v43 }
 0x1ec   :  { %973 = vmatprep.subr.bf16.mxu1 %v3528_v56 }
 0x1ee   :  { %933 = vmatpush1.bf16.msra.mxu0 %v3531_v49 }
 0x1ef   :  { %934 = vmatprep.subr.bf16.mxu0 %v3533_v35  ;;  %974 = vmatpush1.bf16.msra.mxu1 %v3537_v34 }
 0x1f0   :  { %975 = vmatprep.subr.bf16.mxu1 %v3540_v27 }
 0x1f2   :  { %935 = vmatpush1.bf16.msra.mxu0 %v3543_v31 }
 0x1f3   :  { %936 = vmatprep.subr.bf16.mxu0 %v3545_v26  ;;  %976 = vmatpush1.bf16.msra.mxu1 %v3551_v61 }
 0x1f4   :  { %977 = vmatprep.subr.bf16.mxu1 %v3554_v0 }
 0x1f6   :  { %937 = vmatpush1.bf16.msra.mxu0 %v3557_v8  ;;  %v5634_v8 = vld [vmem:[#allocation26_spill] sm:$0xff] }
 0x1f7   :  { %938 = vmatprep.subr.bf16.mxu0 %v3559_v42  ;;  %978 = vmatpush1.bf16.msra.mxu1 %v3564_v38  ;;  %v5626_v42 = vld [vmem:[#allocation77_spill] sm:$0xff] }
 0x1f8   :  { %979 = vmatprep.subr.bf16.mxu1 %v3567_v39  ;;  %v5627_v39 = vld [vmem:[#allocation78_spill] sm:$0xff] }
 0x1fa   :  { %939 = vmatpush1.bf16.msra.mxu0 %v3570_v23  ;;  %v5628_v23 = vld [vmem:[#allocation79_spill] sm:$0xff] }
 0x1fb   :  { %940 = vmatprep.subr.bf16.mxu0 %v3572_v22  ;;  %980 = vmatpush1.bf16.msra.mxu1 %v5621_v12  ;;  %v5629_v22 = vld [vmem:[#allocation80_spill] sm:$0xff]  ;;  %v5630_v12 = vld [vmem:[#allocation81_spill] sm:$0xff] }
 0x1fc   :  { %981 = vmatprep.subr.bf16.mxu1 %v5622_v13  ;;  %v5631_v13 = vld [vmem:[#allocation82_spill] sm:$0xff] }
 0x1fe   :  { %941 = vmatpush1.bf16.msra.mxu0 %v5623_v54  ;;  %v5632_v54 = vld [vmem:[#allocation83_spill] sm:$0xff] }
 0x1ff   :  { %942 = vmatprep.subr.bf16.mxu0 %v5624_v20  ;;  %982 = vmatpush1.bf16.msra.mxu1 %v3588_v10  ;;  %v5633_v10 = vld [vmem:[#allocation24_spill] sm:$0xff] }
 0x200   :  { %983 = vmatprep.subr.bf16.mxu1 %v3591_v46 }
 0x202   :  { %943 = vmatpush1.bf16.msra.mxu0 %v5625_v30 }
 0x203   :  { %944 = vmatprep.subr.bf16.mxu0 %v5626_v42  ;;  %984 = vmatpush1.bf16.msra.mxu1 %v5627_v39 }
 0x204   :  { %985 = vmatprep.subr.bf16.mxu1 %v5628_v23 }
 0x206   :  { %945 = vmatpush1.bf16.msra.mxu0 %v5629_v22 }
 0x207   :  { %996 = vmatprep.subr.bf16.mxu0 %v5630_v12  ;;  %986 = vmatpush1.bf16.msra.mxu1 %v5631_v13  ;;  %v5635_v13 = vld [vmem:[#allocation27_spill] sm:$0xff] }
 0x208   :  { %1037 = vmatprep.subr.bf16.mxu1 %v5632_v54 }
 0x25c   :  { %v725_v20 = vpop.f32.mrb[16].mxu0  ;;  %v766_v42 = vpop.f32.mrb[16].mxu1 }
 0x25d   :  { %v887_v38 = vadd.f32 %v725_v20, %v5633_v10  ;;  %v727_v46 = vpop.f32.mrb[17].mxu0  ;;  %v768_v61 = vpop.f32.mrb[17].mxu1 }
 0x25e   :  { %v888_v30 = vadd.f32 %v727_v46, %v5634_v8  ;;  %v729_v0 = vpop.f32.mrb[18].mxu0  ;;  %v770_v31 = vpop.f32.mrb[18].mxu1  ;;  %v890_v54 = vadd.f32 %v768_v61, %v5635_v13 }
 0x25f   :  { %v891_v26 = vsub.f32 0.0, %v887_v38  ;;  %v730_v39 = vpop.f32.mrb[19].mxu0  ;;  %v771_v27 = vpop.f32.mrb[19].mxu1 }
 0x260   :  { %v892_v23 = vsub.f32 0.0, %v888_v30  ;;  %v5636_v39 = vld [vmem:[#allocation61_spill] sm:$0xff] }
 0x261   :  { %v894_v22 = vmul.f32 1.442695, %v891_v26 }
 0x262   :  { %v896_v12 = vmul.f32 1.442695, %v892_v23  ;;  %v5637_v23 = vld [vmem:[#allocation23_spill] sm:$0xff] }
 0x263   :  { %2606 = vpow2.f32 %v894_v22  ;;  %v635_v22 = vld [vmem:[%s5160_s3] sm:$0xf]  ;;  %v5638_v27 = vsub.s32 0, %v5637_v23  ;;  %v5642_v30 = vsub.s32 2, %v5637_v23 }
 0x264   :  { %2608 = vpow2.f32 %v896_v12 }
 0x265   :  { %2610 = vtanh.f32 %v890_v54  ;;  %v3891_v61 = vrot.slane %v635_v22, %v5638_v27 }
 0x267   :  { %5639 = vst [vmem:[#allocation24_spill] sm:$0xff] %v3891_v61 }
 0x26d   :  { %v2607_v35 = vpop.eup %2606 }
 0x26e   :  { %v2609_v34 = vpop.eup %2608  ;;  %v900_v10 = vadd.f32 1.0, %v2607_v35 }
 0x26f   :  { %v901_v20 = vadd.f32 1.0, %v2609_v34  ;;  %v2611_v46 = vpop.eup %2610  ;;  %v5640_v34 = vsub.s32 1, %v5637_v23 }
 0x270   :  { %2612 = vrcp.f32 %v900_v10  ;;  %v3900_v10 = vrot.slane %v635_v22, %v5642_v30 }
 0x271   :  { %2614 = vrcp.f32 %v901_v20  ;;  %v3895_v35 = vrot.slane %v635_v22, %v5640_v34 }
 0x272   :  { %5643 = vst [vmem:[#allocation27_spill] sm:$0xff] %v3900_v10 }
 0x273   :  { %5641 = vst [vmem:[#allocation26_spill] sm:$0xff] %v3895_v35 }
 0x27a   :  { %v2613_v0 = vpop.eup %2612 }
 0x27b   :  { %v2615_v8 = vpop.eup %2614  ;;  %v908_v38 = vmul.f32 %v2613_v0, %v2611_v46 }
 0x27c   :  { %v907_v31 = vmul.f32 %v2615_v8, %v5636_v39  ;;  %v5644_v8 = vld [vmem:[#allocation25_spill] sm:$0xff] }
 0x27e   :  { %v3884_v26 = vadd.f32 %v908_v38, %v907_v31  ;;  %v889_v38 = vadd.f32 %v766_v42, %v5644_v8 }
 0x280   :  { %v893_v43 = vsub.f32 0.0, %v889_v38 }
 0x29c   :  { %v807_v12 = vpop.f32.mrb[20].mxu0 }
 0x29d   :  { %v855_v13 = vadd.f32 %v807_v12, %v3891_v61  ;;  %v809_v54 = vpop.f32.mrb[21].mxu0  ;;  %v848_v0 = vpop.f32.mrb[20].mxu1 }
 0x29e   :  { %v856_v20 = vadd.f32 %v809_v54, %v3895_v35  ;;  %v811_v46 = vpop.f32.mrb[22].mxu0  ;;  %v850_v27 = vpop.f32.mrb[21].mxu1  ;;  %v857_v5 = vadd.f32 %v848_v0, %v3900_v10  ;;  %v5645_v54 = vsub.s32 3, %v5637_v23  ;;  %v898_v35 = vmul.f32 1.442695, %v893_v43 }
 0x29f   :  { %v859_v39 = vsub.f32 0.0, %v855_v13  ;;  %v812_v31 = vpop.f32.mrb[23].mxu0  ;;  %v852_v34 = vpop.f32.mrb[22].mxu1 }
 0x2a0   :  { %v860_v49 = vsub.f32 0.0, %v856_v20  ;;  %v853_v12 = vpop.f32.mrb[23].mxu1  ;;  %v861_v30 = vsub.f32 0.0, %v857_v5  ;;  %v3907_v46 = vrot.slane %v635_v22, %v5645_v54 }
 0x2a1   :  { %v862_v56 = vmul.f32 1.442695, %v859_v39 }
 0x2a2   :  { %v864_v61 = vmul.f32 1.442695, %v860_v49  ;;  %5646 = vst [vmem:[#allocation61_spill] sm:$0xff] %v3907_v46  ;;  %v866_v42 = vmul.f32 1.442695, %v861_v30  ;;  %v858_v13 = vadd.f32 %v850_v27, %v3907_v46 }
 0x2a3   :  { %2616 = vpow2.f32 %v862_v56 }
 0x2a4   :  { %2618 = vpow2.f32 %v864_v61 }
 0x2a5   :  { %2620 = vpow2.f32 %v898_v35 }
 0x2a6   :  { %2622 = vpow2.f32 %v866_v42 }
 0x2a7   :  { %2624 = vtanh.f32 %v858_v13 }
 0x2ad   :  { %v2617_v20 = vpop.eup %2616 }
 0x2ae   :  { %v2619_v8 = vpop.eup %2618  ;;  %v868_v39 = vadd.f32 1.0, %v2617_v20 }
 0x2af   :  { %v869_v0 = vadd.f32 1.0, %v2619_v8  ;;  %v2621_v49 = vpop.eup %2620  ;;  %v5647_v8 = vld [vmem:[#allocation84_spill] sm:$0xff] }
 0x2b0   :  { %2626 = vrcp.f32 %v868_v39  ;;  %v2623_v56 = vpop.eup %2622  ;;  %v902_v61 = vadd.f32 1.0, %v2621_v49  ;;  %v5648_v39 = vld [vmem:[#allocation86_spill] sm:$0xff]  ;;  %v5650_v49 = vld [vmem:[#allocation87_spill] sm:$0xff] }
 0x2b1   :  { %2628 = vrcp.f32 %v869_v0  ;;  %v2625_v5 = vpop.eup %2624  ;;  %v870_v22 = vadd.f32 1.0, %v2623_v56  ;;  %v5649_v0 = vld [vmem:[#allocation85_spill] sm:$0xff]  ;;  %v5651_v56 = vld [vmem:[#allocation88_spill] sm:$0xff] }
 0x2b2   :  { %2630 = vrcp.f32 %v902_v61  ;;  %v5653_v61 = vld [vmem:[#allocation89_spill] sm:$0xff] }
 0x2b3   :  { %2632 = vtanh.f32 %v3884_v26 }
 0x2b4   :  { %2634 = vrcp.f32 %v870_v22  ;;  %v5655_v22 = vld [vmem:[#allocation92_spill] sm:$0xff] }
 0x2ba   :  { %v2627_v23 = vpop.eup %2626 }
 0x2bb   :  { %v2629_v38 = vpop.eup %2628  ;;  %v876_v43 = vmul.f32 %v2627_v23, %v2625_v5  ;;  %v5652_v5 = vld [vmem:[#allocation90_spill] sm:$0xff]  ;;  %v5654_v23 = vld [vmem:[#allocation91_spill] sm:$0xff] }
 0x2bc   :  { %v875_v31 = vmul.f32 0.0, %v2629_v38  ;;  %v2631_v27 = vpop.eup %2630  ;;  %v5656_v38 = vld [vmem:[#allocation94_spill] sm:$0xff] }
 0x2bd   :  { %v2633_v34 = vpop.eup %2632 }
 0x2be   :  { %v3911_v35 = vadd.f32 %v876_v43, %v875_v31  ;;  %v2635_v12 = vpop.eup %2634  ;;  %v911_v54 = vmul.f32 %v2633_v34, %v2631_v27  ;;  %v5657_v43 = vld [vmem:[#allocation93_spill] sm:$0xff]  ;;  %v5658_v31 = vld [vmem:[#allocation95_spill] sm:$0xff]  ;;  %v5659_v27 = vld [vmem:[#allocation96_spill] sm:$0xff] }
 0x2bf   :  { %v5660_v34 = vld [vmem:[#allocation98_spill] sm:$0xff] }
 0x2c0   :  { %2636 = vtanh.f32 %v3911_v35  ;;  %v3914_v20 = vpack.c.bf16 %v911_v54, %v911_v54  ;;  %v5663_v54 = vld [vmem:[#allocation100_spill] sm:$0xff] }
 0x2ca   :  { %v2637_v30 = vpop.eup %2636 }
 0x2cb   :  { %v879_v42 = vmul.f32 %v2637_v30, %v2635_v12  ;;  %v5661_v12 = vld [vmem:[#allocation97_spill] sm:$0xff]  ;;  %v5662_v30 = vld [vmem:[#allocation99_spill] sm:$0xff] }
 0x2cd   :  { %v913_v13 = vpack.c.bf16 %v879_v42, %v879_v42  ;;  %v5664_v42 = vld [vmem:[#allocation102_spill] sm:$0xff] }
 0x2cf   :  { %946 = vmatprep.mubr.bf16.mxu0 %v913_v13  ;;  %987 = vmatprep.mubr.bf16.mxu1 %v913_v13 }
 0x2d0   :  { %947 = vmatmul.mubr.bf16.vlgmr.msra.gmra.mrb[24].mxu0 %v3914_v20  ;;  %988 = vmatmul.mubr.bf16.vlgmr.msra.gmra.mrb[24].mxu1 %v3914_v20 }
 0x2d1   :  { %997 = vmatpush1.bf16.msra.mxu0 %v5647_v8  ;;  %1038 = vmatpush1.bf16.msra.mxu1 %v5648_v39 }
 0x2d2   :  { %1028 = vmatprep.mubr.bf16.mxu0 %v913_v13  ;;  %1069 = vmatprep.mubr.bf16.mxu1 %v913_v13  ;;  %v5665_v13 = vld [vmem:[#allocation101_spill] sm:$0xff] }
 0x2d3   :  { %998 = vmatprep.subr.bf16.mxu0 %v5649_v0  ;;  %1039 = vmatprep.subr.bf16.mxu1 %v5650_v49  ;;  %v5666_v0 = vld [vmem:[#allocation103_spill] sm:$0xff] }
 0x2d5   :  { %999 = vmatpush1.bf16.msra.mxu0 %v5651_v56  ;;  %1040 = vmatpush1.bf16.msra.mxu1 %v5652_v5 }
 0x2d6   :  { %1000 = vmatprep.subr.bf16.mxu0 %v5653_v61  ;;  %1041 = vmatprep.subr.bf16.mxu1 %v5654_v23 }
 0x2d9   :  { %1001 = vmatpush1.bf16.msra.mxu0 %v5655_v22  ;;  %1042 = vmatpush1.bf16.msra.mxu1 %v5656_v38  ;;  %v5667_v38 = vld [vmem:[#allocation104_spill] sm:$0xff] }
 0x2da   :  { %1002 = vmatprep.subr.bf16.mxu0 %v5657_v43  ;;  %1043 = vmatprep.subr.bf16.mxu1 %v5658_v31  ;;  %v5668_v43 = vld [vmem:[#allocation106_spill] sm:$0xff]  ;;  %v5669_v31 = vld [vmem:[#allocation105_spill] sm:$0xff] }
 0x2dd   :  { %1003 = vmatpush1.bf16.msra.mxu0 %v5659_v27  ;;  %1044 = vmatpush1.bf16.msra.mxu1 %v5660_v34  ;;  %v5670_v27 = vld [vmem:[#allocation107_spill] sm:$0xff]  ;;  %v5671_v34 = vld [vmem:[#allocation108_spill] sm:$0xff] }
 0x2de   :  { %1004 = vmatprep.subr.bf16.mxu0 %v5661_v12  ;;  %1045 = vmatprep.subr.bf16.mxu1 %v5662_v30  ;;  %v5672_v12 = vld [vmem:[#allocation110_spill] sm:$0xff]  ;;  %v5673_v30 = vld [vmem:[#allocation109_spill] sm:$0xff] }
 0x2e1   :  { %1005 = vmatpush1.bf16.msra.mxu0 %v5663_v54  ;;  %1046 = vmatpush1.bf16.msra.mxu1 %v5664_v42  ;;  %v5674_v54 = vld [vmem:[#allocation111_spill] sm:$0xff]  ;;  %v5675_v42 = vld [vmem:[#allocation112_spill] sm:$0xff] }
 0x2e2   :  { %1006 = vmatprep.subr.bf16.mxu0 %v5665_v13  ;;  %1047 = vmatprep.subr.bf16.mxu1 %v5666_v0  ;;  %v5676_v13 = vld [vmem:[#allocation114_spill] sm:$0xff]  ;;  %v5677_v0 = vld [vmem:[#allocation113_spill] sm:$0xff] }
 0x2e5   :  { %1007 = vmatpush1.bf16.msra.mxu0 %v5667_v38  ;;  %1048 = vmatpush1.bf16.msra.mxu1 %v5668_v43  ;;  %v5678_v38 = vld [vmem:[#allocation115_spill] sm:$0xff]  ;;  %v5679_v43 = vld [vmem:[#allocation116_spill] sm:$0xff] }
 0x2e6   :  { %1008 = vmatprep.subr.bf16.mxu0 %v5669_v31  ;;  %1049 = vmatprep.subr.bf16.mxu1 %v5670_v27  ;;  %v5680_v31 = vld [vmem:[#allocation118_spill] sm:$0xff]  ;;  %v5681_v27 = vld [vmem:[#allocation117_spill] sm:$0xff] }
 0x2e9   :  { %1009 = vmatpush1.bf16.msra.mxu0 %v5671_v34  ;;  %1050 = vmatpush1.bf16.msra.mxu1 %v5672_v12  ;;  %v5682_v34 = vld [vmem:[#allocation119_spill] sm:$0xff]  ;;  %v5683_v12 = vld [vmem:[#allocation120_spill] sm:$0xff] }
 0x2ea   :  { %1010 = vmatprep.subr.bf16.mxu0 %v5673_v30  ;;  %1051 = vmatprep.subr.bf16.mxu1 %v5674_v54  ;;  %v5684_v30 = vld [vmem:[#allocation122_spill] sm:$0xff]  ;;  %v5685_v54 = vld [vmem:[#allocation121_spill] sm:$0xff] }
 0x2ed   :  { %1011 = vmatpush1.bf16.msra.mxu0 %v5675_v42  ;;  %1052 = vmatpush1.bf16.msra.mxu1 %v5676_v13  ;;  %v5686_v42 = vld [vmem:[#allocation123_spill] sm:$0xff]  ;;  %v5687_v13 = vld [vmem:[#allocation124_spill] sm:$0xff] }
 0x2ee   :  { %1012 = vmatprep.subr.bf16.mxu0 %v5677_v0  ;;  %1053 = vmatprep.subr.bf16.mxu1 %v5678_v38  ;;  %v5688_v0 = vld [vmem:[#allocation126_spill] sm:$0xff]  ;;  %v5689_v38 = vld [vmem:[#allocation125_spill] sm:$0xff] }
 0x2f1   :  { %1013 = vmatpush1.bf16.msra.mxu0 %v5679_v43  ;;  %1054 = vmatpush1.bf16.msra.mxu1 %v5680_v31  ;;  %v5690_v43 = vld [vmem:[#allocation127_spill] sm:$0xff]  ;;  %v5691_v31 = vld [vmem:[#allocation128_spill] sm:$0xff] }
 0x2f2   :  { %1014 = vmatprep.subr.bf16.mxu0 %v5681_v27  ;;  %1055 = vmatprep.subr.bf16.mxu1 %v5682_v34  ;;  %v5692_v27 = vld [vmem:[#allocation130_spill] sm:$0xff]  ;;  %v5693_v34 = vld [vmem:[#allocation129_spill] sm:$0xff] }
 0x2f5   :  { %1015 = vmatpush1.bf16.msra.mxu0 %v5683_v12  ;;  %1056 = vmatpush1.bf16.msra.mxu1 %v5684_v30  ;;  %v5694_v12 = vld [vmem:[#allocation131_spill] sm:$0xff]  ;;  %v5695_v30 = vld [vmem:[#allocation132_spill] sm:$0xff] }
 0x2f6   :  { %1016 = vmatprep.subr.bf16.mxu0 %v5685_v54  ;;  %1057 = vmatprep.subr.bf16.mxu1 %v5686_v42  ;;  %v5696_v42 = vld [vmem:[#allocation133_spill] sm:$0xff] }
 0x2f9   :  { %1017 = vmatpush1.bf16.msra.mxu0 %v5687_v13  ;;  %1058 = vmatpush1.bf16.msra.mxu1 %v5688_v0  ;;  %v5697_v13 = vld [vmem:[#allocation134_spill] sm:$0xff]  ;;  %v5698_v0 = vld [vmem:[#allocation135_spill] sm:$0xff] }
 0x2fa   :  { %1018 = vmatprep.subr.bf16.mxu0 %v5689_v38  ;;  %1059 = vmatprep.subr.bf16.mxu1 %v5690_v43  ;;  %v5699_v43 = vld [vmem:[#allocation136_spill] sm:$0xff] }
 0x2fd   :  { %1019 = vmatpush1.bf16.msra.mxu0 %v5691_v31  ;;  %1060 = vmatpush1.bf16.msra.mxu1 %v5692_v27 }
 0x2fe   :  { %1020 = vmatprep.subr.bf16.mxu0 %v5693_v34  ;;  %1061 = vmatprep.subr.bf16.mxu1 %v5694_v12 }
 0x301   :  { %1021 = vmatpush1.bf16.msra.mxu0 %v5695_v30  ;;  %1062 = vmatpush1.bf16.msra.mxu1 %v3774_v6 }
 0x302   :  { %1022 = vmatprep.subr.bf16.mxu0 %v5696_v42  ;;  %1063 = vmatprep.subr.bf16.mxu1 %v5697_v13  ;;  %v3980_v13 = vld [vmem:[#allocation3 + $0x8] sm:$0xff] }
 0x305   :  { %1023 = vmatpush1.bf16.msra.mxu0 %v5698_v0  ;;  %1064 = vmatpush1.bf16.msra.mxu1 %v3786_v2 }
 0x306   :  { %1024 = vmatprep.subr.bf16.mxu0 %v5699_v43  ;;  %1065 = vmatprep.subr.bf16.mxu1 %v3789_v19 }
 0x309   :  { %1025 = vmatpush1.bf16.msra.mxu0 %v3792_v7  ;;  %1066 = vmatpush1.bf16.msra.mxu1 %v3798_v3  ;;  %v3986_v7 = vld [vmem:[#allocation3] sm:$0xff] }
 0x30a   :  { %1026 = vmatprep.subr.bf16.mxu0 %v3794_v14  ;;  %1067 = vmatprep.subr.bf16.mxu1 %v3801_v11  ;;  %v3990_v11 = vld [vmem:[#allocation3 + $0x48] sm:$0xff] }
 0x30d   :  { %1027 = vmatpush1.bf16.msra.mxu0 %v3804_v15  ;;  %1068 = vmatpush1.bf16.msra.mxu1 %v3808_v18  ;;  %v3994_v18 = vld [vmem:[#allocation3 + $0x40] sm:$0xff] }
 0x30e   :  { %1137 = vmatprep.subr.bf16.mxu0 %v3980_v13  ;;  %1178 = vmatprep.subr.bf16.mxu1 %v3425_v16  ;;  %v5704_v16 = vld [vmem:[#allocation57_spill] sm:$0xff] }
 0x310   :  { %1029 = vmatmul.mubr.bf16.vlgmr.msra.gmra.mrb[28].mxu0 %v3914_v20  ;;  %1070 = vmatmul.mubr.bf16.vlgmr.msra.gmra.mrb[28].mxu1 %v3914_v20 }
 0x311   :  { %1138 = vmatpush1.bf16.msra.mxu0 %v3986_v7  ;;  %1179 = vmatpush1.bf16.msra.mxu1 %v3431_v58  ;;  %v5705_v58 = vld [vmem:[#allocation56_spill] sm:$0xff] }
 0x312   :  { %1139 = vmatprep.subr.bf16.mxu0 %v3990_v11  ;;  %1180 = vmatprep.subr.bf16.mxu1 %v3436_v21  ;;  %v5707_v21 = vld [vmem:[#allocation59_spill] sm:$0xff] }
 0x315   :  { %1140 = vmatpush1.bf16.msra.mxu0 %v3994_v18  ;;  %1181 = vmatpush1.bf16.msra.mxu1 %v3439_v24  ;;  %v5708_v24 = vld [vmem:[#allocation62_spill] sm:$0xff] }
 0x316   :  { %1141 = vmatprep.subr.bf16.mxu0 %v3433_v62  ;;  %1182 = vmatprep.subr.bf16.mxu1 %v3442_v25  ;;  %v5706_v62 = vld [vmem:[#allocation58_spill] sm:$0xff]  ;;  %v5710_v25 = vld [vmem:[#allocation63_spill] sm:$0xff] }
 0x319   :  { %1142 = vmatpush1.bf16.msra.mxu0 %v3445_v28  ;;  %1183 = vmatpush1.bf16.msra.mxu1 %v3451_v32  ;;  %v5711_v28 = vld [vmem:[#allocation64_spill] sm:$0xff]  ;;  %v5713_v32 = vld [vmem:[#allocation65_spill] sm:$0xff] }
 0x31a   :  { %1143 = vmatprep.subr.bf16.mxu0 %v3447_v29  ;;  %1184 = vmatprep.subr.bf16.mxu1 %v3454_v33  ;;  %v5712_v29 = vld [vmem:[#allocation66_spill] sm:$0xff]  ;;  %v5714_v33 = vld [vmem:[#allocation67_spill] sm:$0xff] }
 0x31d   :  { %1144 = vmatpush1.bf16.msra.mxu0 %v3457_v36  ;;  %1185 = vmatpush1.bf16.msra.mxu1 %v3463_v40  ;;  %v5715_v36 = vld [vmem:[#allocation68_spill] sm:$0xff]  ;;  %v5717_v40 = vld [vmem:[#allocation69_spill] sm:$0xff] }
 0x31e   :  { %1145 = vmatprep.subr.bf16.mxu0 %v3459_v37  ;;  %1186 = vmatprep.subr.bf16.mxu1 %v3466_v41  ;;  %v5716_v37 = vld [vmem:[#allocation70_spill] sm:$0xff]  ;;  %v5718_v41 = vld [vmem:[#allocation71_spill] sm:$0xff] }
 0x321   :  { %1146 = vmatpush1.bf16.msra.mxu0 %v3469_v45  ;;  %1187 = vmatpush1.bf16.msra.mxu1 %v3475_v1  ;;  %v5719_v45 = vld [vmem:[#allocation72_spill] sm:$0xff]  ;;  %v5721_v1 = vld [vmem:[#allocation73_spill] sm:$0xff] }
 0x322   :  { %1147 = vmatprep.subr.bf16.mxu0 %v3471_v60  ;;  %1188 = vmatprep.subr.bf16.mxu1 %v3478_v4  ;;  %v5720_v60 = vld [vmem:[#allocation74_spill] sm:$0xff]  ;;  %v5722_v4 = vld [vmem:[#allocation75_spill] sm:$0xff] }
 0x325   :  { %1148 = vmatpush1.bf16.msra.mxu0 %v3482_v55  ;;  %1189 = vmatpush1.bf16.msra.mxu1 %v3488_v48  ;;  %v5700_v48 = vld [vmem:[#allocation53_spill] sm:$0xff]  ;;  %v5723_v55 = vld [vmem:[#allocation76_spill] sm:$0xff] }
 0x326   :  { %1149 = vmatprep.subr.bf16.mxu0 %v3484_v51  ;;  %1190 = vmatprep.subr.bf16.mxu1 %v3492_v50  ;;  %v5701_v50 = vld [vmem:[#allocation52_spill] sm:$0xff]  ;;  %v5702_v51 = vld [vmem:[#allocation54_spill] sm:$0xff] }
 0x329   :  { %1150 = vmatpush1.bf16.msra.mxu0 %v3495_v44  ;;  %1191 = vmatpush1.bf16.msra.mxu1 %v3501_v47  ;;  %v5703_v47 = vld [vmem:[#allocation55_spill] sm:$0xff]  ;;  %v5724_v44 = vld [vmem:[#allocation78_spill] sm:$0xff] }
 0x32a   :  { %1151 = vmatprep.subr.bf16.mxu0 %v3497_v57  ;;  %1192 = vmatprep.subr.bf16.mxu1 %v3504_v63  ;;  %v5725_v57 = vld [vmem:[#allocation77_spill] sm:$0xff]  ;;  %v5726_v63 = vld [vmem:[#allocation79_spill] sm:$0xff] }
 0x32d   :  { %1152 = vmatpush1.bf16.msra.mxu0 %v3507_v52  ;;  %1193 = vmatpush1.bf16.msra.mxu1 %v3513_v17  ;;  %v5727_v52 = vld [vmem:[#allocation80_spill] sm:$0xff]  ;;  %v5729_v17 = vld [vmem:[#allocation81_spill] sm:$0xff] }
 0x32e   :  { %1153 = vmatprep.subr.bf16.mxu0 %v3509_v53  ;;  %1194 = vmatprep.subr.bf16.mxu1 %v3516_v9  ;;  %v5709_v9 = vld [vmem:[#allocation60_spill] sm:$0xff]  ;;  %v5728_v53 = vld [vmem:[#allocation82_spill] sm:$0xff] }
 0x331   :  { %1154 = vmatpush1.bf16.msra.mxu0 %v3519_v59  ;;  %1195 = vmatpush1.bf16.msra.mxu1 %v5700_v48  ;;  %v5730_v59 = vld [vmem:[#allocation83_spill] sm:$0xff] }
 0x332   :  { %1155 = vmatprep.subr.bf16.mxu0 %v5701_v50  ;;  %1196 = vmatprep.subr.bf16.mxu1 %v5702_v51  ;;  %v5731_v50 = vld [vmem:[#allocation28_spill] sm:$0xff] }
 0x335   :  { %1156 = vmatpush1.bf16.msra.mxu0 %v5703_v47  ;;  %1197 = vmatpush1.bf16.msra.mxu1 %v5704_v16 }
 0x336   :  { %1157 = vmatprep.subr.bf16.mxu0 %v5705_v58  ;;  %1198 = vmatprep.subr.bf16.mxu1 %v5706_v62  ;;  %v5732_v58 = vld [vmem:[#allocation30_spill] sm:$0xff] }
 0x339   :  { %1158 = vmatpush1.bf16.msra.mxu0 %v5707_v21  ;;  %1199 = vmatpush1.bf16.msra.mxu1 %v5708_v24 }
 0x33a   :  { %1159 = vmatprep.subr.bf16.mxu0 %v5709_v9  ;;  %1200 = vmatprep.subr.bf16.mxu1 %v5710_v25 }
 0x33d   :  { %1160 = vmatpush1.bf16.msra.mxu0 %v5711_v28  ;;  %1201 = vmatpush1.bf16.msra.mxu1 %v5712_v29 }
 0x33e   :  { %1161 = vmatprep.subr.bf16.mxu0 %v5713_v32  ;;  %1202 = vmatprep.subr.bf16.mxu1 %v5714_v33 }
 0x341   :  { %1162 = vmatpush1.bf16.msra.mxu0 %v5715_v36  ;;  %1203 = vmatpush1.bf16.msra.mxu1 %v5716_v37  ;;  %v5733_v36 = vld [vmem:[#allocation31_spill] sm:$0xff] }
 0x342   :  { %1163 = vmatprep.subr.bf16.mxu0 %v5717_v40  ;;  %1204 = vmatprep.subr.bf16.mxu1 %v5718_v41 }
 0x345   :  { %1164 = vmatpush1.bf16.msra.mxu0 %v5719_v45  ;;  %1205 = vmatpush1.bf16.msra.mxu1 %v5720_v60 }
 0x346   :  { %1165 = vmatprep.subr.bf16.mxu0 %v5721_v1  ;;  %1206 = vmatprep.subr.bf16.mxu1 %v5722_v4 }
 0x349   :  { %1166 = vmatpush1.bf16.msra.mxu0 %v5723_v55  ;;  %1207 = vmatpush1.bf16.msra.mxu1 %v5724_v44 }
 0x34a   :  { %1167 = vmatprep.subr.bf16.mxu0 %v5725_v57  ;;  %1208 = vmatprep.subr.bf16.mxu1 %v5726_v63 }
 0x34d   :  { %1168 = vmatpush1.bf16.msra.mxu0 %v5727_v52  ;;  %1209 = vmatpush1.bf16.msra.mxu1 %v5728_v53 }
 0x34e   :  { %1219 = vmatprep.subr.bf16.mxu0 %v5729_v17  ;;  %1260 = vmatprep.subr.bf16.mxu1 %v5730_v59  ;;  %v5734_v17 = vld [vmem:[#allocation24_spill] sm:$0xff] }
 0x3a3   :  { %v948_v20 = vpop.f32.mrb[24].mxu0  ;;  %v989_v48 = vpop.f32.mrb[24].mxu1 }
 0x3a4   :  { %v1110_v51 = vadd.f32 %v948_v20, %v5731_v50  ;;  %v950_v47 = vpop.f32.mrb[25].mxu0  ;;  %v991_v16 = vpop.f32.mrb[25].mxu1 }
 0x3a5   :  { %v1111_v62 = vadd.f32 %v950_v47, %v5732_v58  ;;  %v952_v21 = vpop.f32.mrb[26].mxu0  ;;  %v993_v24 = vpop.f32.mrb[26].mxu1  ;;  %v1113_v37 = vadd.f32 %v991_v16, %v5733_v36 }
 0x3a6   :  { %v1114_v9 = vsub.f32 0.0, %v1110_v51  ;;  %v953_v25 = vpop.f32.mrb[27].mxu0  ;;  %v994_v28 = vpop.f32.mrb[27].mxu1  ;;  %v5735_v51 = vld [vmem:[#allocation26_spill] sm:$0xff] }
 0x3a7   :  { %v1115_v29 = vsub.f32 0.0, %v1111_v62  ;;  %v5736_v25 = vld [vmem:[#allocation29_spill] sm:$0xff] }
 0x3a8   :  { %v1117_v32 = vmul.f32 1.442695, %v1114_v9  ;;  %v1112_v28 = vadd.f32 %v989_v48, %v5736_v25 }
 0x3a9   :  { %v1119_v33 = vmul.f32 1.442695, %v1115_v29 }
 0x3aa   :  { %2638 = vpow2.f32 %v1117_v32 }
 0x3ab   :  { %2640 = vpow2.f32 %v1119_v33  ;;  %v1116_v33 = vsub.f32 0.0, %v1112_v28 }
 0x3ac   :  { %2642 = vtanh.f32 %v1113_v37 }
 0x3ad   :  { %v1121_v37 = vmul.f32 1.442695, %v1116_v33  ;;  %v5748_v33 = vld [vmem:[#allocation104_spill] sm:$0xff] }
 0x3b4   :  { %v2639_v40 = vpop.eup %2638 }
 0x3b5   :  { %v1123_v41 = vadd.f32 1.0, %v2639_v40  ;;  %v2641_v45 = vpop.eup %2640 }
 0x3b6   :  { %v1124_v60 = vadd.f32 1.0, %v2641_v45  ;;  %v2643_v1 = vpop.eup %2642 }
 0x3b7   :  { %2644 = vrcp.f32 %v1123_v41 }
 0x3b8   :  { %2646 = vrcp.f32 %v1124_v60 }
 0x3c1   :  { %v2645_v4 = vpop.eup %2644 }
 0x3c2   :  { %v1131_v55 = vmul.f32 %v2645_v4, %v2643_v1  ;;  %v2647_v44 = vpop.eup %2646 }
 0x3c3   :  { %v1130_v57 = vmul.f32 %v2647_v44, %v3884_v26 }
 0x3c5   :  { %v4060_v63 = vadd.f32 %v1131_v55, %v1130_v57 }
 0x3e3   :  { %v1030_v52 = vpop.f32.mrb[28].mxu0  ;;  %v1071_v53 = vpop.f32.mrb[28].mxu1 }
 0x3e4   :  { %v1078_v59 = vadd.f32 %v1030_v52, %v5734_v17  ;;  %v1032_v20 = vpop.f32.mrb[29].mxu0  ;;  %v1073_v50 = vpop.f32.mrb[29].mxu1  ;;  %v1080_v32 = vadd.f32 %v1071_v53, %v3900_v10 }
 0x3e5   :  { %v1079_v47 = vadd.f32 %v1032_v20, %v5735_v51  ;;  %v1034_v16 = vpop.f32.mrb[30].mxu0  ;;  %v1075_v58 = vpop.f32.mrb[30].mxu1  ;;  %v1081_v40 = vadd.f32 %v1073_v50, %v3907_v46 }
 0x3e6   :  { %v1082_v62 = vsub.f32 0.0, %v1078_v59  ;;  %v1035_v21 = vpop.f32.mrb[31].mxu0  ;;  %v1076_v24 = vpop.f32.mrb[31].mxu1  ;;  %v1084_v36 = vsub.f32 0.0, %v1080_v32  ;;  %v5741_v32 = vld [vmem:[#allocation98_spill] sm:$0xff] }
 0x3e7   :  { %v1083_v9 = vsub.f32 0.0, %v1079_v47 }
 0x3e8   :  { %v1085_v29 = vmul.f32 1.442695, %v1082_v62  ;;  %v1089_v41 = vmul.f32 1.442695, %v1084_v36  ;;  %v5749_v36 = vld [vmem:[#allocation106_spill] sm:$0xff] }
 0x3e9   :  { %v1087_v26 = vmul.f32 1.442695, %v1083_v9 }
 0x3ea   :  { %2648 = vpow2.f32 %v1085_v29  ;;  %v5739_v29 = vld [vmem:[#allocation95_spill] sm:$0xff] }
 0x3eb   :  { %2650 = vpow2.f32 %v1087_v26  ;;  %v5740_v26 = vld [vmem:[#allocation96_spill] sm:$0xff] }
 0x3ec   :  { %2652 = vpow2.f32 %v1121_v37  ;;  %v5750_v37 = vld [vmem:[#allocation105_spill] sm:$0xff] }
 0x3ed   :  { %2654 = vtanh.f32 %v1081_v40  ;;  %v5751_v40 = vld [vmem:[#allocation107_spill] sm:$0xff] }
 0x3ee   :  { %2656 = vpow2.f32 %v1089_v41  ;;  %v5752_v41 = vld [vmem:[#allocation108_spill] sm:$0xff] }
 0x3f4   :  { %v2649_v45 = vpop.eup %2648 }
 0x3f5   :  { %v1091_v60 = vadd.f32 1.0, %v2649_v45  ;;  %v2651_v1 = vpop.eup %2650  ;;  %v5753_v45 = vld [vmem:[#allocation110_spill] sm:$0xff] }
 0x3f6   :  { %v1092_v48 = vadd.f32 1.0, %v2651_v1  ;;  %v2653_v4 = vpop.eup %2652  ;;  %v5755_v1 = vld [vmem:[#allocation111_spill] sm:$0xff] }
 0x3f7   :  { %2658 = vrcp.f32 %v1091_v60  ;;  %v2655_v55 = vpop.eup %2654  ;;  %v1125_v52 = vadd.f32 1.0, %v2653_v4  ;;  %v5754_v60 = vld [vmem:[#allocation109_spill] sm:$0xff]  ;;  %v5757_v4 = vld [vmem:[#allocation114_spill] sm:$0xff] }
 0x3f8   :  { %2660 = vrcp.f32 %v1092_v48  ;;  %v2657_v44 = vpop.eup %2656  ;;  %v5756_v48 = vld [vmem:[#allocation112_spill] sm:$0xff] }
 0x3f9   :  { %v1093_v20 = vadd.f32 1.0, %v2657_v44  ;;  %2662 = vtanh.f32 %v4060_v63  ;;  %v5759_v44 = vld [vmem:[#allocation115_spill] sm:$0xff] }
 0x3fa   :  { %2664 = vrcp.f32 %v1125_v52  ;;  %v5761_v52 = vld [vmem:[#allocation118_spill] sm:$0xff] }
 0x3fb   :  { %2666 = vrcp.f32 %v1093_v20  ;;  %v5764_v20 = vld [vmem:[#allocation120_spill] sm:$0xff] }
 0x401   :  { %v2659_v57 = vpop.eup %2658 }
 0x402   :  { %v1099_v53 = vmul.f32 %v2659_v57, %v2655_v55  ;;  %v2661_v59 = vpop.eup %2660  ;;  %v5758_v55 = vld [vmem:[#allocation113_spill] sm:$0xff]  ;;  %v5760_v57 = vld [vmem:[#allocation116_spill] sm:$0xff] }
 0x403   :  { %v1098_v50 = vmul.f32 %v2661_v59, %v3911_v35  ;;  %v2663_v16 = vpop.eup %2662  ;;  %v4078_v35 = vld [vmem:[#allocation3 + $0x68] sm:$0xff] }
 0x404   :  { %v2665_v58 = vpop.eup %2664  ;;  %v5763_v59 = vld [vmem:[#allocation119_spill] sm:$0xff] }
 0x405   :  { %v4069_v47 = vadd.f32 %v1099_v53, %v1098_v50  ;;  %v2667_v62 = vpop.eup %2666  ;;  %v1134_v24 = vmul.f32 %v2665_v58, %v2663_v16  ;;  %v5762_v53 = vld [vmem:[#allocation117_spill] sm:$0xff]  ;;  %v5765_v50 = vld [vmem:[#allocation122_spill] sm:$0xff]  ;;  %v5766_v16 = vld [vmem:[#allocation123_spill] sm:$0xff] }
 0x406   :  { %v5767_v58 = vld [vmem:[#allocation124_spill] sm:$0xff] }
 0x407   :  { %2668 = vtanh.f32 %v4069_v47  ;;  %v4072_v28 = vpack.c.bf16 %v1134_v24, %v1134_v24  ;;  %v4182_v24 = vld [vmem:[#allocation3 + $0x108] sm:$0xff] }
 0x411   :  { %v2669_v21 = vpop.eup %2668 }
 0x412   :  { %v1102_v9 = vmul.f32 %v2669_v21, %v2667_v62  ;;  %v5768_v62 = vld [vmem:[#allocation126_spill] sm:$0xff]  ;;  %v5769_v21 = vld [vmem:[#allocation127_spill] sm:$0xff] }
 0x414   :  { %v1136_v25 = vpack.c.bf16 %v1102_v9, %v1102_v9  ;;  %v4185_v9 = vld [vmem:[#allocation3 + $0x118] sm:$0xff] }
 0x416   :  { %1169 = vmatprep.mubr.bf16.mxu0 %v1136_v25  ;;  %1210 = vmatprep.mubr.bf16.mxu1 %v1136_v25 }
 0x417   :  { %1170 = vmatmul.mubr.bf16.vlgmr.msra.gmra.mrb[32].mxu0 %v4072_v28  ;;  %1211 = vmatmul.mubr.bf16.vlgmr.msra.gmra.mrb[32].mxu1 %v4072_v28 }
 0x418   :  { %1220 = vmatpush1.bf16.msra.mxu0 %v5647_v8  ;;  %1261 = vmatpush1.bf16.msra.mxu1 %v5648_v39  ;;  %v5737_v8 = vld [vmem:[#allocation94_spill] sm:$0xff]  ;;  %v5738_v39 = vld [vmem:[#allocation93_spill] sm:$0xff] }
 0x419   :  { %1251 = vmatprep.mubr.bf16.mxu0 %v1136_v25  ;;  %1292 = vmatprep.mubr.bf16.mxu1 %v1136_v25  ;;  %v4188_v25 = vld [vmem:[#allocation3 + $0x100] sm:$0xff] }
 0x41a   :  { %1221 = vmatprep.subr.bf16.mxu0 %v4078_v35  ;;  %1262 = vmatprep.subr.bf16.mxu1 %v5650_v49  ;;  %v5742_v49 = vld [vmem:[#allocation97_spill] sm:$0xff] }
 0x41c   :  { %1222 = vmatpush1.bf16.msra.mxu0 %v5651_v56  ;;  %1263 = vmatpush1.bf16.msra.mxu1 %v5652_v5  ;;  %v5743_v56 = vld [vmem:[#allocation99_spill] sm:$0xff]  ;;  %v5744_v5 = vld [vmem:[#allocation100_spill] sm:$0xff] }
 0x41d   :  { %1223 = vmatprep.subr.bf16.mxu0 %v5653_v61  ;;  %1264 = vmatprep.subr.bf16.mxu1 %v5654_v23  ;;  %v5745_v61 = vld [vmem:[#allocation102_spill] sm:$0xff]  ;;  %v5746_v23 = vld [vmem:[#allocation101_spill] sm:$0xff] }
 0x420   :  { %1224 = vmatpush1.bf16.msra.mxu0 %v5655_v22  ;;  %1265 = vmatpush1.bf16.msra.mxu1 %v5737_v8  ;;  %v5747_v22 = vld [vmem:[#allocation103_spill] sm:$0xff] }
 0x421   :  { %1225 = vmatprep.subr.bf16.mxu0 %v5738_v39  ;;  %1266 = vmatprep.subr.bf16.mxu1 %v5739_v29  ;;  %v4194_v8 = vld [vmem:[#allocation3 + $0x148] sm:$0xff]  ;;  %v4197_v39 = vld [vmem:[#allocation3 + $0x158] sm:$0xff]  ;;  %v4200_v29 = vld [vmem:[#allocation3 + $0x140] sm:$0xff] }
 0x422   :  { %5774 = vst [vmem:[#allocation23_spill] sm:$0xff] %v4194_v8  ;;  %5775 = vst [vmem:[#allocation25_spill] sm:$0xff] %v4197_v39 }
 0x423   :  { %5776 = vst [vmem:[#allocation84_spill] sm:$0xff] %v4200_v29 }
 0x424   :  { %1226 = vmatpush1.bf16.msra.mxu0 %v5740_v26  ;;  %1267 = vmatpush1.bf16.msra.mxu1 %v5741_v32  ;;  %v4203_v26 = vld [vmem:[#allocation3 + $0x150] sm:$0xff]  ;;  %v4206_v32 = vld [vmem:[#allocation3 + $0x188] sm:$0xff] }
 0x425   :  { %1227 = vmatprep.subr.bf16.mxu0 %v5742_v49  ;;  %1268 = vmatprep.subr.bf16.mxu1 %v5743_v56  ;;  %5777 = vst [vmem:[#allocation86_spill] sm:$0xff] %v4203_v26  ;;  %5778 = vst [vmem:[#allocation85_spill] sm:$0xff] %v4206_v32  ;;  %v4209_v49 = vld [vmem:[#allocation3 + $0x198] sm:$0xff]  ;;  %v4212_v56 = vld [vmem:[#allocation3 + $0x180] sm:$0xff] }
 0x426   :  { %5779 = vst [vmem:[#allocation87_spill] sm:$0xff] %v4209_v49  ;;  %5780 = vst [vmem:[#allocation88_spill] sm:$0xff] %v4212_v56 }
 0x428   :  { %1228 = vmatpush1.bf16.msra.mxu0 %v5744_v5  ;;  %1269 = vmatpush1.bf16.msra.mxu1 %v5745_v61  ;;  %v4215_v5 = vld [vmem:[#allocation3 + $0x190] sm:$0xff]  ;;  %v4218_v61 = vld [vmem:[#allocation3 + $0x1c8] sm:$0xff] }
 0x429   :  { %1229 = vmatprep.subr.bf16.mxu0 %v5746_v23  ;;  %1270 = vmatprep.subr.bf16.mxu1 %v5747_v22  ;;  %5781 = vst [vmem:[#allocation90_spill] sm:$0xff] %v4215_v5  ;;  %5782 = vst [vmem:[#allocation89_spill] sm:$0xff] %v4218_v61  ;;  %v4221_v23 = vld [vmem:[#allocation3 + $0x1d8] sm:$0xff]  ;;  %v4224_v22 = vld [vmem:[#allocation3 + $0x1c0] sm:$0xff] }
 0x42a   :  { %5783 = vst [vmem:[#allocation91_spill] sm:$0xff] %v4221_v23  ;;  %5784 = vst [vmem:[#allocation92_spill] sm:$0xff] %v4224_v22 }
 0x42c   :  { %1230 = vmatpush1.bf16.msra.mxu0 %v5748_v33  ;;  %1271 = vmatpush1.bf16.msra.mxu1 %v5749_v36  ;;  %v4227_v33 = vld [vmem:[#allocation3 + $0x1d0] sm:$0xff]  ;;  %v4230_v36 = vld [vmem:[#allocation3 + $0x208] sm:$0xff] }
 0x42d   :  { %1231 = vmatprep.subr.bf16.mxu0 %v5750_v37  ;;  %1272 = vmatprep.subr.bf16.mxu1 %v5751_v40  ;;  %5785 = vst [vmem:[#allocation121_spill] sm:$0xff] %v4227_v33  ;;  %5786 = vst [vmem:[#allocation125_spill] sm:$0xff] %v4230_v36  ;;  %v4233_v37 = vld [vmem:[#allocation3 + $0x218] sm:$0xff]  ;;  %v4236_v40 = vld [vmem:[#allocation3 + $0x200] sm:$0xff] }
 0x42e   :  { %5787 = vst [vmem:[#allocation128_spill] sm:$0xff] %v4233_v37  ;;  %5788 = vst [vmem:[#allocation130_spill] sm:$0xff] %v4236_v40 }
 0x430   :  { %1232 = vmatpush1.bf16.msra.mxu0 %v5752_v41  ;;  %1273 = vmatpush1.bf16.msra.mxu1 %v5753_v45  ;;  %v4239_v41 = vld [vmem:[#allocation3 + $0x210] sm:$0xff]  ;;  %v4242_v45 = vld [vmem:[#allocation3 + $0x248] sm:$0xff] }
 0x431   :  { %1233 = vmatprep.subr.bf16.mxu0 %v5754_v60  ;;  %1274 = vmatprep.subr.bf16.mxu1 %v5755_v1  ;;  %5789 = vst [vmem:[#allocation129_spill] sm:$0xff] %v4239_v41  ;;  %5790 = vst [vmem:[#allocation131_spill] sm:$0xff] %v4242_v45  ;;  %v4245_v60 = vld [vmem:[#allocation3 + $0x258] sm:$0xff]  ;;  %v4248_v1 = vld [vmem:[#allocation3 + $0x240] sm:$0xff] }
 0x432   :  { %5791 = vst [vmem:[#allocation132_spill] sm:$0xff] %v4245_v60  ;;  %5792 = vst [vmem:[#allocation133_spill] sm:$0xff] %v4248_v1 }
 0x434   :  { %1234 = vmatpush1.bf16.msra.mxu0 %v5756_v48  ;;  %1275 = vmatpush1.bf16.msra.mxu1 %v5757_v4  ;;  %v4251_v48 = vld [vmem:[#allocation3 + $0x250] sm:$0xff]  ;;  %v4254_v4 = vld [vmem:[#allocation3 + $0x288] sm:$0xff] }
 0x435   :  { %1235 = vmatprep.subr.bf16.mxu0 %v5758_v55  ;;  %1276 = vmatprep.subr.bf16.mxu1 %v5759_v44  ;;  %5793 = vst [vmem:[#allocation135_spill] sm:$0xff] %v4251_v48  ;;  %5794 = vst [vmem:[#allocation136_spill] sm:$0xff] %v4254_v4  ;;  %v4257_v55 = vld [vmem:[#allocation3 + $0x298] sm:$0xff]  ;;  %v4260_v44 = vld [vmem:[#allocation3 + $0x280] sm:$0xff] }
 0x436   :  { %5795 = vst [vmem:[#allocation53_spill] sm:$0xff] %v4257_v55  ;;  %5796 = vst [vmem:[#allocation52_spill] sm:$0xff] %v4260_v44 }
 0x438   :  { %1236 = vmatpush1.bf16.msra.mxu0 %v5760_v57  ;;  %1277 = vmatpush1.bf16.msra.mxu1 %v5761_v52  ;;  %v4263_v57 = vld [vmem:[#allocation3 + $0x290] sm:$0xff]  ;;  %v4266_v52 = vld [vmem:[#allocation3 + $0x2c8] sm:$0xff] }
 0x439   :  { %1237 = vmatprep.subr.bf16.mxu0 %v5762_v53  ;;  %1278 = vmatprep.subr.bf16.mxu1 %v5763_v59  ;;  %5797 = vst [vmem:[#allocation54_spill] sm:$0xff] %v4263_v57  ;;  %5798 = vst [vmem:[#allocation55_spill] sm:$0xff] %v4266_v52  ;;  %v4269_v53 = vld [vmem:[#allocation3 + $0x2d8] sm:$0xff]  ;;  %v4272_v59 = vld [vmem:[#allocation3 + $0x2c0] sm:$0xff] }
 0x43a   :  { %5799 = vst [vmem:[#allocation57_spill] sm:$0xff] %v4269_v53  ;;  %5800 = vst [vmem:[#allocation56_spill] sm:$0xff] %v4272_v59 }
 0x43c   :  { %1238 = vmatpush1.bf16.msra.mxu0 %v5764_v20  ;;  %1279 = vmatpush1.bf16.msra.mxu1 %v5765_v50  ;;  %v4275_v20 = vld [vmem:[#allocation3 + $0x2d0] sm:$0xff]  ;;  %v4278_v50 = vld [vmem:[#allocation3 + $0x308] sm:$0xff] }
 0x43d   :  { %1239 = vmatprep.subr.bf16.mxu0 %v5685_v54  ;;  %1280 = vmatprep.subr.bf16.mxu1 %v5766_v16  ;;  %v5770_v54 = vld [vmem:[#allocation134_spill] sm:$0xff]  ;;  %5801 = vst [vmem:[#allocation58_spill] sm:$0xff] %v4275_v20  ;;  %5802 = vst [vmem:[#allocation59_spill] sm:$0xff] %v4278_v50  ;;  %v4281_v16 = vld [vmem:[#allocation3 + $0x318] sm:$0xff] }
 0x43e   :  { %5803 = vst [vmem:[#allocation62_spill] sm:$0xff] %v4281_v16 }
 0x440   :  { %1240 = vmatpush1.bf16.msra.mxu0 %v5767_v58  ;;  %1281 = vmatpush1.bf16.msra.mxu1 %v5768_v62  ;;  %v4284_v58 = vld [vmem:[#allocation3 + $0x300] sm:$0xff]  ;;  %v4287_v62 = vld [vmem:[#allocation3 + $0x310] sm:$0xff] }
 0x441   :  { %1241 = vmatprep.subr.bf16.mxu0 %v5689_v38  ;;  %1282 = vmatprep.subr.bf16.mxu1 %v5769_v21  ;;  %v5771_v38 = vld [vmem:[#allocation137_spill] sm:$0xff]  ;;  %5804 = vst [vmem:[#allocation60_spill] sm:$0xff] %v4284_v58  ;;  %5805 = vst [vmem:[#allocation63_spill] sm:$0xff] %v4287_v62  ;;  %v4290_v21 = vld [vmem:[#allocation3 + $0x348] sm:$0xff] }
 0x442   :  { %5806 = vst [vmem:[#allocation64_spill] sm:$0xff] %v4290_v21 }
 0x444   :  { %1242 = vmatpush1.bf16.msra.mxu0 %v5691_v31  ;;  %1283 = vmatpush1.bf16.msra.mxu1 %v5692_v27  ;;  %v5772_v31 = vld [vmem:[#allocation138_spill] sm:$0xff]  ;;  %v4141_v27 = vld [vmem:[#allocation3 + $0x18] sm:$0xff] }
 0x445   :  { %1243 = vmatprep.subr.bf16.mxu0 %v5693_v34  ;;  %1284 = vmatprep.subr.bf16.mxu1 %v5694_v12  ;;  %v4167_v34 = vld [vmem:[#allocation3 + $0x90] sm:$0xff]  ;;  %v4170_v12 = vld [vmem:[#allocation3 + $0xc8] sm:$0xff] }
 0x448   :  { %1244 = vmatpush1.bf16.msra.mxu0 %v5695_v30  ;;  %1285 = vmatpush1.bf16.msra.mxu1 %v3774_v6  ;;  %v5773_v6 = vld [vmem:[#allocation139_spill] sm:$0xff]  ;;  %v4173_v30 = vld [vmem:[#allocation3 + $0xd8] sm:$0xff] }
 0x449   :  { %1245 = vmatprep.subr.bf16.mxu0 %v5696_v42  ;;  %1286 = vmatprep.subr.bf16.mxu1 %v5770_v54  ;;  %v4176_v42 = vld [vmem:[#allocation3 + $0xc0] sm:$0xff]  ;;  %v4293_v54 = vld [vmem:[#allocation3 + $0x358] sm:$0xff] }
 0x44a   :  { %5807 = vst [vmem:[#allocation66_spill] sm:$0xff] %v4293_v54 }
 0x44c   :  { %1246 = vmatpush1.bf16.msra.mxu0 %v5698_v0  ;;  %1287 = vmatpush1.bf16.msra.mxu1 %v3786_v2  ;;  %v4147_v2 = vld [vmem:[#allocation3 + $0x10] sm:$0xff] }
 0x44d   :  { %1247 = vmatprep.subr.bf16.mxu0 %v5699_v43  ;;  %1288 = vmatprep.subr.bf16.mxu1 %v3789_v19  ;;  %v4155_v19 = vld [vmem:[#allocation3 + $0x50] sm:$0xff]  ;;  %v4164_v43 = vld [vmem:[#allocation3 + $0x80] sm:$0xff] }
 0x44e   :  { %v4179_v0 = vld [vmem:[#allocation3 + $0xd0] sm:$0xff] }
 0x450   :  { %1248 = vmatpush1.bf16.msra.mxu0 %v5771_v38  ;;  %1289 = vmatpush1.bf16.msra.mxu1 %v3798_v3  ;;  %v4158_v3 = vld [vmem:[#allocation3 + $0x88] sm:$0xff]  ;;  %v4296_v38 = vld [vmem:[#allocation3 + $0x340] sm:$0xff] }
 0x451   :  { %1249 = vmatprep.subr.bf16.mxu0 %v3794_v14  ;;  %1290 = vmatprep.subr.bf16.mxu1 %v5772_v31  ;;  %v4161_v14 = vld [vmem:[#allocation3 + $0x98] sm:$0xff]  ;;  %5808 = vst [vmem:[#allocation65_spill] sm:$0xff] %v4296_v38  ;;  %v4299_v31 = vld [vmem:[#allocation3 + $0x350] sm:$0xff] }
 0x452   :  { %5809 = vst [vmem:[#allocation67_spill] sm:$0xff] %v4299_v31 }
 0x454   :  { %1250 = vmatpush1.bf16.msra.mxu0 %v3804_v15  ;;  %1291 = vmatpush1.bf16.msra.mxu1 %v5773_v6  ;;  %v4151_v15 = vld [vmem:[#allocation3 + $0x58] sm:$0xff]  ;;  %v4302_v6 = vld [vmem:[#allocation3 + $0x388] sm:$0xff] }
 0x455   :  { %1360 = vmatprep.subr.bf16.mxu0 %v3980_v13  ;;  %1401 = vmatprep.subr.bf16.mxu1 %v4141_v27  ;;  %5810 = vst [vmem:[#allocation68_spill] sm:$0xff] %v4302_v6 }
 0x457   :  { %1252 = vmatmul.mubr.bf16.vlgmr.msra.gmra.mrb[36].mxu0 %v4072_v28  ;;  %1293 = vmatmul.mubr.bf16.vlgmr.msra.gmra.mrb[36].mxu1 %v4072_v28  ;;  %v4191_v28 = vld [vmem:[#allocation3 + $0x110] sm:$0xff] }
 0x458   :  { %1361 = vmatpush1.bf16.msra.mxu0 %v3986_v7  ;;  %1402 = vmatpush1.bf16.msra.mxu1 %v4147_v2 }
 0x459   :  { %1362 = vmatprep.subr.bf16.mxu0 %v3990_v11  ;;  %1403 = vmatprep.subr.bf16.mxu1 %v4151_v15 }
 0x45c   :  { %1363 = vmatpush1.bf16.msra.mxu0 %v3994_v18  ;;  %1404 = vmatpush1.bf16.msra.mxu1 %v4155_v19 }
 0x45d   :  { %1364 = vmatprep.subr.bf16.mxu0 %v4158_v3  ;;  %1405 = vmatprep.subr.bf16.mxu1 %v4161_v14 }
 0x460   :  { %1365 = vmatpush1.bf16.msra.mxu0 %v4164_v43  ;;  %1406 = vmatpush1.bf16.msra.mxu1 %v4167_v34 }
 0x461   :  { %1366 = vmatprep.subr.bf16.mxu0 %v4170_v12  ;;  %1407 = vmatprep.subr.bf16.mxu1 %v4173_v30 }
 0x464   :  { %1367 = vmatpush1.bf16.msra.mxu0 %v4176_v42  ;;  %1408 = vmatpush1.bf16.msra.mxu1 %v4179_v0 }
 0x465   :  { %1368 = vmatprep.subr.bf16.mxu0 %v4182_v24  ;;  %1409 = vmatprep.subr.bf16.mxu1 %v4185_v9 }
 0x468   :  { %1369 = vmatpush1.bf16.msra.mxu0 %v4188_v25  ;;  %1410 = vmatpush1.bf16.msra.mxu1 %v4191_v28 }
 0x469   :  { %1370 = vmatprep.subr.bf16.mxu0 %v4194_v8  ;;  %1411 = vmatprep.subr.bf16.mxu1 %v4197_v39 }
 0x46c   :  { %1371 = vmatpush1.bf16.msra.mxu0 %v4200_v29  ;;  %1412 = vmatpush1.bf16.msra.mxu1 %v4203_v26 }
 0x46d   :  { %1372 = vmatprep.subr.bf16.mxu0 %v4206_v32  ;;  %1413 = vmatprep.subr.bf16.mxu1 %v4209_v49 }
 0x470   :  { %1373 = vmatpush1.bf16.msra.mxu0 %v4212_v56  ;;  %1414 = vmatpush1.bf16.msra.mxu1 %v4215_v5 }
 0x471   :  { %1374 = vmatprep.subr.bf16.mxu0 %v4218_v61  ;;  %1415 = vmatprep.subr.bf16.mxu1 %v4221_v23 }
 0x474   :  { %1375 = vmatpush1.bf16.msra.mxu0 %v4224_v22  ;;  %1416 = vmatpush1.bf16.msra.mxu1 %v4227_v33 }
 0x475   :  { %1376 = vmatprep.subr.bf16.mxu0 %v4230_v36  ;;  %1417 = vmatprep.subr.bf16.mxu1 %v4233_v37 }
 0x478   :  { %1377 = vmatpush1.bf16.msra.mxu0 %v4236_v40  ;;  %1418 = vmatpush1.bf16.msra.mxu1 %v4239_v41 }
 0x479   :  { %1378 = vmatprep.subr.bf16.mxu0 %v4242_v45  ;;  %1419 = vmatprep.subr.bf16.mxu1 %v4245_v60 }
 0x47c   :  { %1379 = vmatpush1.bf16.msra.mxu0 %v4248_v1  ;;  %1420 = vmatpush1.bf16.msra.mxu1 %v4251_v48  ;;  %v5822_v48 = vld [vmem:[#allocation35_spill] sm:$0xff] }
 0x47d   :  { %1380 = vmatprep.subr.bf16.mxu0 %v4254_v4  ;;  %1421 = vmatprep.subr.bf16.mxu1 %v4257_v55 }
 0x480   :  { %1381 = vmatpush1.bf16.msra.mxu0 %v4260_v44  ;;  %1422 = vmatpush1.bf16.msra.mxu1 %v4263_v57 }
 0x481   :  { %1382 = vmatprep.subr.bf16.mxu0 %v4266_v52  ;;  %1423 = vmatprep.subr.bf16.mxu1 %v4269_v53 }
 0x484   :  { %1383 = vmatpush1.bf16.msra.mxu0 %v4272_v59  ;;  %1424 = vmatpush1.bf16.msra.mxu1 %v4275_v20  ;;  %v5821_v59 = vld [vmem:[#allocation34_spill] sm:$0xff] }
 0x485   :  { %1384 = vmatprep.subr.bf16.mxu0 %v4278_v50  ;;  %1425 = vmatprep.subr.bf16.mxu1 %v4281_v16  ;;  %v5820_v16 = vld [vmem:[#allocation32_spill] sm:$0xff] }
 0x488   :  { %1385 = vmatpush1.bf16.msra.mxu0 %v4284_v58  ;;  %1426 = vmatpush1.bf16.msra.mxu1 %v4287_v62  ;;  %v4305_v62 = vld [vmem:[#allocation3 + $0x398] sm:$0xff] }
 0x489   :  { %1386 = vmatprep.subr.bf16.mxu0 %v4290_v21  ;;  %1427 = vmatprep.subr.bf16.mxu1 %v4293_v54  ;;  %5811 = vst [vmem:[#allocation70_spill] sm:$0xff] %v4305_v62  ;;  %v4308_v21 = vld [vmem:[#allocation3 + $0x380] sm:$0xff]  ;;  %v4311_v54 = vld [vmem:[#allocation3 + $0x390] sm:$0xff] }
 0x48a   :  { %5812 = vst [vmem:[#allocation69_spill] sm:$0xff] %v4308_v21  ;;  %5813 = vst [vmem:[#allocation71_spill] sm:$0xff] %v4311_v54 }
 0x48c   :  { %1387 = vmatpush1.bf16.msra.mxu0 %v4296_v38  ;;  %1428 = vmatpush1.bf16.msra.mxu1 %v4299_v31  ;;  %v4314_v38 = vld [vmem:[#allocation3 + $0x3c8] sm:$0xff]  ;;  %v4317_v31 = vld [vmem:[#allocation3 + $0x3d8] sm:$0xff] }
 0x48d   :  { %1388 = vmatprep.subr.bf16.mxu0 %v4302_v6  ;;  %1429 = vmatprep.subr.bf16.mxu1 %v4305_v62  ;;  %5814 = vst [vmem:[#allocation72_spill] sm:$0xff] %v4314_v38  ;;  %5815 = vst [vmem:[#allocation74_spill] sm:$0xff] %v4317_v31  ;;  %v4320_v6 = vld [vmem:[#allocation3 + $0x3c0] sm:$0xff]  ;;  %v4323_v62 = vld [vmem:[#allocation3 + $0x3d0] sm:$0xff] }
 0x48e   :  { %5816 = vst [vmem:[#allocation73_spill] sm:$0xff] %v4320_v6  ;;  %5817 = vst [vmem:[#allocation75_spill] sm:$0xff] %v4323_v62 }
 0x490   :  { %1389 = vmatpush1.bf16.msra.mxu0 %v4308_v21  ;;  %1430 = vmatpush1.bf16.msra.mxu1 %v4311_v54  ;;  %v4326_v21 = vld [vmem:[#allocation3 + $0x28] sm:$0xff]  ;;  %v4329_v54 = vld [vmem:[#allocation3 + $0x38] sm:$0xff] }
 0x491   :  { %1390 = vmatprep.subr.bf16.mxu0 %v4314_v38  ;;  %1431 = vmatprep.subr.bf16.mxu1 %v4317_v31  ;;  %5818 = vst [vmem:[#allocation76_spill] sm:$0xff] %v4326_v21  ;;  %5819 = vst [vmem:[#allocation78_spill] sm:$0xff] %v4329_v54 }
 0x494   :  { %1391 = vmatpush1.bf16.msra.mxu0 %v4320_v6  ;;  %1432 = vmatpush1.bf16.msra.mxu1 %v4323_v62 }
 0x495   :  { %1442 = vmatprep.subr.bf16.mxu0 %v4326_v21  ;;  %1483 = vmatprep.subr.bf16.mxu1 %v4329_v54 }
 0x4ea   :  { %v1171_v38 = vpop.f32.mrb[32].mxu0  ;;  %v1212_v58 = vpop.f32.mrb[32].mxu1 }
 0x4eb   :  { %v1333_v31 = vadd.f32 %v1171_v38, %v5820_v16  ;;  %v1173_v50 = vpop.f32.mrb[33].mxu0  ;;  %v1214_v20 = vpop.f32.mrb[33].mxu1 }
 0x4ec   :  { %v1334_v6 = vadd.f32 %v1173_v50, %v5821_v59  ;;  %v1175_v53 = vpop.f32.mrb[34].mxu0  ;;  %v1216_v52 = vpop.f32.mrb[34].mxu1  ;;  %v1336_v54 = vadd.f32 %v1214_v20, %v5822_v48 }
 0x4ed   :  { %v1337_v57 = vsub.f32 0.0, %v1333_v31  ;;  %v1176_v62 = vpop.f32.mrb[35].mxu0  ;;  %v1217_v44 = vpop.f32.mrb[35].mxu1 }
 0x4ee   :  { %v1338_v55 = vsub.f32 0.0, %v1334_v6  ;;  %v5823_v6 = vld [vmem:[#allocation33_spill] sm:$0xff] }
 0x4ef   :  { %v1340_v4 = vmul.f32 1.442695, %v1337_v57 }
 0x4f0   :  { %v1342_v21 = vmul.f32 1.442695, %v1338_v55 }
 0x4f1   :  { %2670 = vpow2.f32 %v1340_v4 }
 0x4f2   :  { %2672 = vpow2.f32 %v1342_v21 }
 0x4f3   :  { %2674 = vtanh.f32 %v1336_v54 }
 0x4fb   :  { %v2671_v1 = vpop.eup %2670 }
 0x4fc   :  { %v1346_v60 = vadd.f32 1.0, %v2671_v1  ;;  %v2673_v45 = vpop.eup %2672 }
 0x4fd   :  { %v1347_v16 = vadd.f32 1.0, %v2673_v45  ;;  %v2675_v59 = vpop.eup %2674 }
 0x4fe   :  { %2676 = vrcp.f32 %v1346_v60 }
 0x4ff   :  { %2678 = vrcp.f32 %v1347_v16  ;;  %v1335_v16 = vadd.f32 %v1212_v58, %v5823_v6 }
 0x508   :  { %v2677_v53 = vpop.eup %2676 }
 0x509   :  { %v1354_v52 = vmul.f32 %v2677_v53, %v2675_v59  ;;  %v2679_v50 = vpop.eup %2678 }
 0x50a   :  { %v1353_v44 = vmul.f32 %v2679_v50, %v4060_v63 }
 0x50c   :  { %v4336_v62 = vadd.f32 %v1354_v52, %v1353_v44  ;;  %v1339_v52 = vsub.f32 0.0, %v1335_v16 }
 0x50e   :  { %v1344_v44 = vmul.f32 1.442695, %v1339_v52 }
 0x52a   :  { %v1253_v55 = vpop.f32.mrb[36].mxu0  ;;  %v1294_v4 = vpop.f32.mrb[36].mxu1 }
 0x52b   :  { %v1301_v57 = vadd.f32 %v1253_v55, %v5734_v17  ;;  %v1255_v48 = vpop.f32.mrb[37].mxu0  ;;  %v1296_v20 = vpop.f32.mrb[37].mxu1  ;;  %v1303_v53 = vadd.f32 %v1294_v4, %v3900_v10 }
 0x52c   :  { %v1302_v1 = vadd.f32 %v1255_v48, %v5735_v51  ;;  %v1257_v21 = vpop.f32.mrb[38].mxu0  ;;  %v1298_v60 = vpop.f32.mrb[38].mxu1  ;;  %v1304_v55 = vadd.f32 %v1296_v20, %v3907_v46 }
 0x52d   :  { %v1305_v45 = vsub.f32 0.0, %v1301_v57  ;;  %v1258_v54 = vpop.f32.mrb[39].mxu0  ;;  %v1299_v38 = vpop.f32.mrb[39].mxu1  ;;  %v1307_v50 = vsub.f32 0.0, %v1303_v53 }
 0x52e   :  { %v1306_v31 = vsub.f32 0.0, %v1302_v1 }
 0x52f   :  { %v1308_v59 = vmul.f32 1.442695, %v1305_v45  ;;  %v1312_v48 = vmul.f32 1.442695, %v1307_v50 }
 0x530   :  { %v1310_v63 = vmul.f32 1.442695, %v1306_v31 }
 0x531   :  { %2680 = vpow2.f32 %v1308_v59 }
 0x532   :  { %2682 = vpow2.f32 %v1310_v63 }
 0x533   :  { %2684 = vpow2.f32 %v1344_v44 }
 0x534   :  { %2686 = vtanh.f32 %v1304_v55 }
 0x535   :  { %2688 = vpow2.f32 %v1312_v48 }
 0x53b   :  { %v2681_v21 = vpop.eup %2680 }
 0x53c   :  { %v1314_v57 = vadd.f32 1.0, %v2681_v21  ;;  %v2683_v60 = vpop.eup %2682 }
 0x53d   :  { %v1315_v58 = vadd.f32 1.0, %v2683_v60  ;;  %v2685_v1 = vpop.eup %2684  ;;  %v4359_v60 = vld [vmem:[#allocation3 + $0x78] sm:$0xff] }
 0x53e   :  { %2690 = vrcp.f32 %v1314_v57  ;;  %v2687_v45 = vpop.eup %2686  ;;  %v1348_v38 = vadd.f32 1.0, %v2685_v1  ;;  %v4355_v57 = vld [vmem:[#allocation3 + $0x30] sm:$0xff] }
 0x53f   :  { %2692 = vrcp.f32 %v1315_v58  ;;  %v2689_v54 = vpop.eup %2688  ;;  %v4362_v58 = vld [vmem:[#allocation3 + $0x60] sm:$0xff]  ;;  %v4365_v1 = vld [vmem:[#allocation3 + $0x70] sm:$0xff] }
 0x540   :  { %v1316_v16 = vadd.f32 1.0, %v2689_v54  ;;  %2694 = vtanh.f32 %v4336_v62  ;;  %v4371_v54 = vld [vmem:[#allocation3 + $0xb8] sm:$0xff] }
 0x541   :  { %2696 = vrcp.f32 %v1348_v38  ;;  %v4377_v38 = vld [vmem:[#allocation3 + $0xb0] sm:$0xff] }
 0x542   :  { %2698 = vrcp.f32 %v1316_v16  ;;  %v4386_v16 = vld [vmem:[#allocation3 + $0xe0] sm:$0xff] }
 0x548   :  { %v2691_v4 = vpop.eup %2690 }
 0x549   :  { %v1322_v31 = vmul.f32 %v2691_v4, %v2687_v45  ;;  %v2693_v6 = vpop.eup %2692  ;;  %v4368_v45 = vld [vmem:[#allocation3 + $0xa8] sm:$0xff]  ;;  %v4374_v4 = vld [vmem:[#allocation3 + $0xa0] sm:$0xff] }
 0x54a   :  { %v1321_v20 = vmul.f32 %v2693_v6, %v4069_v47  ;;  %v2695_v63 = vpop.eup %2694  ;;  %v4352_v47 = vld [vmem:[#allocation3 + $0x20] sm:$0xff]  ;;  %v4383_v6 = vld [vmem:[#allocation3 + $0xf8] sm:$0xff] }
 0x54b   :  { %v2697_v53 = vpop.eup %2696 }
 0x54c   :  { %v4345_v59 = vadd.f32 %v1322_v31, %v1321_v20  ;;  %v2699_v52 = vpop.eup %2698  ;;  %v1357_v44 = vmul.f32 %v2697_v53, %v2695_v63  ;;  %v4380_v31 = vld [vmem:[#allocation3 + $0xe8] sm:$0xff]  ;;  %v4389_v20 = vld [vmem:[#allocation3 + $0xf0] sm:$0xff]  ;;  %v4395_v53 = vld [vmem:[#allocation3 + $0x138] sm:$0xff] }
 0x54d   :  { %v4392_v63 = vld [vmem:[#allocation3 + $0x128] sm:$0xff]  ;;  %5824 = vst [vmem:[#allocation77_spill] sm:$0xff] %v4395_v53 }
 0x54e   :  { %2700 = vtanh.f32 %v4345_v59  ;;  %v4348_v21 = vpack.c.bf16 %v1357_v44, %v1357_v44  ;;  %v4404_v44 = vld [vmem:[#allocation3 + $0x168] sm:$0xff] }
 0x54f   :  { %5827 = vst [vmem:[#allocation82_spill] sm:$0xff] %v4404_v44 }
 0x558   :  { %v2701_v50 = vpop.eup %2700 }
 0x559   :  { %v1325_v55 = vmul.f32 %v2701_v50, %v2699_v52  ;;  %v4398_v52 = vld [vmem:[#allocation3 + $0x120] sm:$0xff]  ;;  %v4401_v50 = vld [vmem:[#allocation3 + $0x130] sm:$0xff] }
 0x55a   :  { %5825 = vst [vmem:[#allocation79_spill] sm:$0xff] %v4398_v52  ;;  %5826 = vst [vmem:[#allocation80_spill] sm:$0xff] %v4401_v50 }
 0x55b   :  { %v1359_v48 = vpack.c.bf16 %v1325_v55, %v1325_v55  ;;  %v4407_v55 = vld [vmem:[#allocation3 + $0x178] sm:$0xff] }
 0x55c   :  { %5828 = vst [vmem:[#allocation81_spill] sm:$0xff] %v4407_v55 }
 0x55d   :  { %1392 = vmatprep.mubr.bf16.mxu0 %v1359_v48  ;;  %1433 = vmatprep.mubr.bf16.mxu1 %v1359_v48 }
 0x55e   :  { %1393 = vmatmul.mubr.bf16.vlgmr.msra.gmra.mrb[40].mxu0 %v4348_v21  ;;  %1434 = vmatmul.mubr.bf16.vlgmr.msra.gmra.mrb[40].mxu1 %v4348_v21 }
 0x55f   :  { %1443 = vmatpush1.bf16.msra.mxu0 %v4352_v47  ;;  %1484 = vmatpush1.bf16.msra.mxu1 %v4355_v57 }
 0x560   :  { %1474 = vmatprep.mubr.bf16.mxu0 %v1359_v48  ;;  %1515 = vmatprep.mubr.bf16.mxu1 %v1359_v48  ;;  %v4410_v48 = vld [vmem:[#allocation3 + $0x160] sm:$0xff] }
 0x561   :  { %1444 = vmatprep.subr.bf16.mxu0 %v4078_v35  ;;  %1485 = vmatprep.subr.bf16.mxu1 %v4359_v60  ;;  %5829 = vst [vmem:[#allocation83_spill] sm:$0xff] %v4410_v48 }
 0x563   :  { %1445 = vmatpush1.bf16.msra.mxu0 %v4362_v58  ;;  %1486 = vmatpush1.bf16.msra.mxu1 %v4365_v1 }
 0x564   :  { %1446 = vmatprep.subr.bf16.mxu0 %v4368_v45  ;;  %1487 = vmatprep.subr.bf16.mxu1 %v4371_v54 }
 0x567   :  { %1447 = vmatpush1.bf16.msra.mxu0 %v4374_v4  ;;  %1488 = vmatpush1.bf16.msra.mxu1 %v4377_v38 }
 0x568   :  { %1448 = vmatprep.subr.bf16.mxu0 %v4380_v31  ;;  %1489 = vmatprep.subr.bf16.mxu1 %v4383_v6 }
 0x56b   :  { %1449 = vmatpush1.bf16.msra.mxu0 %v4386_v16  ;;  %1490 = vmatpush1.bf16.msra.mxu1 %v4389_v20 }
 0x56c   :  { %1450 = vmatprep.subr.bf16.mxu0 %v4392_v63  ;;  %1491 = vmatprep.subr.bf16.mxu1 %v4395_v53  ;;  %v4413_v53 = vld [vmem:[#allocation3 + $0x170] sm:$0xff] }
 0x56d   :  { %5830 = vst [vmem:[#allocation28_spill] sm:$0xff] %v4413_v53 }
 0x56f   :  { %1451 = vmatpush1.bf16.msra.mxu0 %v4398_v52  ;;  %1492 = vmatpush1.bf16.msra.mxu1 %v4401_v50  ;;  %v4416_v52 = vld [vmem:[#allocation3 + $0x1a8] sm:$0xff]  ;;  %v4419_v50 = vld [vmem:[#allocation3 + $0x1b8] sm:$0xff] }
 0x570   :  { %1452 = vmatprep.subr.bf16.mxu0 %v4404_v44  ;;  %1493 = vmatprep.subr.bf16.mxu1 %v4407_v55  ;;  %5831 = vst [vmem:[#allocation30_spill] sm:$0xff] %v4416_v52  ;;  %5832 = vst [vmem:[#allocation31_spill] sm:$0xff] %v4419_v50  ;;  %v4422_v44 = vld [vmem:[#allocation3 + $0x1a0] sm:$0xff]  ;;  %v4425_v55 = vld [vmem:[#allocation3 + $0x1b0] sm:$0xff] }
 0x571   :  { %5833 = vst [vmem:[#allocation29_spill] sm:$0xff] %v4422_v44  ;;  %5834 = vst [vmem:[#allocation94_spill] sm:$0xff] %v4425_v55 }
 0x573   :  { %1453 = vmatpush1.bf16.msra.mxu0 %v4410_v48  ;;  %1494 = vmatpush1.bf16.msra.mxu1 %v4413_v53  ;;  %v4428_v48 = vld [vmem:[#allocation3 + $0x1e8] sm:$0xff]  ;;  %v4431_v53 = vld [vmem:[#allocation3 + $0x1f8] sm:$0xff] }
 0x574   :  { %1454 = vmatprep.subr.bf16.mxu0 %v4416_v52  ;;  %1495 = vmatprep.subr.bf16.mxu1 %v4419_v50  ;;  %5835 = vst [vmem:[#allocation93_spill] sm:$0xff] %v4428_v48  ;;  %5836 = vst [vmem:[#allocation95_spill] sm:$0xff] %v4431_v53  ;;  %v4434_v52 = vld [vmem:[#allocation3 + $0x1e0] sm:$0xff]  ;;  %v4437_v50 = vld [vmem:[#allocation3 + $0x1f0] sm:$0xff] }
 0x575   :  { %5837 = vst [vmem:[#allocation96_spill] sm:$0xff] %v4434_v52  ;;  %5838 = vst [vmem:[#allocation98_spill] sm:$0xff] %v4437_v50 }
 0x577   :  { %1455 = vmatpush1.bf16.msra.mxu0 %v4422_v44  ;;  %1496 = vmatpush1.bf16.msra.mxu1 %v4425_v55  ;;  %v4440_v44 = vld [vmem:[#allocation3 + $0x228] sm:$0xff]  ;;  %v4443_v55 = vld [vmem:[#allocation3 + $0x238] sm:$0xff] }
 0x578   :  { %1456 = vmatprep.subr.bf16.mxu0 %v4428_v48  ;;  %1497 = vmatprep.subr.bf16.mxu1 %v4431_v53  ;;  %5839 = vst [vmem:[#allocation97_spill] sm:$0xff] %v4440_v44  ;;  %5840 = vst [vmem:[#allocation99_spill] sm:$0xff] %v4443_v55  ;;  %v4446_v48 = vld [vmem:[#allocation3 + $0x220] sm:$0xff]  ;;  %v4449_v53 = vld [vmem:[#allocation3 + $0x230] sm:$0xff] }
 0x579   :  { %5841 = vst [vmem:[#allocation100_spill] sm:$0xff] %v4446_v48  ;;  %5842 = vst [vmem:[#allocation102_spill] sm:$0xff] %v4449_v53 }
 0x57b   :  { %1457 = vmatpush1.bf16.msra.mxu0 %v4434_v52  ;;  %1498 = vmatpush1.bf16.msra.mxu1 %v4437_v50  ;;  %v4452_v52 = vld [vmem:[#allocation3 + $0x268] sm:$0xff]  ;;  %v4455_v50 = vld [vmem:[#allocation3 + $0x278] sm:$0xff] }
 0x57c   :  { %1458 = vmatprep.subr.bf16.mxu0 %v4440_v44  ;;  %1499 = vmatprep.subr.bf16.mxu1 %v4443_v55  ;;  %5843 = vst [vmem:[#allocation101_spill] sm:$0xff] %v4452_v52  ;;  %5844 = vst [vmem:[#allocation103_spill] sm:$0xff] %v4455_v50  ;;  %v4458_v44 = vld [vmem:[#allocation3 + $0x260] sm:$0xff]  ;;  %v4461_v55 = vld [vmem:[#allocation3 + $0x270] sm:$0xff] }
 0x57d   :  { %5845 = vst [vmem:[#allocation104_spill] sm:$0xff] %v4458_v44  ;;  %5846 = vst [vmem:[#allocation106_spill] sm:$0xff] %v4461_v55 }
 0x57f   :  { %1459 = vmatpush1.bf16.msra.mxu0 %v4446_v48  ;;  %1500 = vmatpush1.bf16.msra.mxu1 %v4449_v53  ;;  %v4464_v48 = vld [vmem:[#allocation3 + $0x2a8] sm:$0xff]  ;;  %v4467_v53 = vld [vmem:[#allocation3 + $0x2b8] sm:$0xff] }
 0x580   :  { %1460 = vmatprep.subr.bf16.mxu0 %v4452_v52  ;;  %1501 = vmatprep.subr.bf16.mxu1 %v4455_v50  ;;  %5847 = vst [vmem:[#allocation105_spill] sm:$0xff] %v4464_v48  ;;  %5848 = vst [vmem:[#allocation107_spill] sm:$0xff] %v4467_v53  ;;  %v4470_v52 = vld [vmem:[#allocation3 + $0x2a0] sm:$0xff]  ;;  %v4473_v50 = vld [vmem:[#allocation3 + $0x2b0] sm:$0xff] }
 0x581   :  { %5849 = vst [vmem:[#allocation108_spill] sm:$0xff] %v4470_v52  ;;  %5850 = vst [vmem:[#allocation110_spill] sm:$0xff] %v4473_v50 }
 0x583   :  { %1461 = vmatpush1.bf16.msra.mxu0 %v4458_v44  ;;  %1502 = vmatpush1.bf16.msra.mxu1 %v4461_v55  ;;  %v4476_v44 = vld [vmem:[#allocation3 + $0x2e8] sm:$0xff]  ;;  %v4479_v55 = vld [vmem:[#allocation3 + $0x2f8] sm:$0xff] }
 0x584   :  { %1462 = vmatprep.subr.bf16.mxu0 %v4464_v48  ;;  %1503 = vmatprep.subr.bf16.mxu1 %v4467_v53  ;;  %5851 = vst [vmem:[#allocation109_spill] sm:$0xff] %v4476_v44  ;;  %5852 = vst [vmem:[#allocation111_spill] sm:$0xff] %v4479_v55  ;;  %v4482_v48 = vld [vmem:[#allocation3 + $0x2e0] sm:$0xff]  ;;  %v4485_v53 = vld [vmem:[#allocation3 + $0x2f0] sm:$0xff] }
 0x585   :  { %5853 = vst [vmem:[#allocation112_spill] sm:$0xff] %v4482_v48  ;;  %5854 = vst [vmem:[#allocation114_spill] sm:$0xff] %v4485_v53 }
 0x587   :  { %1463 = vmatpush1.bf16.msra.mxu0 %v4470_v52  ;;  %1504 = vmatpush1.bf16.msra.mxu1 %v4473_v50  ;;  %v4488_v52 = vld [vmem:[#allocation3 + $0x328] sm:$0xff]  ;;  %v4491_v50 = vld [vmem:[#allocation3 + $0x338] sm:$0xff] }
 0x588   :  { %1464 = vmatprep.subr.bf16.mxu0 %v4476_v44  ;;  %1505 = vmatprep.subr.bf16.mxu1 %v4479_v55  ;;  %5855 = vst [vmem:[#allocation113_spill] sm:$0xff] %v4488_v52  ;;  %5856 = vst [vmem:[#allocation115_spill] sm:$0xff] %v4491_v50  ;;  %v4494_v44 = vld [vmem:[#allocation3 + $0x320] sm:$0xff]  ;;  %v4497_v55 = vld [vmem:[#allocation3 + $0x330] sm:$0xff] }
 0x589   :  { %5857 = vst [vmem:[#allocation116_spill] sm:$0xff] %v4494_v44  ;;  %5858 = vst [vmem:[#allocation118_spill] sm:$0xff] %v4497_v55 }
 0x58b   :  { %1465 = vmatpush1.bf16.msra.mxu0 %v4482_v48  ;;  %1506 = vmatpush1.bf16.msra.mxu1 %v4485_v53  ;;  %v4500_v48 = vld [vmem:[#allocation3 + $0x368] sm:$0xff]  ;;  %v4503_v53 = vld [vmem:[#allocation3 + $0x378] sm:$0xff] }
 0x58c   :  { %1466 = vmatprep.subr.bf16.mxu0 %v4488_v52  ;;  %1507 = vmatprep.subr.bf16.mxu1 %v4491_v50  ;;  %5859 = vst [vmem:[#allocation117_spill] sm:$0xff] %v4500_v48  ;;  %5860 = vst [vmem:[#allocation119_spill] sm:$0xff] %v4503_v53  ;;  %v4506_v52 = vld [vmem:[#allocation3 + $0x360] sm:$0xff]  ;;  %v4509_v50 = vld [vmem:[#allocation3 + $0x370] sm:$0xff] }
 0x58d   :  { %5861 = vst [vmem:[#allocation120_spill] sm:$0xff] %v4506_v52  ;;  %5862 = vst [vmem:[#allocation122_spill] sm:$0xff] %v4509_v50 }
 0x58f   :  { %1467 = vmatpush1.bf16.msra.mxu0 %v4494_v44  ;;  %1508 = vmatpush1.bf16.msra.mxu1 %v4497_v55  ;;  %v4512_v44 = vld [vmem:[#allocation3 + $0x3a8] sm:$0xff]  ;;  %v4515_v55 = vld [vmem:[#allocation3 + $0x3b8] sm:$0xff] }
 0x590   :  { %1468 = vmatprep.subr.bf16.mxu0 %v4500_v48  ;;  %1509 = vmatprep.subr.bf16.mxu1 %v4503_v53  ;;  %5863 = vst [vmem:[#allocation123_spill] sm:$0xff] %v4512_v44  ;;  %5864 = vst [vmem:[#allocation124_spill] sm:$0xff] %v4515_v55  ;;  %v4518_v48 = vld [vmem:[#allocation3 + $0x3a0] sm:$0xff]  ;;  %v4521_v53 = vld [vmem:[#allocation3 + $0x3b0] sm:$0xff] }
 0x591   :  { %5865 = vst [vmem:[#allocation126_spill] sm:$0xff] %v4518_v48 }
 0x593   :  { %1469 = vmatpush1.bf16.msra.mxu0 %v4506_v52  ;;  %1510 = vmatpush1.bf16.msra.mxu1 %v4509_v50  ;;  %v4524_v52 = vld [vmem:[#allocation3 + $0x3e8] sm:$0xff]  ;;  %v4527_v50 = vld [vmem:[#allocation3 + $0x3f8] sm:$0xff] }
 0x594   :  { %1470 = vmatprep.subr.bf16.mxu0 %v4512_v44  ;;  %1511 = vmatprep.subr.bf16.mxu1 %v4515_v55  ;;  %5866 = vst [vmem:[#allocation127_spill] sm:$0xff] %v4527_v50  ;;  %v4530_v44 = vld [vmem:[#allocation3 + $0x3e0] sm:$0xff]  ;;  %v4533_v55 = vld [vmem:[#allocation3 + $0x3f0] sm:$0xff] }
 0x595   :  { %5867 = vst [vmem:[#allocation134_spill] sm:$0xff] %v4533_v55 }
 0x597   :  { %1471 = vmatpush1.bf16.msra.mxu0 %v4518_v48  ;;  %1512 = vmatpush1.bf16.msra.mxu1 %v4521_v53 }
 0x598   :  { %1472 = vmatprep.subr.bf16.mxu0 %v4524_v52  ;;  %1513 = vmatprep.subr.bf16.mxu1 %v4527_v50 }
 0x59b   :  { %1473 = vmatpush1.bf16.msra.mxu0 %v4530_v44  ;;  %1514 = vmatpush1.bf16.msra.mxu1 %v4533_v55 }
 0x59c   :  { %1583 = vmatprep.subr.bf16.mxu0 %v3980_v13  ;;  %1624 = vmatprep.subr.bf16.mxu1 %v4141_v27  ;;  %v5871_v13 = vld [vmem:[#allocation135_spill] sm:$0xff] }
 0x59e   :  { %1475 = vmatmul.mubr.bf16.vlgmr.msra.gmra.mrb[44].mxu0 %v4348_v21  ;;  %1516 = vmatmul.mubr.bf16.vlgmr.msra.gmra.mrb[44].mxu1 %v4348_v21  ;;  %v5872_v21 = vld [vmem:[#allocation136_spill] sm:$0xff] }
 0x59f   :  { %1584 = vmatpush1.bf16.msra.mxu0 %v3986_v7  ;;  %1625 = vmatpush1.bf16.msra.mxu1 %v4147_v2  ;;  %v5868_v7 = vld [vmem:[#allocation131_spill] sm:$0xff] }
 0x5a0   :  { %1585 = vmatprep.subr.bf16.mxu0 %v3990_v11  ;;  %1626 = vmatprep.subr.bf16.mxu1 %v4151_v15  ;;  %v5870_v11 = vld [vmem:[#allocation133_spill] sm:$0xff] }
 0x5a3   :  { %1586 = vmatpush1.bf16.msra.mxu0 %v3994_v18  ;;  %1627 = vmatpush1.bf16.msra.mxu1 %v4155_v19  ;;  %v5869_v18 = vld [vmem:[#allocation132_spill] sm:$0xff] }
 0x5a4   :  { %1587 = vmatprep.subr.bf16.mxu0 %v4158_v3  ;;  %1628 = vmatprep.subr.bf16.mxu1 %v4161_v14 }
 0x5a7   :  { %1588 = vmatpush1.bf16.msra.mxu0 %v4164_v43  ;;  %1629 = vmatpush1.bf16.msra.mxu1 %v4167_v34 }
 0x5a8   :  { %1589 = vmatprep.subr.bf16.mxu0 %v4170_v12  ;;  %1630 = vmatprep.subr.bf16.mxu1 %v4173_v30 }
 0x5ab   :  { %1590 = vmatpush1.bf16.msra.mxu0 %v4176_v42  ;;  %1631 = vmatpush1.bf16.msra.mxu1 %v4179_v0 }
 0x5ac   :  { %1591 = vmatprep.subr.bf16.mxu0 %v4182_v24  ;;  %1632 = vmatprep.subr.bf16.mxu1 %v4185_v9 }
 0x5af   :  { %1592 = vmatpush1.bf16.msra.mxu0 %v4188_v25  ;;  %1633 = vmatpush1.bf16.msra.mxu1 %v4191_v28 }
 0x5b0   :  { %1593 = vmatprep.subr.bf16.mxu0 %v4194_v8  ;;  %1634 = vmatprep.subr.bf16.mxu1 %v4197_v39 }
 0x5b3   :  { %1594 = vmatpush1.bf16.msra.mxu0 %v4200_v29  ;;  %1635 = vmatpush1.bf16.msra.mxu1 %v4203_v26 }
 0x5b4   :  { %1595 = vmatprep.subr.bf16.mxu0 %v4206_v32  ;;  %1636 = vmatprep.subr.bf16.mxu1 %v4209_v49 }
 0x5b7   :  { %1596 = vmatpush1.bf16.msra.mxu0 %v4212_v56  ;;  %1637 = vmatpush1.bf16.msra.mxu1 %v4215_v5  ;;  %v5899_v5 = vld [vmem:[#allocation38_spill] sm:$0xff] }
 0x5b8   :  { %1597 = vmatprep.subr.bf16.mxu0 %v4218_v61  ;;  %1638 = vmatprep.subr.bf16.mxu1 %v4221_v23  ;;  %v5898_v23 = vld [vmem:[#allocation36_spill] sm:$0xff] }
 0x5bb   :  { %1598 = vmatpush1.bf16.msra.mxu0 %v4224_v22  ;;  %1639 = vmatpush1.bf16.msra.mxu1 %v4227_v33  ;;  %v5873_v22 = vld [vmem:[#allocation53_spill] sm:$0xff]  ;;  %v5874_v33 = vld [vmem:[#allocation52_spill] sm:$0xff] }
 0x5bc   :  { %1599 = vmatprep.subr.bf16.mxu0 %v4230_v36  ;;  %1640 = vmatprep.subr.bf16.mxu1 %v4233_v37  ;;  %v5875_v36 = vld [vmem:[#allocation54_spill] sm:$0xff]  ;;  %v5876_v37 = vld [vmem:[#allocation55_spill] sm:$0xff] }
 0x5bf   :  { %1600 = vmatpush1.bf16.msra.mxu0 %v4236_v40  ;;  %1641 = vmatpush1.bf16.msra.mxu1 %v4239_v41  ;;  %v5877_v40 = vld [vmem:[#allocation57_spill] sm:$0xff]  ;;  %v5878_v41 = vld [vmem:[#allocation56_spill] sm:$0xff] }
 0x5c0   :  { %1601 = vmatprep.subr.bf16.mxu0 %v5868_v7  ;;  %1642 = vmatprep.subr.bf16.mxu1 %v5869_v18  ;;  %v5879_v7 = vld [vmem:[#allocation58_spill] sm:$0xff]  ;;  %v5880_v18 = vld [vmem:[#allocation59_spill] sm:$0xff] }
 0x5c3   :  { %1602 = vmatpush1.bf16.msra.mxu0 %v5870_v11  ;;  %1643 = vmatpush1.bf16.msra.mxu1 %v5871_v13  ;;  %v5881_v11 = vld [vmem:[#allocation62_spill] sm:$0xff]  ;;  %v5882_v13 = vld [vmem:[#allocation60_spill] sm:$0xff] }
 0x5c4   :  { %1603 = vmatprep.subr.bf16.mxu0 %v5872_v21  ;;  %1644 = vmatprep.subr.bf16.mxu1 %v5873_v22  ;;  %v5883_v21 = vld [vmem:[#allocation63_spill] sm:$0xff]  ;;  %v5884_v22 = vld [vmem:[#allocation64_spill] sm:$0xff] }
 0x5c7   :  { %1604 = vmatpush1.bf16.msra.mxu0 %v5874_v33  ;;  %1645 = vmatpush1.bf16.msra.mxu1 %v5875_v36  ;;  %v5885_v33 = vld [vmem:[#allocation66_spill] sm:$0xff]  ;;  %v5886_v36 = vld [vmem:[#allocation65_spill] sm:$0xff] }
 0x5c8   :  { %1605 = vmatprep.subr.bf16.mxu0 %v5876_v37  ;;  %1646 = vmatprep.subr.bf16.mxu1 %v5877_v40  ;;  %v5887_v37 = vld [vmem:[#allocation67_spill] sm:$0xff]  ;;  %v5888_v40 = vld [vmem:[#allocation68_spill] sm:$0xff] }
 0x5cb   :  { %1606 = vmatpush1.bf16.msra.mxu0 %v5878_v41  ;;  %1647 = vmatpush1.bf16.msra.mxu1 %v5879_v7  ;;  %v5889_v41 = vld [vmem:[#allocation70_spill] sm:$0xff]  ;;  %v5890_v7 = vld [vmem:[#allocation69_spill] sm:$0xff] }
 0x5cc   :  { %1607 = vmatprep.subr.bf16.mxu0 %v5880_v18  ;;  %1648 = vmatprep.subr.bf16.mxu1 %v5881_v11  ;;  %v5891_v18 = vld [vmem:[#allocation71_spill] sm:$0xff]  ;;  %v5892_v11 = vld [vmem:[#allocation72_spill] sm:$0xff] }
 0x5cf   :  { %1608 = vmatpush1.bf16.msra.mxu0 %v5882_v13  ;;  %1649 = vmatpush1.bf16.msra.mxu1 %v5883_v21  ;;  %v5893_v13 = vld [vmem:[#allocation74_spill] sm:$0xff]  ;;  %v5894_v21 = vld [vmem:[#allocation73_spill] sm:$0xff] }
 0x5d0   :  { %1609 = vmatprep.subr.bf16.mxu0 %v5884_v22  ;;  %1650 = vmatprep.subr.bf16.mxu1 %v5885_v33  ;;  %v5895_v22 = vld [vmem:[#allocation75_spill] sm:$0xff]  ;;  %v5896_v33 = vld [vmem:[#allocation76_spill] sm:$0xff] }
 0x5d3   :  { %1610 = vmatpush1.bf16.msra.mxu0 %v5886_v36  ;;  %1651 = vmatpush1.bf16.msra.mxu1 %v5887_v37  ;;  %v5897_v36 = vld [vmem:[#allocation78_spill] sm:$0xff] }
 0x5d4   :  { %1611 = vmatprep.subr.bf16.mxu0 %v5888_v40  ;;  %1652 = vmatprep.subr.bf16.mxu1 %v5889_v41 }
 0x5d7   :  { %1612 = vmatpush1.bf16.msra.mxu0 %v5890_v7  ;;  %1653 = vmatpush1.bf16.msra.mxu1 %v5891_v18 }
 0x5d8   :  { %1613 = vmatprep.subr.bf16.mxu0 %v5892_v11  ;;  %1654 = vmatprep.subr.bf16.mxu1 %v5893_v13 }
 0x5db   :  { %1614 = vmatpush1.bf16.msra.mxu0 %v5894_v21  ;;  %1655 = vmatpush1.bf16.msra.mxu1 %v5895_v22 }
 0x5dc   :  { %1665 = vmatprep.subr.bf16.mxu0 %v5896_v33  ;;  %1706 = vmatprep.subr.bf16.mxu1 %v5897_v36  ;;  %v5900_v33 = vld [vmem:[#allocation39_spill] sm:$0xff] }
 0x631   :  { %v1394_v37 = vpop.f32.mrb[40].mxu0  ;;  %v1435_v40 = vpop.f32.mrb[40].mxu1 }
 0x632   :  { %v1556_v41 = vadd.f32 %v1394_v37, %v5898_v23  ;;  %v1396_v61 = vpop.f32.mrb[41].mxu0  ;;  %v1437_v7 = vpop.f32.mrb[41].mxu1 }
 0x633   :  { %v1557_v18 = vadd.f32 %v1396_v61, %v5899_v5  ;;  %v1398_v56 = vpop.f32.mrb[42].mxu0  ;;  %v1439_v11 = vpop.f32.mrb[42].mxu1  ;;  %v1559_v36 = vadd.f32 %v1437_v7, %v5900_v33 }
 0x634   :  { %v1560_v49 = vsub.f32 0.0, %v1556_v41  ;;  %v1399_v13 = vpop.f32.mrb[43].mxu0  ;;  %v1440_v32 = vpop.f32.mrb[43].mxu1 }
 0x635   :  { %v1561_v21 = vsub.f32 0.0, %v1557_v18 }
 0x636   :  { %v1563_v26 = vmul.f32 1.442695, %v1560_v49 }
 0x637   :  { %v1565_v22 = vmul.f32 1.442695, %v1561_v21  ;;  %v5901_v21 = vld [vmem:[#allocation37_spill] sm:$0xff] }
 0x638   :  { %2702 = vpow2.f32 %v1563_v26 }
 0x639   :  { %2704 = vpow2.f32 %v1565_v22 }
 0x63a   :  { %2706 = vtanh.f32 %v1559_v36 }
 0x642   :  { %v2703_v29 = vpop.eup %2702 }
 0x643   :  { %v1569_v39 = vadd.f32 1.0, %v2703_v29  ;;  %v2705_v8 = vpop.eup %2704 }
 0x644   :  { %v1570_v23 = vadd.f32 1.0, %v2705_v8  ;;  %v2707_v5 = vpop.eup %2706 }
 0x645   :  { %2708 = vrcp.f32 %v1569_v39 }
 0x646   :  { %2710 = vrcp.f32 %v1570_v23  ;;  %v1558_v23 = vadd.f32 %v1435_v40, %v5901_v21 }
 0x64f   :  { %v2709_v56 = vpop.eup %2708 }
 0x650   :  { %v1577_v61 = vmul.f32 %v2709_v56, %v2707_v5  ;;  %v2711_v37 = vpop.eup %2710 }
 0x651   :  { %v1576_v32 = vmul.f32 %v2711_v37, %v4336_v62 }
 0x653   :  { %v4608_v41 = vadd.f32 %v1577_v61, %v1576_v32  ;;  %v1562_v61 = vsub.f32 0.0, %v1558_v23 }
 0x655   :  { %v1567_v32 = vmul.f32 1.442695, %v1562_v61 }
 0x671   :  { %v1476_v49 = vpop.f32.mrb[44].mxu0  ;;  %v1517_v26 = vpop.f32.mrb[44].mxu1 }
 0x672   :  { %v1524_v22 = vadd.f32 %v1476_v49, %v5734_v17  ;;  %v1478_v33 = vpop.f32.mrb[45].mxu0  ;;  %v1519_v7 = vpop.f32.mrb[45].mxu1  ;;  %v1526_v56 = vadd.f32 %v1517_v26, %v3900_v10 }
 0x673   :  { %v1525_v29 = vadd.f32 %v1478_v33, %v5735_v51  ;;  %v1480_v36 = vpop.f32.mrb[46].mxu0  ;;  %v1521_v39 = vpop.f32.mrb[46].mxu1  ;;  %v1527_v49 = vadd.f32 %v1519_v7, %v3907_v46 }
 0x674   :  { %v1528_v8 = vsub.f32 0.0, %v1524_v22  ;;  %v1481_v18 = vpop.f32.mrb[47].mxu0  ;;  %v1522_v11 = vpop.f32.mrb[47].mxu1  ;;  %v1530_v37 = vsub.f32 0.0, %v1526_v56 }
 0x675   :  { %v1529_v13 = vsub.f32 0.0, %v1525_v29 }
 0x676   :  { %v1531_v5 = vmul.f32 1.442695, %v1528_v8  ;;  %v1535_v33 = vmul.f32 1.442695, %v1530_v37 }
 0x677   :  { %v1533_v62 = vmul.f32 1.442695, %v1529_v13 }
 0x678   :  { %2712 = vpow2.f32 %v1531_v5 }
 0x679   :  { %2714 = vpow2.f32 %v1533_v62 }
 0x67a   :  { %2716 = vpow2.f32 %v1567_v32 }
 0x67b   :  { %2718 = vtanh.f32 %v1527_v49 }
 0x67c   :  { %2720 = vpow2.f32 %v1535_v33 }
 0x682   :  { %v2713_v36 = vpop.eup %2712 }
 0x683   :  { %v1537_v22 = vadd.f32 1.0, %v2713_v36  ;;  %v2715_v39 = vpop.eup %2714 }
 0x684   :  { %v1538_v40 = vadd.f32 1.0, %v2715_v39  ;;  %v2717_v29 = vpop.eup %2716  ;;  %v5905_v39 = vld [vmem:[#allocation82_spill] sm:$0xff] }
 0x685   :  { %2722 = vrcp.f32 %v1537_v22  ;;  %v2719_v8 = vpop.eup %2718  ;;  %v1571_v11 = vadd.f32 1.0, %v2717_v29  ;;  %v5904_v22 = vld [vmem:[#allocation80_spill] sm:$0xff]  ;;  %v5907_v29 = vld [vmem:[#allocation83_spill] sm:$0xff] }
 0x686   :  { %2724 = vrcp.f32 %v1538_v40  ;;  %v2721_v18 = vpop.eup %2720  ;;  %v5906_v40 = vld [vmem:[#allocation81_spill] sm:$0xff] }
 0x687   :  { %v1539_v23 = vadd.f32 1.0, %v2721_v18  ;;  %2726 = vtanh.f32 %v4608_v41  ;;  %v5909_v18 = vld [vmem:[#allocation30_spill] sm:$0xff] }
 0x688   :  { %2728 = vrcp.f32 %v1571_v11  ;;  %v5911_v11 = vld [vmem:[#allocation29_spill] sm:$0xff] }
 0x689   :  { %2730 = vrcp.f32 %v1539_v23  ;;  %v5914_v23 = vld [vmem:[#allocation95_spill] sm:$0xff] }
 0x68f   :  { %v2723_v26 = vpop.eup %2722 }
 0x690   :  { %v1545_v13 = vmul.f32 %v2723_v26, %v2719_v8  ;;  %v2725_v21 = vpop.eup %2724  ;;  %v5908_v8 = vld [vmem:[#allocation28_spill] sm:$0xff]  ;;  %v5910_v26 = vld [vmem:[#allocation31_spill] sm:$0xff] }
 0x691   :  { %v1544_v7 = vmul.f32 %v2725_v21, %v4345_v59  ;;  %v2727_v62 = vpop.eup %2726  ;;  %v5903_v59 = vld [vmem:[#allocation79_spill] sm:$0xff]  ;;  %v5913_v21 = vld [vmem:[#allocation93_spill] sm:$0xff] }
 0x692   :  { %v2729_v56 = vpop.eup %2728 }
 0x693   :  { %v4617_v5 = vadd.f32 %v1545_v13, %v1544_v7  ;;  %v2731_v61 = vpop.eup %2730  ;;  %v1580_v32 = vmul.f32 %v2729_v56, %v2727_v62  ;;  %v5912_v13 = vld [vmem:[#allocation94_spill] sm:$0xff]  ;;  %v5915_v7 = vld [vmem:[#allocation96_spill] sm:$0xff]  ;;  %v5917_v56 = vld [vmem:[#allocation97_spill] sm:$0xff] }
 0x694   :  { %v5916_v62 = vld [vmem:[#allocation98_spill] sm:$0xff] }
 0x695   :  { %2732 = vtanh.f32 %v4617_v5  ;;  %v4620_v36 = vpack.c.bf16 %v1580_v32, %v1580_v32  ;;  %v5920_v32 = vld [vmem:[#allocation102_spill] sm:$0xff] }
 0x69f   :  { %v2733_v37 = vpop.eup %2732 }
 0x6a0   :  { %v1548_v49 = vmul.f32 %v2733_v37, %v2731_v61  ;;  %v5918_v61 = vld [vmem:[#allocation99_spill] sm:$0xff]  ;;  %v5919_v37 = vld [vmem:[#allocation100_spill] sm:$0xff] }
 0x6a2   :  { %v1582_v33 = vpack.c.bf16 %v1548_v49, %v1548_v49  ;;  %v5921_v49 = vld [vmem:[#allocation101_spill] sm:$0xff] }
 0x6a4   :  { %1615 = vmatprep.mubr.bf16.mxu0 %v1582_v33  ;;  %1656 = vmatprep.mubr.bf16.mxu1 %v1582_v33 }
 0x6a5   :  { %1616 = vmatmul.mubr.bf16.vlgmr.msra.gmra.mrb[48].mxu0 %v4620_v36  ;;  %1657 = vmatmul.mubr.bf16.vlgmr.msra.gmra.mrb[48].mxu1 %v4620_v36 }
 0x6a6   :  { %1666 = vmatpush1.bf16.msra.mxu0 %v4352_v47  ;;  %1707 = vmatpush1.bf16.msra.mxu1 %v4355_v57 }
 0x6a7   :  { %1697 = vmatprep.mubr.bf16.mxu0 %v1582_v33  ;;  %1738 = vmatprep.mubr.bf16.mxu1 %v1582_v33  ;;  %v5922_v33 = vld [vmem:[#allocation103_spill] sm:$0xff] }
 0x6a8   :  { %1667 = vmatprep.subr.bf16.mxu0 %v4078_v35  ;;  %1708 = vmatprep.subr.bf16.mxu1 %v4359_v60  ;;  %v5902_v35 = vld [vmem:[#allocation77_spill] sm:$0xff] }
 0x6aa   :  { %1668 = vmatpush1.bf16.msra.mxu0 %v4362_v58  ;;  %1709 = vmatpush1.bf16.msra.mxu1 %v4365_v1 }
 0x6ab   :  { %1669 = vmatprep.subr.bf16.mxu0 %v4368_v45  ;;  %1710 = vmatprep.subr.bf16.mxu1 %v4371_v54 }
 0x6ae   :  { %1670 = vmatpush1.bf16.msra.mxu0 %v4374_v4  ;;  %1711 = vmatpush1.bf16.msra.mxu1 %v4377_v38 }
 0x6af   :  { %1671 = vmatprep.subr.bf16.mxu0 %v4380_v31  ;;  %1712 = vmatprep.subr.bf16.mxu1 %v4383_v6 }
 0x6b2   :  { %1672 = vmatpush1.bf16.msra.mxu0 %v4386_v16  ;;  %1713 = vmatpush1.bf16.msra.mxu1 %v4389_v20 }
 0x6b3   :  { %1673 = vmatprep.subr.bf16.mxu0 %v4392_v63  ;;  %1714 = vmatprep.subr.bf16.mxu1 %v5902_v35 }
 0x6b6   :  { %1674 = vmatpush1.bf16.msra.mxu0 %v5903_v59  ;;  %1715 = vmatpush1.bf16.msra.mxu1 %v5904_v22 }
 0x6b7   :  { %1675 = vmatprep.subr.bf16.mxu0 %v5905_v39  ;;  %1716 = vmatprep.subr.bf16.mxu1 %v5906_v40 }
 0x6ba   :  { %1676 = vmatpush1.bf16.msra.mxu0 %v5907_v29  ;;  %1717 = vmatpush1.bf16.msra.mxu1 %v5908_v8 }
 0x6bb   :  { %1677 = vmatprep.subr.bf16.mxu0 %v5909_v18  ;;  %1718 = vmatprep.subr.bf16.mxu1 %v5910_v26 }
 0x6be   :  { %1678 = vmatpush1.bf16.msra.mxu0 %v5911_v11  ;;  %1719 = vmatpush1.bf16.msra.mxu1 %v5912_v13  ;;  %v5923_v13 = vld [vmem:[#allocation104_spill] sm:$0xff] }
 0x6bf   :  { %1679 = vmatprep.subr.bf16.mxu0 %v5913_v21  ;;  %1720 = vmatprep.subr.bf16.mxu1 %v5914_v23  ;;  %v5924_v21 = vld [vmem:[#allocation106_spill] sm:$0xff]  ;;  %v5925_v23 = vld [vmem:[#allocation105_spill] sm:$0xff] }
 0x6c2   :  { %1680 = vmatpush1.bf16.msra.mxu0 %v5915_v7  ;;  %1721 = vmatpush1.bf16.msra.mxu1 %v5916_v62  ;;  %v5926_v7 = vld [vmem:[#allocation107_spill] sm:$0xff]  ;;  %v5927_v62 = vld [vmem:[#allocation108_spill] sm:$0xff] }
 0x6c3   :  { %1681 = vmatprep.subr.bf16.mxu0 %v5917_v56  ;;  %1722 = vmatprep.subr.bf16.mxu1 %v5918_v61  ;;  %v5928_v56 = vld [vmem:[#allocation110_spill] sm:$0xff]  ;;  %v5929_v61 = vld [vmem:[#allocation109_spill] sm:$0xff] }
 0x6c6   :  { %1682 = vmatpush1.bf16.msra.mxu0 %v5919_v37  ;;  %1723 = vmatpush1.bf16.msra.mxu1 %v5920_v32  ;;  %v5930_v37 = vld [vmem:[#allocation111_spill] sm:$0xff]  ;;  %v5931_v32 = vld [vmem:[#allocation112_spill] sm:$0xff] }
 0x6c7   :  { %1683 = vmatprep.subr.bf16.mxu0 %v5921_v49  ;;  %1724 = vmatprep.subr.bf16.mxu1 %v5922_v33  ;;  %v5932_v49 = vld [vmem:[#allocation114_spill] sm:$0xff]  ;;  %v5933_v33 = vld [vmem:[#allocation113_spill] sm:$0xff] }
 0x6ca   :  { %1684 = vmatpush1.bf16.msra.mxu0 %v5923_v13  ;;  %1725 = vmatpush1.bf16.msra.mxu1 %v5924_v21  ;;  %v5934_v13 = vld [vmem:[#allocation115_spill] sm:$0xff]  ;;  %v5935_v21 = vld [vmem:[#allocation116_spill] sm:$0xff] }
 0x6cb   :  { %1685 = vmatprep.subr.bf16.mxu0 %v5925_v23  ;;  %1726 = vmatprep.subr.bf16.mxu1 %v5926_v7  ;;  %v5936_v23 = vld [vmem:[#allocation118_spill] sm:$0xff]  ;;  %v5937_v7 = vld [vmem:[#allocation117_spill] sm:$0xff] }
 0x6ce   :  { %1686 = vmatpush1.bf16.msra.mxu0 %v5927_v62  ;;  %1727 = vmatpush1.bf16.msra.mxu1 %v5928_v56  ;;  %v5938_v62 = vld [vmem:[#allocation119_spill] sm:$0xff]  ;;  %v5939_v56 = vld [vmem:[#allocation120_spill] sm:$0xff] }
 0x6cf   :  { %1687 = vmatprep.subr.bf16.mxu0 %v5929_v61  ;;  %1728 = vmatprep.subr.bf16.mxu1 %v5930_v37  ;;  %v5940_v61 = vld [vmem:[#allocation122_spill] sm:$0xff]  ;;  %v5941_v37 = vld [vmem:[#allocation123_spill] sm:$0xff] }
 0x6d2   :  { %1688 = vmatpush1.bf16.msra.mxu0 %v5931_v32  ;;  %1729 = vmatpush1.bf16.msra.mxu1 %v5932_v49  ;;  %v5942_v32 = vld [vmem:[#allocation124_spill] sm:$0xff] }
 0x6d3   :  { %1689 = vmatprep.subr.bf16.mxu0 %v5933_v33  ;;  %1730 = vmatprep.subr.bf16.mxu1 %v5934_v13 }
 0x6d6   :  { %1690 = vmatpush1.bf16.msra.mxu0 %v5935_v21  ;;  %1731 = vmatpush1.bf16.msra.mxu1 %v5936_v23 }
 0x6d7   :  { %1691 = vmatprep.subr.bf16.mxu0 %v5937_v7  ;;  %1732 = vmatprep.subr.bf16.mxu1 %v5938_v62  ;;  %v4686_v62 = vld [vmem:[#allocation3 + $0x8] sm:$0xff] }
 0x6d8   :  { %5943 = vst [vmem:[#allocation137_spill] sm:$0xff] %v4686_v62 }
 0x6da   :  { %1692 = vmatpush1.bf16.msra.mxu0 %v5939_v56  ;;  %1733 = vmatpush1.bf16.msra.mxu1 %v5940_v61 }
 0x6db   :  { %1693 = vmatprep.subr.bf16.mxu0 %v5941_v37  ;;  %1734 = vmatprep.subr.bf16.mxu1 %v5942_v32 }
 0x6de   :  { %1694 = vmatpush1.bf16.msra.mxu0 %v4518_v48  ;;  %1735 = vmatpush1.bf16.msra.mxu1 %v4521_v53  ;;  %v4692_v48 = vld [vmem:[#allocation3] sm:$0xff] }
 0x6df   :  { %1695 = vmatprep.subr.bf16.mxu0 %v4524_v52  ;;  %1736 = vmatprep.subr.bf16.mxu1 %v4527_v50  ;;  %5944 = vst [vmem:[#allocation138_spill] sm:$0xff] %v4692_v48  ;;  %v4696_v50 = vld [vmem:[#allocation3 + $0x48] sm:$0xff] }
 0x6e0   :  { %5945 = vst [vmem:[#allocation139_spill] sm:$0xff] %v4696_v50 }
 0x6e2   :  { %1696 = vmatpush1.bf16.msra.mxu0 %v4530_v44  ;;  %1737 = vmatpush1.bf16.msra.mxu1 %v4533_v55  ;;  %v4700_v55 = vld [vmem:[#allocation3 + $0x40] sm:$0xff] }
 0x6e3   :  { %1806 = vmatprep.subr.bf16.mxu0 %v4686_v62  ;;  %1847 = vmatprep.subr.bf16.mxu1 %v4141_v27  ;;  %5946 = vst [vmem:[#allocation32_spill] sm:$0xff] %v4700_v55  ;;  %v5947_v27 = vld [vmem:[#allocation23_spill] sm:$0xff] }
 0x6e5   :  { %1698 = vmatmul.mubr.bf16.vlgmr.msra.gmra.mrb[52].mxu0 %v4620_v36  ;;  %1739 = vmatmul.mubr.bf16.vlgmr.msra.gmra.mrb[52].mxu1 %v4620_v36  ;;  %v5963_v36 = vld [vmem:[#allocation131_spill] sm:$0xff] }
 0x6e6   :  { %1807 = vmatpush1.bf16.msra.mxu0 %v4692_v48  ;;  %1848 = vmatpush1.bf16.msra.mxu1 %v4147_v2  ;;  %v5948_v2 = vld [vmem:[#allocation25_spill] sm:$0xff] }
 0x6e7   :  { %1808 = vmatprep.subr.bf16.mxu0 %v4696_v50  ;;  %1849 = vmatprep.subr.bf16.mxu1 %v4151_v15  ;;  %v5949_v15 = vld [vmem:[#allocation84_spill] sm:$0xff] }
 0x6ea   :  { %1809 = vmatpush1.bf16.msra.mxu0 %v4700_v55  ;;  %1850 = vmatpush1.bf16.msra.mxu1 %v4155_v19  ;;  %v5950_v19 = vld [vmem:[#allocation86_spill] sm:$0xff] }
 0x6eb   :  { %1810 = vmatprep.subr.bf16.mxu0 %v4158_v3  ;;  %1851 = vmatprep.subr.bf16.mxu1 %v4161_v14  ;;  %v5951_v3 = vld [vmem:[#allocation85_spill] sm:$0xff]  ;;  %v5952_v14 = vld [vmem:[#allocation87_spill] sm:$0xff] }
 0x6ee   :  { %1811 = vmatpush1.bf16.msra.mxu0 %v4164_v43  ;;  %1852 = vmatpush1.bf16.msra.mxu1 %v4167_v34  ;;  %v5953_v43 = vld [vmem:[#allocation88_spill] sm:$0xff]  ;;  %v5954_v34 = vld [vmem:[#allocation90_spill] sm:$0xff] }
 0x6ef   :  { %1812 = vmatprep.subr.bf16.mxu0 %v4170_v12  ;;  %1853 = vmatprep.subr.bf16.mxu1 %v4173_v30  ;;  %v5955_v12 = vld [vmem:[#allocation89_spill] sm:$0xff]  ;;  %v5956_v30 = vld [vmem:[#allocation91_spill] sm:$0xff] }
 0x6f2   :  { %1813 = vmatpush1.bf16.msra.mxu0 %v4176_v42  ;;  %1854 = vmatpush1.bf16.msra.mxu1 %v4179_v0  ;;  %v5957_v42 = vld [vmem:[#allocation92_spill] sm:$0xff]  ;;  %v5958_v0 = vld [vmem:[#allocation121_spill] sm:$0xff] }
 0x6f3   :  { %1814 = vmatprep.subr.bf16.mxu0 %v4182_v24  ;;  %1855 = vmatprep.subr.bf16.mxu1 %v4185_v9  ;;  %v5959_v24 = vld [vmem:[#allocation125_spill] sm:$0xff]  ;;  %v5960_v9 = vld [vmem:[#allocation128_spill] sm:$0xff] }
 0x6f6   :  { %1815 = vmatpush1.bf16.msra.mxu0 %v4188_v25  ;;  %1856 = vmatpush1.bf16.msra.mxu1 %v4191_v28  ;;  %v5961_v25 = vld [vmem:[#allocation130_spill] sm:$0xff]  ;;  %v5962_v28 = vld [vmem:[#allocation129_spill] sm:$0xff] }
 0x6f7   :  { %1816 = vmatprep.subr.bf16.mxu0 %v5947_v27  ;;  %1857 = vmatprep.subr.bf16.mxu1 %v5948_v2  ;;  %v5964_v27 = vld [vmem:[#allocation132_spill] sm:$0xff]  ;;  %v5965_v2 = vld [vmem:[#allocation133_spill] sm:$0xff] }
 0x6fa   :  { %1817 = vmatpush1.bf16.msra.mxu0 %v5949_v15  ;;  %1858 = vmatpush1.bf16.msra.mxu1 %v5950_v19  ;;  %v5966_v15 = vld [vmem:[#allocation135_spill] sm:$0xff]  ;;  %v5967_v19 = vld [vmem:[#allocation136_spill] sm:$0xff] }
 0x6fb   :  { %1818 = vmatprep.subr.bf16.mxu0 %v5951_v3  ;;  %1859 = vmatprep.subr.bf16.mxu1 %v5952_v14  ;;  %v5968_v3 = vld [vmem:[#allocation53_spill] sm:$0xff]  ;;  %v5969_v14 = vld [vmem:[#allocation52_spill] sm:$0xff] }
 0x6fe   :  { %1819 = vmatpush1.bf16.msra.mxu0 %v5953_v43  ;;  %1860 = vmatpush1.bf16.msra.mxu1 %v5954_v34  ;;  %v5970_v43 = vld [vmem:[#allocation54_spill] sm:$0xff]  ;;  %v5971_v34 = vld [vmem:[#allocation55_spill] sm:$0xff] }
 0x6ff   :  { %1820 = vmatprep.subr.bf16.mxu0 %v5955_v12  ;;  %1861 = vmatprep.subr.bf16.mxu1 %v5956_v30  ;;  %v5972_v12 = vld [vmem:[#allocation57_spill] sm:$0xff]  ;;  %v5973_v30 = vld [vmem:[#allocation56_spill] sm:$0xff] }
 0x702   :  { %1821 = vmatpush1.bf16.msra.mxu0 %v5957_v42  ;;  %1862 = vmatpush1.bf16.msra.mxu1 %v5958_v0  ;;  %v5974_v42 = vld [vmem:[#allocation58_spill] sm:$0xff]  ;;  %v5975_v0 = vld [vmem:[#allocation59_spill] sm:$0xff] }
 0x703   :  { %1822 = vmatprep.subr.bf16.mxu0 %v5959_v24  ;;  %1863 = vmatprep.subr.bf16.mxu1 %v5960_v9  ;;  %v5976_v24 = vld [vmem:[#allocation62_spill] sm:$0xff]  ;;  %v5977_v9 = vld [vmem:[#allocation60_spill] sm:$0xff] }
 0x706   :  { %1823 = vmatpush1.bf16.msra.mxu0 %v5961_v25  ;;  %1864 = vmatpush1.bf16.msra.mxu1 %v5962_v28  ;;  %v5978_v25 = vld [vmem:[#allocation63_spill] sm:$0xff]  ;;  %v5979_v28 = vld [vmem:[#allocation64_spill] sm:$0xff] }
 0x707   :  { %1824 = vmatprep.subr.bf16.mxu0 %v5963_v36  ;;  %1865 = vmatprep.subr.bf16.mxu1 %v5964_v27  ;;  %v5980_v36 = vld [vmem:[#allocation66_spill] sm:$0xff]  ;;  %v5981_v27 = vld [vmem:[#allocation65_spill] sm:$0xff] }
 0x70a   :  { %1825 = vmatpush1.bf16.msra.mxu0 %v5965_v2  ;;  %1866 = vmatpush1.bf16.msra.mxu1 %v5966_v15  ;;  %v5982_v2 = vld [vmem:[#allocation67_spill] sm:$0xff]  ;;  %v5983_v15 = vld [vmem:[#allocation68_spill] sm:$0xff] }
 0x70b   :  { %1826 = vmatprep.subr.bf16.mxu0 %v5967_v19  ;;  %1867 = vmatprep.subr.bf16.mxu1 %v5968_v3  ;;  %v5984_v19 = vld [vmem:[#allocation70_spill] sm:$0xff]  ;;  %v5985_v3 = vld [vmem:[#allocation69_spill] sm:$0xff] }
 0x70e   :  { %1827 = vmatpush1.bf16.msra.mxu0 %v5969_v14  ;;  %1868 = vmatpush1.bf16.msra.mxu1 %v5970_v43  ;;  %v5986_v14 = vld [vmem:[#allocation71_spill] sm:$0xff]  ;;  %v5987_v43 = vld [vmem:[#allocation72_spill] sm:$0xff] }
 0x70f   :  { %1828 = vmatprep.subr.bf16.mxu0 %v5971_v34  ;;  %1869 = vmatprep.subr.bf16.mxu1 %v5972_v12  ;;  %v5988_v34 = vld [vmem:[#allocation74_spill] sm:$0xff]  ;;  %v5989_v12 = vld [vmem:[#allocation73_spill] sm:$0xff] }
 0x712   :  { %1829 = vmatpush1.bf16.msra.mxu0 %v5973_v30  ;;  %1870 = vmatpush1.bf16.msra.mxu1 %v5974_v42  ;;  %v5990_v30 = vld [vmem:[#allocation75_spill] sm:$0xff]  ;;  %v5991_v42 = vld [vmem:[#allocation76_spill] sm:$0xff] }
 0x713   :  { %1830 = vmatprep.subr.bf16.mxu0 %v5975_v0  ;;  %1871 = vmatprep.subr.bf16.mxu1 %v5976_v24  ;;  %v5992_v0 = vld [vmem:[#allocation78_spill] sm:$0xff] }
 0x716   :  { %1831 = vmatpush1.bf16.msra.mxu0 %v5977_v9  ;;  %1872 = vmatpush1.bf16.msra.mxu1 %v5978_v25  ;;  %v5993_v25 = vld [vmem:[#allocation40_spill] sm:$0xff] }
 0x717   :  { %1832 = vmatprep.subr.bf16.mxu0 %v5979_v28  ;;  %1873 = vmatprep.subr.bf16.mxu1 %v5980_v36 }
 0x71a   :  { %1833 = vmatpush1.bf16.msra.mxu0 %v5981_v27  ;;  %1874 = vmatpush1.bf16.msra.mxu1 %v5982_v2  ;;  %v5994_v2 = vld [vmem:[#allocation42_spill] sm:$0xff] }
 0x71b   :  { %1834 = vmatprep.subr.bf16.mxu0 %v5983_v15  ;;  %1875 = vmatprep.subr.bf16.mxu1 %v5984_v19 }
 0x71e   :  { %1835 = vmatpush1.bf16.msra.mxu0 %v5985_v3  ;;  %1876 = vmatpush1.bf16.msra.mxu1 %v5986_v14 }
 0x71f   :  { %1836 = vmatprep.subr.bf16.mxu0 %v5987_v43  ;;  %1877 = vmatprep.subr.bf16.mxu1 %v5988_v34 }
 0x722   :  { %1837 = vmatpush1.bf16.msra.mxu0 %v5989_v12  ;;  %1878 = vmatpush1.bf16.msra.mxu1 %v5990_v30 }
 0x723   :  { %1888 = vmatprep.subr.bf16.mxu0 %v5991_v42  ;;  %1929 = vmatprep.subr.bf16.mxu1 %v5992_v0  ;;  %v5995_v42 = vld [vmem:[#allocation43_spill] sm:$0xff] }
 0x778   :  { %v1617_v24 = vpop.f32.mrb[48].mxu0  ;;  %v1658_v9 = vpop.f32.mrb[48].mxu1 }
 0x779   :  { %v1779_v28 = vadd.f32 %v1617_v24, %v5993_v25  ;;  %v1619_v36 = vpop.f32.mrb[49].mxu0  ;;  %v1660_v27 = vpop.f32.mrb[49].mxu1 }
 0x77a   :  { %v1780_v15 = vadd.f32 %v1619_v36, %v5994_v2  ;;  %v1621_v19 = vpop.f32.mrb[50].mxu0  ;;  %v1662_v3 = vpop.f32.mrb[50].mxu1  ;;  %v1782_v0 = vadd.f32 %v1660_v27, %v5995_v42 }
 0x77b   :  { %v1783_v14 = vsub.f32 0.0, %v1779_v28  ;;  %v1622_v43 = vpop.f32.mrb[51].mxu0  ;;  %v1663_v34 = vpop.f32.mrb[51].mxu1 }
 0x77c   :  { %v1784_v12 = vsub.f32 0.0, %v1780_v15 }
 0x77d   :  { %v1786_v55 = vmul.f32 1.442695, %v1783_v14 }
 0x77e   :  { %v1788_v30 = vmul.f32 1.442695, %v1784_v12 }
 0x77f   :  { %2734 = vpow2.f32 %v1786_v55 }
 0x780   :  { %2736 = vpow2.f32 %v1788_v30 }
 0x781   :  { %2738 = vtanh.f32 %v1782_v0  ;;  %v5996_v0 = vld [vmem:[#allocation41_spill] sm:$0xff] }
 0x789   :  { %v2735_v50 = vpop.eup %2734 }
 0x78a   :  { %v1792_v48 = vadd.f32 1.0, %v2735_v50  ;;  %v2737_v62 = vpop.eup %2736 }
 0x78b   :  { %v1793_v24 = vadd.f32 1.0, %v2737_v62  ;;  %v2739_v25 = vpop.eup %2738 }
 0x78c   :  { %2740 = vrcp.f32 %v1792_v48 }
 0x78d   :  { %2742 = vrcp.f32 %v1793_v24  ;;  %v1781_v24 = vadd.f32 %v1658_v9, %v5996_v0 }
 0x796   :  { %v2741_v36 = vpop.eup %2740 }
 0x797   :  { %v1800_v2 = vmul.f32 %v2741_v36, %v2739_v25  ;;  %v2743_v28 = vpop.eup %2742 }
 0x798   :  { %v1799_v19 = vmul.f32 %v2743_v28, %v4608_v41 }
 0x79a   :  { %v4766_v15 = vadd.f32 %v1800_v2, %v1799_v19  ;;  %v1785_v2 = vsub.f32 0.0, %v1781_v24 }
 0x79c   :  { %v1790_v19 = vmul.f32 1.442695, %v1785_v2 }
 0x7b8   :  { %v1699_v3 = vpop.f32.mrb[52].mxu0  ;;  %v1740_v55 = vpop.f32.mrb[52].mxu1 }
 0x7b9   :  { %v1747_v14 = vadd.f32 %v1699_v3, %v5734_v17  ;;  %v1701_v27 = vpop.f32.mrb[53].mxu0  ;;  %v1742_v43 = vpop.f32.mrb[53].mxu1  ;;  %v1749_v36 = vadd.f32 %v1740_v55, %v3900_v10 }
 0x7ba   :  { %v1748_v50 = vadd.f32 %v1701_v27, %v5735_v51  ;;  %v1703_v34 = vpop.f32.mrb[54].mxu0  ;;  %v1744_v48 = vpop.f32.mrb[54].mxu1  ;;  %v1750_v3 = vadd.f32 %v1742_v43, %v3907_v46 }
 0x7bb   :  { %v1751_v62 = vsub.f32 0.0, %v1747_v14  ;;  %v1704_v12 = vpop.f32.mrb[55].mxu0  ;;  %v1745_v30 = vpop.f32.mrb[55].mxu1  ;;  %v1753_v28 = vsub.f32 0.0, %v1749_v36 }
 0x7bc   :  { %v1752_v42 = vsub.f32 0.0, %v1748_v50 }
 0x7bd   :  { %v1754_v25 = vmul.f32 1.442695, %v1751_v62  ;;  %v1758_v27 = vmul.f32 1.442695, %v1753_v28 }
 0x7be   :  { %v1756_v41 = vmul.f32 1.442695, %v1752_v42 }
 0x7bf   :  { %2744 = vpow2.f32 %v1754_v25 }
 0x7c0   :  { %2746 = vpow2.f32 %v1756_v41 }
 0x7c1   :  { %2748 = vpow2.f32 %v1790_v19 }
 0x7c2   :  { %2750 = vtanh.f32 %v1750_v3 }
 0x7c3   :  { %2752 = vpow2.f32 %v1758_v27 }
 0x7c9   :  { %v2745_v34 = vpop.eup %2744 }
 0x7ca   :  { %v1760_v14 = vadd.f32 1.0, %v2745_v34  ;;  %v2747_v48 = vpop.eup %2746 }
 0x7cb   :  { %v1761_v9 = vadd.f32 1.0, %v2747_v48  ;;  %v2749_v50 = vpop.eup %2748  ;;  %v2989_v48 = vld [vmem:[#allocation3 + $0xc0] sm:$0xff] }
 0x7cc   :  { %2754 = vrcp.f32 %v1760_v14  ;;  %v2751_v62 = vpop.eup %2750  ;;  %v1794_v30 = vadd.f32 1.0, %v2749_v50  ;;  %v2988_v14 = vld [vmem:[#allocation3 + $0xd8] sm:$0xff]  ;;  %v2991_v50 = vld [vmem:[#allocation3 + $0x108] sm:$0xff] }
 0x7cd   :  { %2756 = vrcp.f32 %v1761_v9  ;;  %v2753_v12 = vpop.eup %2752  ;;  %v2990_v9 = vld [vmem:[#allocation3 + $0xd0] sm:$0xff] }
 0x7ce   :  { %v1762_v24 = vadd.f32 1.0, %v2753_v12  ;;  %2758 = vtanh.f32 %v4766_v15  ;;  %v2993_v12 = vld [vmem:[#allocation3 + $0x100] sm:$0xff] }
 0x7cf   :  { %2760 = vrcp.f32 %v1794_v30  ;;  %v2995_v30 = vld [vmem:[#allocation3 + $0x148] sm:$0xff] }
 0x7d0   :  { %2762 = vrcp.f32 %v1762_v24  ;;  %v2998_v24 = vld [vmem:[#allocation3 + $0x150] sm:$0xff] }
 0x7d6   :  { %v2755_v55 = vpop.eup %2754 }
 0x7d7   :  { %v1768_v42 = vmul.f32 %v2755_v55, %v2751_v62  ;;  %v2757_v0 = vpop.eup %2756  ;;  %v2992_v62 = vld [vmem:[#allocation3 + $0x118] sm:$0xff]  ;;  %v2994_v55 = vld [vmem:[#allocation3 + $0x110] sm:$0xff] }
 0x7d8   :  { %v1767_v43 = vmul.f32 %v2757_v0, %v4617_v5  ;;  %v2759_v41 = vpop.eup %2758  ;;  %v4784_v5 = vld [vmem:[#allocation3 + $0x68] sm:$0xff]  ;;  %v2997_v0 = vld [vmem:[#allocation3 + $0x140] sm:$0xff] }
 0x7d9   :  { %v2761_v36 = vpop.eup %2760 }
 0x7da   :  { %v4775_v25 = vadd.f32 %v1768_v42, %v1767_v43  ;;  %v2763_v2 = vpop.eup %2762  ;;  %v1803_v19 = vmul.f32 %v2761_v36, %v2759_v41  ;;  %v2996_v42 = vld [vmem:[#allocation3 + $0x158] sm:$0xff]  ;;  %v2999_v43 = vld [vmem:[#allocation3 + $0x188] sm:$0xff]  ;;  %v3001_v36 = vld [vmem:[#allocation3 + $0x180] sm:$0xff] }
 0x7db   :  { %v3000_v41 = vld [vmem:[#allocation3 + $0x198] sm:$0xff] }
 0x7dc   :  { %2764 = vtanh.f32 %v4775_v25  ;;  %v4778_v34 = vpack.c.bf16 %v1803_v19, %v1803_v19  ;;  %v3004_v19 = vld [vmem:[#allocation3 + $0x1d8] sm:$0xff] }
 0x7e6   :  { %v2765_v28 = vpop.eup %2764 }
 0x7e7   :  { %v1771_v3 = vmul.f32 %v2765_v28, %v2763_v2  ;;  %v3002_v2 = vld [vmem:[#allocation3 + $0x190] sm:$0xff]  ;;  %v3003_v28 = vld [vmem:[#allocation3 + $0x1c8] sm:$0xff] }
 0x7e9   :  { %v1805_v27 = vpack.c.bf16 %v1771_v3, %v1771_v3  ;;  %v3005_v3 = vld [vmem:[#allocation3 + $0x1c0] sm:$0xff] }
 0x7eb   :  { %1838 = vmatprep.mubr.bf16.mxu0 %v1805_v27  ;;  %1879 = vmatprep.mubr.bf16.mxu1 %v1805_v27 }
 0x7ec   :  { %1839 = vmatmul.mubr.bf16.vlgmr.msra.gmra.mrb[56].mxu0 %v4778_v34  ;;  %1880 = vmatmul.mubr.bf16.vlgmr.msra.gmra.mrb[56].mxu1 %v4778_v34 }
 0x7ed   :  { %1889 = vmatpush1.bf16.msra.mxu0 %v4352_v47  ;;  %1930 = vmatpush1.bf16.msra.mxu1 %v4355_v57  ;;  %v5997_v47 = vld [vmem:[#allocation94_spill] sm:$0xff]  ;;  %v5998_v57 = vld [vmem:[#allocation93_spill] sm:$0xff] }
 0x7ee   :  { %1920 = vmatprep.mubr.bf16.mxu0 %v1805_v27  ;;  %1961 = vmatprep.mubr.bf16.mxu1 %v1805_v27  ;;  %v3006_v27 = vld [vmem:[#allocation3 + $0x1d0] sm:$0xff] }
 0x7ef   :  { %1890 = vmatprep.subr.bf16.mxu0 %v4784_v5  ;;  %1931 = vmatprep.subr.bf16.mxu1 %v4359_v60  ;;  %v5999_v60 = vld [vmem:[#allocation95_spill] sm:$0xff] }
 0x7f1   :  { %1891 = vmatpush1.bf16.msra.mxu0 %v4362_v58  ;;  %1932 = vmatpush1.bf16.msra.mxu1 %v4365_v1  ;;  %v6000_v58 = vld [vmem:[#allocation96_spill] sm:$0xff]  ;;  %v6001_v1 = vld [vmem:[#allocation98_spill] sm:$0xff] }
 0x7f2   :  { %1892 = vmatprep.subr.bf16.mxu0 %v4368_v45  ;;  %1933 = vmatprep.subr.bf16.mxu1 %v4371_v54  ;;  %v6002_v45 = vld [vmem:[#allocation97_spill] sm:$0xff]  ;;  %v6003_v54 = vld [vmem:[#allocation99_spill] sm:$0xff] }
 0x7f5   :  { %1893 = vmatpush1.bf16.msra.mxu0 %v4374_v4  ;;  %1934 = vmatpush1.bf16.msra.mxu1 %v4377_v38  ;;  %v6004_v4 = vld [vmem:[#allocation100_spill] sm:$0xff]  ;;  %v6005_v38 = vld [vmem:[#allocation102_spill] sm:$0xff] }
 0x7f6   :  { %1894 = vmatprep.subr.bf16.mxu0 %v4380_v31  ;;  %1935 = vmatprep.subr.bf16.mxu1 %v4383_v6  ;;  %v6006_v31 = vld [vmem:[#allocation101_spill] sm:$0xff]  ;;  %v6007_v6 = vld [vmem:[#allocation103_spill] sm:$0xff] }
 0x7f9   :  { %1895 = vmatpush1.bf16.msra.mxu0 %v4386_v16  ;;  %1936 = vmatpush1.bf16.msra.mxu1 %v4389_v20  ;;  %v6008_v16 = vld [vmem:[#allocation104_spill] sm:$0xff]  ;;  %v6009_v20 = vld [vmem:[#allocation106_spill] sm:$0xff] }
 0x7fa   :  { %1896 = vmatprep.subr.bf16.mxu0 %v4392_v63  ;;  %1937 = vmatprep.subr.bf16.mxu1 %v5902_v35  ;;  %v6010_v63 = vld [vmem:[#allocation105_spill] sm:$0xff]  ;;  %v6011_v35 = vld [vmem:[#allocation107_spill] sm:$0xff] }
 0x7fd   :  { %1897 = vmatpush1.bf16.msra.mxu0 %v5903_v59  ;;  %1938 = vmatpush1.bf16.msra.mxu1 %v5904_v22  ;;  %v6012_v59 = vld [vmem:[#allocation108_spill] sm:$0xff]  ;;  %v6013_v22 = vld [vmem:[#allocation110_spill] sm:$0xff] }
 0x7fe   :  { %1898 = vmatprep.subr.bf16.mxu0 %v5905_v39  ;;  %1939 = vmatprep.subr.bf16.mxu1 %v5906_v40  ;;  %v6014_v39 = vld [vmem:[#allocation109_spill] sm:$0xff]  ;;  %v6015_v40 = vld [vmem:[#allocation111_spill] sm:$0xff] }
 0x801   :  { %1899 = vmatpush1.bf16.msra.mxu0 %v5907_v29  ;;  %1940 = vmatpush1.bf16.msra.mxu1 %v5908_v8  ;;  %v6016_v29 = vld [vmem:[#allocation112_spill] sm:$0xff]  ;;  %v6017_v8 = vld [vmem:[#allocation119_spill] sm:$0xff] }
 0x802   :  { %1900 = vmatprep.subr.bf16.mxu0 %v5909_v18  ;;  %1941 = vmatprep.subr.bf16.mxu1 %v5910_v26  ;;  %v6018_v18 = vld [vmem:[#allocation126_spill] sm:$0xff]  ;;  %v6019_v26 = vld [vmem:[#allocation127_spill] sm:$0xff] }
 0x805   :  { %1901 = vmatpush1.bf16.msra.mxu0 %v5911_v11  ;;  %1942 = vmatpush1.bf16.msra.mxu1 %v5997_v47  ;;  %v6020_v11 = vld [vmem:[#allocation134_spill] sm:$0xff]  ;;  %v3008_v47 = vld [vmem:[#allocation3 + $0x218] sm:$0xff] }
 0x806   :  { %1902 = vmatprep.subr.bf16.mxu0 %v5998_v57  ;;  %1943 = vmatprep.subr.bf16.mxu1 %v5999_v60  ;;  %v3009_v57 = vld [vmem:[#allocation3 + $0x200] sm:$0xff]  ;;  %v3010_v60 = vld [vmem:[#allocation3 + $0x210] sm:$0xff] }
 0x809   :  { %1903 = vmatpush1.bf16.msra.mxu0 %v6000_v58  ;;  %1944 = vmatpush1.bf16.msra.mxu1 %v6001_v1  ;;  %v3011_v58 = vld [vmem:[#allocation3 + $0x248] sm:$0xff]  ;;  %v3012_v1 = vld [vmem:[#allocation3 + $0x258] sm:$0xff] }
 0x80a   :  { %1904 = vmatprep.subr.bf16.mxu0 %v6002_v45  ;;  %1945 = vmatprep.subr.bf16.mxu1 %v6003_v54  ;;  %v3013_v45 = vld [vmem:[#allocation3 + $0x240] sm:$0xff]  ;;  %v3014_v54 = vld [vmem:[#allocation3 + $0x250] sm:$0xff] }
 0x80d   :  { %1905 = vmatpush1.bf16.msra.mxu0 %v6004_v4  ;;  %1946 = vmatpush1.bf16.msra.mxu1 %v6005_v38  ;;  %v3015_v4 = vld [vmem:[#allocation3 + $0x288] sm:$0xff]  ;;  %v3016_v38 = vld [vmem:[#allocation3 + $0x298] sm:$0xff] }
 0x80e   :  { %1906 = vmatprep.subr.bf16.mxu0 %v6006_v31  ;;  %1947 = vmatprep.subr.bf16.mxu1 %v6007_v6  ;;  %v3017_v31 = vld [vmem:[#allocation3 + $0x280] sm:$0xff]  ;;  %v3018_v6 = vld [vmem:[#allocation3 + $0x290] sm:$0xff] }
 0x811   :  { %1907 = vmatpush1.bf16.msra.mxu0 %v6008_v16  ;;  %1948 = vmatpush1.bf16.msra.mxu1 %v6009_v20  ;;  %v3019_v16 = vld [vmem:[#allocation3 + $0x2c8] sm:$0xff]  ;;  %v3020_v20 = vld [vmem:[#allocation3 + $0x2d8] sm:$0xff] }
 0x812   :  { %1908 = vmatprep.subr.bf16.mxu0 %v6010_v63  ;;  %1949 = vmatprep.subr.bf16.mxu1 %v6011_v35  ;;  %v3021_v63 = vld [vmem:[#allocation3 + $0x2c0] sm:$0xff]  ;;  %v3022_v35 = vld [vmem:[#allocation3 + $0x2d0] sm:$0xff] }
 0x815   :  { %1909 = vmatpush1.bf16.msra.mxu0 %v6012_v59  ;;  %1950 = vmatpush1.bf16.msra.mxu1 %v6013_v22  ;;  %v3023_v59 = vld [vmem:[#allocation3 + $0x308] sm:$0xff]  ;;  %v3024_v22 = vld [vmem:[#allocation3 + $0x318] sm:$0xff] }
 0x816   :  { %1910 = vmatprep.subr.bf16.mxu0 %v6014_v39  ;;  %1951 = vmatprep.subr.bf16.mxu1 %v6015_v40  ;;  %v3025_v39 = vld [vmem:[#allocation3 + $0x300] sm:$0xff]  ;;  %v3026_v40 = vld [vmem:[#allocation3 + $0x310] sm:$0xff] }
 0x819   :  { %1911 = vmatpush1.bf16.msra.mxu0 %v6016_v29  ;;  %1952 = vmatpush1.bf16.msra.mxu1 %v5932_v49  ;;  %v2986_v49 = vld [vmem:[#allocation3 + $0x90] sm:$0xff]  ;;  %v3027_v29 = vld [vmem:[#allocation3 + $0x348] sm:$0xff] }
 0x81a   :  { %1912 = vmatprep.subr.bf16.mxu0 %v5933_v33  ;;  %1953 = vmatprep.subr.bf16.mxu1 %v5934_v13  ;;  %v6021_v13 = vld [vmem:[#allocation137_spill] sm:$0xff]  ;;  %v2987_v33 = vld [vmem:[#allocation3 + $0xc8] sm:$0xff] }
 0x81d   :  { %1913 = vmatpush1.bf16.msra.mxu0 %v5935_v21  ;;  %1954 = vmatpush1.bf16.msra.mxu1 %v5936_v23  ;;  %v2979_v21 = vld [vmem:[#allocation3 + $0x18] sm:$0xff]  ;;  %v6022_v23 = vld [vmem:[#allocation138_spill] sm:$0xff] }
 0x81e   :  { %1914 = vmatprep.subr.bf16.mxu0 %v5937_v7  ;;  %1955 = vmatprep.subr.bf16.mxu1 %v6017_v8  ;;  %v2980_v7 = vld [vmem:[#allocation3 + $0x10] sm:$0xff]  ;;  %v3028_v8 = vld [vmem:[#allocation3 + $0x358] sm:$0xff] }
 0x821   :  { %1915 = vmatpush1.bf16.msra.mxu0 %v5939_v56  ;;  %1956 = vmatpush1.bf16.msra.mxu1 %v5940_v61  ;;  %v6024_v56 = vld [vmem:[#allocation32_spill] sm:$0xff]  ;;  %v2983_v61 = vld [vmem:[#allocation3 + $0x88] sm:$0xff] }
 0x822   :  { %1916 = vmatprep.subr.bf16.mxu0 %v5941_v37  ;;  %1957 = vmatprep.subr.bf16.mxu1 %v5942_v32  ;;  %v2984_v37 = vld [vmem:[#allocation3 + $0x98] sm:$0xff]  ;;  %v2985_v32 = vld [vmem:[#allocation3 + $0x80] sm:$0xff] }
 0x825   :  { %1917 = vmatpush1.bf16.msra.mxu0 %v6018_v18  ;;  %1958 = vmatpush1.bf16.msra.mxu1 %v4521_v53  ;;  %v6023_v53 = vld [vmem:[#allocation139_spill] sm:$0xff]  ;;  %v3029_v18 = vld [vmem:[#allocation3 + $0x340] sm:$0xff] }
 0x826   :  { %1918 = vmatprep.subr.bf16.mxu0 %v4524_v52  ;;  %1959 = vmatprep.subr.bf16.mxu1 %v6019_v26  ;;  %v2981_v52 = vld [vmem:[#allocation3 + $0x58] sm:$0xff]  ;;  %v3030_v26 = vld [vmem:[#allocation3 + $0x350] sm:$0xff] }
 0x829   :  { %1919 = vmatpush1.bf16.msra.mxu0 %v4530_v44  ;;  %1960 = vmatpush1.bf16.msra.mxu1 %v6020_v11  ;;  %v2982_v44 = vld [vmem:[#allocation3 + $0x50] sm:$0xff]  ;;  %v3031_v11 = vld [vmem:[#allocation3 + $0x388] sm:$0xff] }
 0x82a   :  { %2029 = vmatprep.subr.bf16.mxu0 %v6021_v13  ;;  %2070 = vmatprep.subr.bf16.mxu1 %v2979_v21  ;;  %v3032_v13 = vld [vmem:[#allocation3 + $0x398] sm:$0xff]  ;;  %v3033_v21 = vld [vmem:[#allocation3 + $0x380] sm:$0xff] }
 0x82c   :  { %1921 = vmatmul.mubr.bf16.vlgmr.msra.gmra.mrb[60].mxu0 %v4778_v34  ;;  %1962 = vmatmul.mubr.bf16.vlgmr.msra.gmra.mrb[60].mxu1 %v4778_v34  ;;  %v3007_v34 = vld [vmem:[#allocation3 + $0x208] sm:$0xff] }
 0x82d   :  { %2030 = vmatpush1.bf16.msra.mxu0 %v6022_v23  ;;  %2071 = vmatpush1.bf16.msra.mxu1 %v2980_v7  ;;  %v3034_v23 = vld [vmem:[#allocation3 + $0x390] sm:$0xff]  ;;  %v3035_v7 = vld [vmem:[#allocation3 + $0x3c8] sm:$0xff] }
 0x82e   :  { %2031 = vmatprep.subr.bf16.mxu0 %v6023_v53  ;;  %2072 = vmatprep.subr.bf16.mxu1 %v2981_v52  ;;  %v3036_v53 = vld [vmem:[#allocation3 + $0x3d8] sm:$0xff]  ;;  %v3037_v52 = vld [vmem:[#allocation3 + $0x3c0] sm:$0xff] }
 0x831   :  { %2032 = vmatpush1.bf16.msra.mxu0 %v6024_v56  ;;  %2073 = vmatpush1.bf16.msra.mxu1 %v2982_v44  ;;  %v3038_v56 = vld [vmem:[#allocation3 + $0x3d0] sm:$0xff]  ;;  %v4852_v44 = vld [vmem:[#allocation3 + $0x28] sm:$0xff] }
 0x832   :  { %2033 = vmatprep.subr.bf16.mxu0 %v2983_v61  ;;  %2074 = vmatprep.subr.bf16.mxu1 %v2984_v37  ;;  %v4855_v61 = vld [vmem:[#allocation3 + $0x38] sm:$0xff] }
 0x835   :  { %2034 = vmatpush1.bf16.msra.mxu0 %v2985_v32  ;;  %2075 = vmatpush1.bf16.msra.mxu1 %v2986_v49  ;;  %v6025_v49 = vld [vmem:[#allocation44_spill] sm:$0xff] }
 0x836   :  { %2035 = vmatprep.subr.bf16.mxu0 %v2987_v33  ;;  %2076 = vmatprep.subr.bf16.mxu1 %v2988_v14 }
 0x839   :  { %2036 = vmatpush1.bf16.msra.mxu0 %v2989_v48  ;;  %2077 = vmatpush1.bf16.msra.mxu1 %v2990_v9  ;;  %v6026_v9 = vld [vmem:[#allocation46_spill] sm:$0xff] }
 0x83a   :  { %2037 = vmatprep.subr.bf16.mxu0 %v2991_v50  ;;  %2078 = vmatprep.subr.bf16.mxu1 %v2992_v62 }
 0x83d   :  { %2038 = vmatpush1.bf16.msra.mxu0 %v2993_v12  ;;  %2079 = vmatpush1.bf16.msra.mxu1 %v2994_v55 }
 0x83e   :  { %2039 = vmatprep.subr.bf16.mxu0 %v2995_v30  ;;  %2080 = vmatprep.subr.bf16.mxu1 %v2996_v42 }
 0x841   :  { %2040 = vmatpush1.bf16.msra.mxu0 %v2997_v0  ;;  %2081 = vmatpush1.bf16.msra.mxu1 %v2998_v24 }
 0x842   :  { %2041 = vmatprep.subr.bf16.mxu0 %v2999_v43  ;;  %2082 = vmatprep.subr.bf16.mxu1 %v3000_v41  ;;  %v6027_v41 = vld [vmem:[#allocation47_spill] sm:$0xff] }
 0x845   :  { %2042 = vmatpush1.bf16.msra.mxu0 %v3001_v36  ;;  %2083 = vmatpush1.bf16.msra.mxu1 %v3002_v2 }
 0x846   :  { %2043 = vmatprep.subr.bf16.mxu0 %v3003_v28  ;;  %2084 = vmatprep.subr.bf16.mxu1 %v3004_v19 }
 0x849   :  { %2044 = vmatpush1.bf16.msra.mxu0 %v3005_v3  ;;  %2085 = vmatpush1.bf16.msra.mxu1 %v3006_v27 }
 0x84a   :  { %2045 = vmatprep.subr.bf16.mxu0 %v3007_v34  ;;  %2086 = vmatprep.subr.bf16.mxu1 %v3008_v47 }
 0x84d   :  { %2046 = vmatpush1.bf16.msra.mxu0 %v3009_v57  ;;  %2087 = vmatpush1.bf16.msra.mxu1 %v3010_v60 }
 0x84e   :  { %2047 = vmatprep.subr.bf16.mxu0 %v3011_v58  ;;  %2088 = vmatprep.subr.bf16.mxu1 %v3012_v1 }
 0x851   :  { %2048 = vmatpush1.bf16.msra.mxu0 %v3013_v45  ;;  %2089 = vmatpush1.bf16.msra.mxu1 %v3014_v54 }
 0x852   :  { %2049 = vmatprep.subr.bf16.mxu0 %v3015_v4  ;;  %2090 = vmatprep.subr.bf16.mxu1 %v3016_v38 }
 0x855   :  { %2050 = vmatpush1.bf16.msra.mxu0 %v3017_v31  ;;  %2091 = vmatpush1.bf16.msra.mxu1 %v3018_v6 }
 0x856   :  { %2051 = vmatprep.subr.bf16.mxu0 %v3019_v16  ;;  %2092 = vmatprep.subr.bf16.mxu1 %v3020_v20 }
 0x859   :  { %2052 = vmatpush1.bf16.msra.mxu0 %v3021_v63  ;;  %2093 = vmatpush1.bf16.msra.mxu1 %v3022_v35 }
 0x85a   :  { %2053 = vmatprep.subr.bf16.mxu0 %v3023_v59  ;;  %2094 = vmatprep.subr.bf16.mxu1 %v3024_v22  ;;  %v6029_v22 = vld [vmem:[#allocation45_spill] sm:$0xff] }
 0x85d   :  { %2054 = vmatpush1.bf16.msra.mxu0 %v3025_v39  ;;  %2095 = vmatpush1.bf16.msra.mxu1 %v3026_v40 }
 0x85e   :  { %2055 = vmatprep.subr.bf16.mxu0 %v3027_v29  ;;  %2096 = vmatprep.subr.bf16.mxu1 %v3028_v8 }
 0x861   :  { %2056 = vmatpush1.bf16.msra.mxu0 %v3029_v18  ;;  %2097 = vmatpush1.bf16.msra.mxu1 %v3030_v26 }
 0x862   :  { %2057 = vmatprep.subr.bf16.mxu0 %v3031_v11  ;;  %2098 = vmatprep.subr.bf16.mxu1 %v3032_v13 }
 0x865   :  { %2058 = vmatpush1.bf16.msra.mxu0 %v3033_v21  ;;  %2099 = vmatpush1.bf16.msra.mxu1 %v3034_v23 }
 0x866   :  { %2059 = vmatprep.subr.bf16.mxu0 %v3035_v7  ;;  %2100 = vmatprep.subr.bf16.mxu1 %v3036_v53 }
 0x869   :  { %2060 = vmatpush1.bf16.msra.mxu0 %v3037_v52  ;;  %2101 = vmatpush1.bf16.msra.mxu1 %v3038_v56 }
 0x86a   :  { %2111 = vmatprep.subr.bf16.mxu0 %v4852_v44  ;;  %2152 = vmatprep.subr.bf16.mxu1 %v4855_v61 }
 0x8bf   :  { %v1840_v37 = vpop.f32.mrb[56].mxu0  ;;  %v1881_v32 = vpop.f32.mrb[56].mxu1 }
 0x8c0   :  { %v2002_v33 = vadd.f32 %v1840_v37, %v6025_v49  ;;  %v1842_v14 = vpop.f32.mrb[57].mxu0  ;;  %v1883_v48 = vpop.f32.mrb[57].mxu1  ;;  %v2004_v39 = vadd.f32 %v1881_v32, %v6029_v22  ;;  %v4951_v22 = vld [vmem:[#allocation3 + $0x1b0] sm:$0xff] }
 0x8c1   :  { %v2003_v50 = vadd.f32 %v1842_v14, %v6026_v9  ;;  %v1844_v62 = vpop.f32.mrb[58].mxu0  ;;  %v1885_v12 = vpop.f32.mrb[58].mxu1  ;;  %v2005_v36 = vadd.f32 %v1883_v48, %v6027_v41  ;;  %v4881_v41 = vld [vmem:[#allocation3 + $0x30] sm:$0xff] }
 0x8c2   :  { %v2006_v55 = vsub.f32 0.0, %v2002_v33  ;;  %v1845_v30 = vpop.f32.mrb[59].mxu0  ;;  %v1886_v42 = vpop.f32.mrb[59].mxu1  ;;  %v2008_v8 = vsub.f32 0.0, %v2004_v39  ;;  %v4954_v39 = vld [vmem:[#allocation3 + $0x1e8] sm:$0xff] }
 0x8c3   :  { %v2007_v0 = vsub.f32 0.0, %v2003_v50 }
 0x8c4   :  { %v2009_v24 = vmul.f32 1.442695, %v2006_v55  ;;  %v2013_v26 = vmul.f32 1.442695, %v2008_v8  ;;  %v4966_v8 = vld [vmem:[#allocation3 + $0x228] sm:$0xff] }
 0x8c5   :  { %v2011_v43 = vmul.f32 1.442695, %v2007_v0 }
 0x8c6   :  { %2766 = vpow2.f32 %v2009_v24 }
 0x8c7   :  { %2768 = vpow2.f32 %v2011_v43 }
 0x8c8   :  { %2770 = vtanh.f32 %v2005_v36  ;;  %v4885_v36 = vld [vmem:[#allocation3 + $0x78] sm:$0xff] }
 0x8d0   :  { %v2767_v2 = vpop.eup %2766 }
 0x8d1   :  { %v2015_v28 = vadd.f32 1.0, %v2767_v2  ;;  %v2769_v19 = vpop.eup %2768  ;;  %v4888_v2 = vld [vmem:[#allocation3 + $0x60] sm:$0xff] }
 0x8d2   :  { %v2016_v3 = vadd.f32 1.0, %v2769_v19  ;;  %v2771_v27 = vpop.eup %2770  ;;  %v4894_v19 = vld [vmem:[#allocation3 + $0xa8] sm:$0xff] }
 0x8d3   :  { %2772 = vrcp.f32 %v2015_v28  ;;  %v4891_v28 = vld [vmem:[#allocation3 + $0x70] sm:$0xff] }
 0x8d4   :  { %2774 = vrcp.f32 %v2016_v3  ;;  %v4897_v3 = vld [vmem:[#allocation3 + $0xb8] sm:$0xff] }
 0x8dd   :  { %v2773_v34 = vpop.eup %2772 }
 0x8de   :  { %v2023_v47 = vmul.f32 %v2773_v34, %v2771_v27  ;;  %v2775_v57 = vpop.eup %2774  ;;  %v4900_v27 = vld [vmem:[#allocation3 + $0xa0] sm:$0xff]  ;;  %v4903_v34 = vld [vmem:[#allocation3 + $0xb0] sm:$0xff] }
 0x8df   :  { %v2022_v60 = vmul.f32 %v2775_v57, %v4766_v15  ;;  %v4909_v57 = vld [vmem:[#allocation3 + $0xf8] sm:$0xff] }
 0x8e1   :  { %v4862_v58 = vadd.f32 %v2023_v47, %v2022_v60  ;;  %v4906_v47 = vld [vmem:[#allocation3 + $0xe8] sm:$0xff]  ;;  %v4912_v60 = vld [vmem:[#allocation3 + $0xe0] sm:$0xff] }
 0x8e3   :  { %6028 = vst [vmem:[#allocation34_spill] sm:$0xff] %v4862_v58 }
 0x8ff   :  { %v1922_v1 = vpop.f32.mrb[60].mxu0  ;;  %v1963_v45 = vpop.f32.mrb[60].mxu1 }
 0x900   :  { %v1970_v54 = vadd.f32 %v1922_v1, %v5734_v17  ;;  %v1924_v4 = vpop.f32.mrb[61].mxu0  ;;  %v1965_v38 = vpop.f32.mrb[61].mxu1  ;;  %v1972_v29 = vadd.f32 %v1963_v45, %v3900_v10  ;;  %v4915_v1 = vld [vmem:[#allocation3 + $0xf0] sm:$0xff]  ;;  %v4918_v45 = vld [vmem:[#allocation3 + $0x128] sm:$0xff]  ;;  %v5053_v17 = vld [vmem:[#allocation3 + $0x3f8] sm:$0xff] }
 0x901   :  { %v1971_v31 = vadd.f32 %v1924_v4, %v5735_v51  ;;  %v1926_v6 = vpop.f32.mrb[62].mxu0  ;;  %v1967_v16 = vpop.f32.mrb[62].mxu1  ;;  %v1973_v11 = vadd.f32 %v1965_v38, %v3907_v46  ;;  %v4924_v4 = vld [vmem:[#allocation3 + $0x120] sm:$0xff]  ;;  %v4927_v38 = vld [vmem:[#allocation3 + $0x130] sm:$0xff]  ;;  %v5050_v51 = vld [vmem:[#allocation3 + $0x3e8] sm:$0xff] }
 0x902   :  { %v1974_v20 = vsub.f32 0.0, %v1970_v54  ;;  %v1927_v63 = vpop.f32.mrb[63].mxu0  ;;  %v1968_v35 = vpop.f32.mrb[63].mxu1  ;;  %v1976_v18 = vsub.f32 0.0, %v1972_v29  ;;  %v4921_v54 = vld [vmem:[#allocation3 + $0x138] sm:$0xff]  ;;  %v4936_v16 = vld [vmem:[#allocation3 + $0x160] sm:$0xff] }
 0x903   :  { %v1975_v59 = vsub.f32 0.0, %v1971_v31  ;;  %v4930_v31 = vld [vmem:[#allocation3 + $0x168] sm:$0xff]  ;;  %v4933_v6 = vld [vmem:[#allocation3 + $0x178] sm:$0xff]  ;;  %v4963_v29 = vld [vmem:[#allocation3 + $0x1f0] sm:$0xff] }
 0x904   :  { %v1977_v40 = vmul.f32 1.442695, %v1974_v20  ;;  %v1981_v13 = vmul.f32 1.442695, %v1976_v18  ;;  %v4939_v20 = vld [vmem:[#allocation3 + $0x170] sm:$0xff]  ;;  %v4942_v63 = vld [vmem:[#allocation3 + $0x1a8] sm:$0xff] }
 0x905   :  { %v1979_v15 = vmul.f32 1.442695, %v1975_v59  ;;  %v4945_v35 = vld [vmem:[#allocation3 + $0x1b8] sm:$0xff]  ;;  %v4948_v59 = vld [vmem:[#allocation3 + $0x1a0] sm:$0xff]  ;;  %v5047_v10 = vld [vmem:[#allocation3 + $0x3b0] sm:$0xff] }
 0x906   :  { %2776 = vpow2.f32 %v1977_v40  ;;  %v4957_v40 = vld [vmem:[#allocation3 + $0x1f8] sm:$0xff]  ;;  %v5044_v46 = vld [vmem:[#allocation3 + $0x3a0] sm:$0xff] }
 0x907   :  { %2778 = vpow2.f32 %v1979_v15  ;;  %v4960_v15 = vld [vmem:[#allocation3 + $0x1e0] sm:$0xff]  ;;  %v4969_v18 = vld [vmem:[#allocation3 + $0x238] sm:$0xff] }
 0x908   :  { %2780 = vpow2.f32 %v2013_v26  ;;  %v4972_v26 = vld [vmem:[#allocation3 + $0x220] sm:$0xff] }
 0x909   :  { %2782 = vtanh.f32 %v1973_v11  ;;  %v4975_v11 = vld [vmem:[#allocation3 + $0x230] sm:$0xff] }
 0x90a   :  { %2784 = vpow2.f32 %v1981_v13  ;;  %v4978_v13 = vld [vmem:[#allocation3 + $0x268] sm:$0xff] }
 0x910   :  { %v2777_v21 = vpop.eup %2776 }
 0x911   :  { %v1983_v23 = vadd.f32 1.0, %v2777_v21  ;;  %v2779_v7 = vpop.eup %2778  ;;  %v4981_v21 = vld [vmem:[#allocation3 + $0x278] sm:$0xff] }
 0x912   :  { %v1984_v53 = vadd.f32 1.0, %v2779_v7  ;;  %v2781_v52 = vpop.eup %2780  ;;  %v4987_v7 = vld [vmem:[#allocation3 + $0x270] sm:$0xff] }
 0x913   :  { %2786 = vrcp.f32 %v1983_v23  ;;  %v2783_v56 = vpop.eup %2782  ;;  %v2017_v49 = vadd.f32 1.0, %v2781_v52  ;;  %v4984_v23 = vld [vmem:[#allocation3 + $0x260] sm:$0xff]  ;;  %v4993_v52 = vld [vmem:[#allocation3 + $0x2b8] sm:$0xff] }
 0x914   :  { %2788 = vrcp.f32 %v1984_v53  ;;  %v2785_v37 = vpop.eup %2784  ;;  %v4990_v53 = vld [vmem:[#allocation3 + $0x2a8] sm:$0xff] }
 0x915   :  { %v1985_v48 = vadd.f32 1.0, %v2785_v37  ;;  %2790 = vtanh.f32 %v4862_v58  ;;  %v4999_v37 = vld [vmem:[#allocation3 + $0x2b0] sm:$0xff]  ;;  %v5056_v58 = vld [vmem:[#allocation3 + $0x3e0] sm:$0xff] }
 0x916   :  { %2792 = vrcp.f32 %v2017_v49  ;;  %v5005_v49 = vld [vmem:[#allocation3 + $0x2f8] sm:$0xff] }
 0x917   :  { %2794 = vrcp.f32 %v1985_v48  ;;  %v5014_v48 = vld [vmem:[#allocation3 + $0x328] sm:$0xff] }
 0x91d   :  { %v2787_v32 = vpop.eup %2786 }
 0x91e   :  { %v1991_v33 = vmul.f32 %v2787_v32, %v2783_v56  ;;  %v2789_v14 = vpop.eup %2788  ;;  %v4996_v56 = vld [vmem:[#allocation3 + $0x2a0] sm:$0xff]  ;;  %v5002_v32 = vld [vmem:[#allocation3 + $0x2e8] sm:$0xff] }
 0x91f   :  { %v1990_v9 = vmul.f32 %v2789_v14, %v4775_v25  ;;  %v2791_v62 = vpop.eup %2790  ;;  %v4878_v25 = vld [vmem:[#allocation3 + $0x20] sm:$0xff]  ;;  %v5011_v14 = vld [vmem:[#allocation3 + $0x2f0] sm:$0xff] }
 0x920   :  { %v2793_v12 = vpop.eup %2792 }
 0x921   :  { %v4871_v50 = vadd.f32 %v1991_v33, %v1990_v9  ;;  %v2795_v55 = vpop.eup %2794  ;;  %v2026_v42 = vmul.f32 %v2793_v12, %v2791_v62  ;;  %v5008_v33 = vld [vmem:[#allocation3 + $0x2e0] sm:$0xff]  ;;  %v5017_v9 = vld [vmem:[#allocation3 + $0x338] sm:$0xff]  ;;  %v5023_v12 = vld [vmem:[#allocation3 + $0x330] sm:$0xff] }
 0x922   :  { %v5020_v62 = vld [vmem:[#allocation3 + $0x320] sm:$0xff] }
 0x923   :  { %6030 = vst [vmem:[#allocation35_spill] sm:$0xff] %v4871_v50  ;;  %2796 = vtanh.f32 %v4871_v50  ;;  %v4874_v43 = vpack.c.bf16 %v2026_v42, %v2026_v42  ;;  %v5032_v42 = vld [vmem:[#allocation3 + $0x360] sm:$0xff]  ;;  %v5041_v50 = vld [vmem:[#allocation3 + $0x3b8] sm:$0xff] }
 0x924   :  { %6031 = vst [vmem:[#allocation33_spill] sm:$0xff] %v5041_v50 }
 0x92d   :  { %v2797_v30 = vpop.eup %2796 }
 0x92e   :  { %v1994_v0 = vmul.f32 %v2797_v30, %v2795_v55  ;;  %v5026_v55 = vld [vmem:[#allocation3 + $0x368] sm:$0xff]  ;;  %v5029_v30 = vld [vmem:[#allocation3 + $0x378] sm:$0xff] }
 0x930   :  { %v2028_v24 = vpack.c.bf16 %v1994_v0, %v1994_v0  ;;  %v5035_v0 = vld [vmem:[#allocation3 + $0x370] sm:$0xff] }
 0x932   :  { %2061 = vmatprep.mubr.bf16.mxu0 %v2028_v24  ;;  %2102 = vmatprep.mubr.bf16.mxu1 %v2028_v24 }
 0x933   :  { %2062 = vmatmul.mubr.bf16.vlgmr.msra.gmra.mrb[64].mxu0 %v4874_v43  ;;  %2103 = vmatmul.mubr.bf16.vlgmr.msra.gmra.mrb[64].mxu1 %v4874_v43 }
 0x934   :  { %2112 = vmatpush1.bf16.msra.mxu0 %v4878_v25  ;;  %2153 = vmatpush1.bf16.msra.mxu1 %v4881_v41 }
 0x935   :  { %2143 = vmatprep.mubr.bf16.mxu0 %v2028_v24  ;;  %2184 = vmatprep.mubr.bf16.mxu1 %v2028_v24  ;;  %v5038_v24 = vld [vmem:[#allocation3 + $0x3a8] sm:$0xff] }
 0x936   :  { %2113 = vmatprep.subr.bf16.mxu0 %v4784_v5  ;;  %2154 = vmatprep.subr.bf16.mxu1 %v4885_v36 }
 0x938   :  { %2114 = vmatpush1.bf16.msra.mxu0 %v4888_v2  ;;  %2155 = vmatpush1.bf16.msra.mxu1 %v4891_v28 }
 0x939   :  { %2115 = vmatprep.subr.bf16.mxu0 %v4894_v19  ;;  %2156 = vmatprep.subr.bf16.mxu1 %v4897_v3 }
 0x93c   :  { %2116 = vmatpush1.bf16.msra.mxu0 %v4900_v27  ;;  %2157 = vmatpush1.bf16.msra.mxu1 %v4903_v34 }
 0x93d   :  { %2117 = vmatprep.subr.bf16.mxu0 %v4906_v47  ;;  %2158 = vmatprep.subr.bf16.mxu1 %v4909_v57 }
 0x940   :  { %2118 = vmatpush1.bf16.msra.mxu0 %v4912_v60  ;;  %2159 = vmatpush1.bf16.msra.mxu1 %v4915_v1 }
 0x941   :  { %2119 = vmatprep.subr.bf16.mxu0 %v4918_v45  ;;  %2160 = vmatprep.subr.bf16.mxu1 %v4921_v54 }
 0x944   :  { %2120 = vmatpush1.bf16.msra.mxu0 %v4924_v4  ;;  %2161 = vmatpush1.bf16.msra.mxu1 %v4927_v38 }
 0x945   :  { %2121 = vmatprep.subr.bf16.mxu0 %v4930_v31  ;;  %2162 = vmatprep.subr.bf16.mxu1 %v4933_v6 }
 0x948   :  { %2122 = vmatpush1.bf16.msra.mxu0 %v4936_v16  ;;  %2163 = vmatpush1.bf16.msra.mxu1 %v4939_v20 }
 0x949   :  { %2123 = vmatprep.subr.bf16.mxu0 %v4942_v63  ;;  %2164 = vmatprep.subr.bf16.mxu1 %v4945_v35 }
 0x94c   :  { %2124 = vmatpush1.bf16.msra.mxu0 %v4948_v59  ;;  %2165 = vmatpush1.bf16.msra.mxu1 %v4951_v22 }
 0x94d   :  { %2125 = vmatprep.subr.bf16.mxu0 %v4954_v39  ;;  %2166 = vmatprep.subr.bf16.mxu1 %v4957_v40 }
 0x950   :  { %2126 = vmatpush1.bf16.msra.mxu0 %v4960_v15  ;;  %2167 = vmatpush1.bf16.msra.mxu1 %v4963_v29 }
 0x951   :  { %2127 = vmatprep.subr.bf16.mxu0 %v4966_v8  ;;  %2168 = vmatprep.subr.bf16.mxu1 %v4969_v18 }
 0x954   :  { %2128 = vmatpush1.bf16.msra.mxu0 %v4972_v26  ;;  %2169 = vmatpush1.bf16.msra.mxu1 %v4975_v11 }
 0x955   :  { %2129 = vmatprep.subr.bf16.mxu0 %v4978_v13  ;;  %2170 = vmatprep.subr.bf16.mxu1 %v4981_v21 }
 0x958   :  { %2130 = vmatpush1.bf16.msra.mxu0 %v4984_v23  ;;  %2171 = vmatpush1.bf16.msra.mxu1 %v4987_v7 }
 0x959   :  { %2131 = vmatprep.subr.bf16.mxu0 %v4990_v53  ;;  %2172 = vmatprep.subr.bf16.mxu1 %v4993_v52 }
 0x95c   :  { %2132 = vmatpush1.bf16.msra.mxu0 %v4996_v56  ;;  %2173 = vmatpush1.bf16.msra.mxu1 %v4999_v37 }
 0x95d   :  { %2133 = vmatprep.subr.bf16.mxu0 %v5002_v32  ;;  %2174 = vmatprep.subr.bf16.mxu1 %v5005_v49 }
 0x960   :  { %2134 = vmatpush1.bf16.msra.mxu0 %v5008_v33  ;;  %2175 = vmatpush1.bf16.msra.mxu1 %v5011_v14 }
 0x961   :  { %2135 = vmatprep.subr.bf16.mxu0 %v5014_v48  ;;  %2176 = vmatprep.subr.bf16.mxu1 %v5017_v9 }
 0x964   :  { %2136 = vmatpush1.bf16.msra.mxu0 %v5020_v62  ;;  %2177 = vmatpush1.bf16.msra.mxu1 %v5023_v12 }
 0x965   :  { %2137 = vmatprep.subr.bf16.mxu0 %v5026_v55  ;;  %2178 = vmatprep.subr.bf16.mxu1 %v5029_v30 }
 0x968   :  { %2138 = vmatpush1.bf16.msra.mxu0 %v5032_v42  ;;  %2179 = vmatpush1.bf16.msra.mxu1 %v5035_v0 }
 0x969   :  { %2139 = vmatprep.subr.bf16.mxu0 %v5038_v24  ;;  %2180 = vmatprep.subr.bf16.mxu1 %v5041_v50  ;;  %v5059_v50 = vld [vmem:[#allocation3 + $0x3f0] sm:$0xff] }
 0x96c   :  { %2140 = vmatpush1.bf16.msra.mxu0 %v5044_v46  ;;  %2181 = vmatpush1.bf16.msra.mxu1 %v5047_v10 }
 0x96d   :  { %2141 = vmatprep.subr.bf16.mxu0 %v5050_v51  ;;  %2182 = vmatprep.subr.bf16.mxu1 %v5053_v17 }
 0x970   :  { %2142 = vmatpush1.bf16.msra.mxu0 %v5056_v58  ;;  %2183 = vmatpush1.bf16.msra.mxu1 %v5059_v50 }
 0x971   :  { %2252 = vmatprep.subr.bf16.mxu0 %v4852_v44  ;;  %2293 = vmatprep.subr.bf16.mxu1 %v4855_v61 }
 0x973   :  { %2144 = vmatmul.mubr.bf16.vlgmr.msra.gmra.mrb[68].mxu0 %v4874_v43  ;;  %2185 = vmatmul.mubr.bf16.vlgmr.msra.gmra.mrb[68].mxu1 %v4874_v43  ;;  %v6033_v43 = vld [vmem:[#allocation48_spill] sm:$0xff] }
 0x974   :  { %2253 = vmatpush1.bf16.msra.mxu0 %v4878_v25  ;;  %2294 = vmatpush1.bf16.msra.mxu1 %v4881_v41 }
 0x975   :  { %2254 = vmatprep.subr.bf16.mxu0 %v4784_v5  ;;  %2295 = vmatprep.subr.bf16.mxu1 %v4885_v36  ;;  %v6032_v5 = vld [vmem:[#allocation33_spill] sm:$0xff] }
 0x978   :  { %2255 = vmatpush1.bf16.msra.mxu0 %v4888_v2  ;;  %2296 = vmatpush1.bf16.msra.mxu1 %v4891_v28  ;;  %v6034_v2 = vld [vmem:[#allocation50_spill] sm:$0xff] }
 0x979   :  { %2256 = vmatprep.subr.bf16.mxu0 %v4894_v19  ;;  %2297 = vmatprep.subr.bf16.mxu1 %v4897_v3 }
 0x97c   :  { %2257 = vmatpush1.bf16.msra.mxu0 %v4900_v27  ;;  %2298 = vmatpush1.bf16.msra.mxu1 %v4903_v34 }
 0x97d   :  { %2258 = vmatprep.subr.bf16.mxu0 %v4906_v47  ;;  %2299 = vmatprep.subr.bf16.mxu1 %v4909_v57  ;;  %v6036_v57 = vld [vmem:[#allocation51_spill] sm:$0xff] }
 0x980   :  { %2259 = vmatpush1.bf16.msra.mxu0 %v4912_v60  ;;  %2300 = vmatpush1.bf16.msra.mxu1 %v4915_v1 }
 0x981   :  { %2260 = vmatprep.subr.bf16.mxu0 %v4918_v45  ;;  %2301 = vmatprep.subr.bf16.mxu1 %v4921_v54 }
 0x984   :  { %2261 = vmatpush1.bf16.msra.mxu0 %v4924_v4  ;;  %2302 = vmatpush1.bf16.msra.mxu1 %v4927_v38 }
 0x985   :  { %2262 = vmatprep.subr.bf16.mxu0 %v4930_v31  ;;  %2303 = vmatprep.subr.bf16.mxu1 %v4933_v6 }
 0x988   :  { %2263 = vmatpush1.bf16.msra.mxu0 %v4936_v16  ;;  %2304 = vmatpush1.bf16.msra.mxu1 %v4939_v20 }
 0x989   :  { %2264 = vmatprep.subr.bf16.mxu0 %v4942_v63  ;;  %2305 = vmatprep.subr.bf16.mxu1 %v4945_v35 }
 0x98c   :  { %2265 = vmatpush1.bf16.msra.mxu0 %v4948_v59  ;;  %2306 = vmatpush1.bf16.msra.mxu1 %v4951_v22  ;;  %v6037_v59 = vld [vmem:[#allocation34_spill] sm:$0xff] }
 0x98d   :  { %2266 = vmatprep.subr.bf16.mxu0 %v4954_v39  ;;  %2307 = vmatprep.subr.bf16.mxu1 %v4957_v40 }
 0x990   :  { %2267 = vmatpush1.bf16.msra.mxu0 %v4960_v15  ;;  %2308 = vmatpush1.bf16.msra.mxu1 %v4963_v29 }
 0x991   :  { %2268 = vmatprep.subr.bf16.mxu0 %v4966_v8  ;;  %2309 = vmatprep.subr.bf16.mxu1 %v4969_v18 }
 0x994   :  { %2269 = vmatpush1.bf16.msra.mxu0 %v4972_v26  ;;  %2310 = vmatpush1.bf16.msra.mxu1 %v4975_v11  ;;  %v6038_v26 = vld [vmem:[#allocation24_spill] sm:$0xff] }
 0x995   :  { %2270 = vmatprep.subr.bf16.mxu0 %v4978_v13  ;;  %2311 = vmatprep.subr.bf16.mxu1 %v4981_v21 }
 0x998   :  { %2271 = vmatpush1.bf16.msra.mxu0 %v4984_v23  ;;  %2312 = vmatpush1.bf16.msra.mxu1 %v4987_v7  ;;  %v6039_v23 = vld [vmem:[#allocation26_spill] sm:$0xff] }
 0x999   :  { %2272 = vmatprep.subr.bf16.mxu0 %v4990_v53  ;;  %2313 = vmatprep.subr.bf16.mxu1 %v4993_v52 }
 0x99c   :  { %2273 = vmatpush1.bf16.msra.mxu0 %v4996_v56  ;;  %2314 = vmatpush1.bf16.msra.mxu1 %v4999_v37 }
 0x99d   :  { %2274 = vmatprep.subr.bf16.mxu0 %v5002_v32  ;;  %2315 = vmatprep.subr.bf16.mxu1 %v5005_v49 }
 0x9a0   :  { %2275 = vmatpush1.bf16.msra.mxu0 %v5008_v33  ;;  %2316 = vmatpush1.bf16.msra.mxu1 %v5011_v14 }
 0x9a1   :  { %2276 = vmatprep.subr.bf16.mxu0 %v5014_v48  ;;  %2317 = vmatprep.subr.bf16.mxu1 %v5017_v9  ;;  %v6040_v48 = vld [vmem:[#allocation27_spill] sm:$0xff] }
 0x9a4   :  { %2277 = vmatpush1.bf16.msra.mxu0 %v5020_v62  ;;  %2318 = vmatpush1.bf16.msra.mxu1 %v5023_v12  ;;  %v6041_v12 = vld [vmem:[#allocation61_spill] sm:$0xff] }
 0x9a5   :  { %2278 = vmatprep.subr.bf16.mxu0 %v5026_v55  ;;  %2319 = vmatprep.subr.bf16.mxu1 %v5029_v30 }
 0x9a8   :  { %2279 = vmatpush1.bf16.msra.mxu0 %v5032_v42  ;;  %2320 = vmatpush1.bf16.msra.mxu1 %v5035_v0 }
 0x9a9   :  { %2280 = vmatprep.subr.bf16.mxu0 %v5038_v24  ;;  %2321 = vmatprep.subr.bf16.mxu1 %v6032_v5 }
 0x9ac   :  { %2281 = vmatpush1.bf16.msra.mxu0 %v5044_v46  ;;  %2322 = vmatpush1.bf16.msra.mxu1 %v5047_v10 }
 0x9ad   :  { %2282 = vmatprep.subr.bf16.mxu0 %v5050_v51  ;;  %2323 = vmatprep.subr.bf16.mxu1 %v5053_v17 }
 0x9b0   :  { %2283 = vmatpush1.bf16.msra.mxu0 %v5056_v58  ;;  %2324 = vmatpush1.bf16.msra.mxu1 %v5059_v50  ;;  %v6035_v58 = vld [vmem:[#allocation49_spill] sm:$0xff] }
 0xa06   :  { %v2063_v44 = vpop.f32.mrb[64].mxu0  ;;  %v2104_v61 = vpop.f32.mrb[64].mxu1 }
 0xa07   :  { %v2225_v25 = vadd.f32 %v2063_v44, %v6033_v43  ;;  %v2065_v41 = vpop.f32.mrb[65].mxu0  ;;  %v2106_v36 = vpop.f32.mrb[65].mxu1  ;;  %v2227_v47 = vadd.f32 %v2104_v61, %v6035_v58 }
 0xa08   :  { %v2226_v28 = vadd.f32 %v2065_v41, %v6034_v2  ;;  %v2067_v19 = vpop.f32.mrb[66].mxu0  ;;  %v2108_v46 = vpop.f32.mrb[66].mxu1  ;;  %v2228_v60 = vadd.f32 %v2106_v36, %v6036_v57  ;;  %v6042_v2 = vld [vmem:[#allocation35_spill] sm:$0xff] }
 0xa09   :  { %v2229_v3 = vsub.f32 0.0, %v2225_v25  ;;  %v2068_v10 = vpop.f32.mrb[67].mxu0  ;;  %v2109_v27 = vpop.f32.mrb[67].mxu1  ;;  %v2231_v50 = vsub.f32 0.0, %v2227_v47 }
 0xa0a   :  { %v2230_v51 = vsub.f32 0.0, %v2226_v28 }
 0xa0b   :  { %v2232_v34 = vmul.f32 1.442695, %v2229_v3  ;;  %v2236_v1 = vmul.f32 1.442695, %v2231_v50 }
 0xa0c   :  { %v2234_v17 = vmul.f32 1.442695, %v2230_v51 }
 0xa0d   :  { %2798 = vpow2.f32 %v2232_v34 }
 0xa0e   :  { %2800 = vpow2.f32 %v2234_v17 }
 0xa0f   :  { %2802 = vtanh.f32 %v2228_v60 }
 0xa10   :  { %2804 = vpow2.f32 %v2236_v1 }
 0xa17   :  { %v2799_v45 = vpop.eup %2798 }
 0xa18   :  { %v2238_v54 = vadd.f32 1.0, %v2799_v45  ;;  %v2801_v4 = vpop.eup %2800 }
 0xa19   :  { %v2239_v38 = vadd.f32 1.0, %v2801_v4  ;;  %v2803_v31 = vpop.eup %2802 }
 0xa1a   :  { %2806 = vrcp.f32 %v2238_v54  ;;  %v2805_v6 = vpop.eup %2804 }
 0xa1b   :  { %2808 = vrcp.f32 %v2239_v38  ;;  %v2240_v35 = vadd.f32 1.0, %v2805_v6 }
 0xa1d   :  { %2810 = vrcp.f32 %v2240_v35 }
 0xa24   :  { %v2807_v16 = vpop.eup %2806 }
 0xa25   :  { %v2246_v20 = vmul.f32 %v2807_v16, %v2803_v31  ;;  %v2809_v63 = vpop.eup %2808 }
 0xa26   :  { %v2245_v22 = vmul.f32 %v2809_v63, %v6037_v59 }
 0xa27   :  { %v2811_v40 = vpop.eup %2810 }
 0xa28   :  { %v2247_v39 = vadd.f32 %v2246_v20, %v2245_v22 }
 0xa2a   :  { %2812 = vtanh.f32 %v2247_v39 }
 0xa34   :  { %v2813_v15 = vpop.eup %2812 }
 0xa35   :  { %v2249_v29 = vmul.f32 %v2813_v15, %v2811_v40 }
 0xa37   :  { %v2250_v51 = vpack.c.bf16 %v2249_v29, %v2249_v29 }
 0xa46   :  { %v2145_v8 = vpop.f32.mrb[68].mxu0  ;;  %v2186_v18 = vpop.f32.mrb[68].mxu1 }
 0xa47   :  { %v2193_v11 = vadd.f32 %v2145_v8, %v6038_v26  ;;  %v2147_v13 = vpop.f32.mrb[69].mxu0  ;;  %v2188_v21 = vpop.f32.mrb[69].mxu1  ;;  %v2195_v9 = vadd.f32 %v2186_v18, %v6040_v48 }
 0xa48   :  { %v2194_v7 = vadd.f32 %v2147_v13, %v6039_v23  ;;  %v2149_v53 = vpop.f32.mrb[70].mxu0  ;;  %v2190_v52 = vpop.f32.mrb[70].mxu1  ;;  %v2196_v55 = vadd.f32 %v2188_v21, %v6041_v12 }
 0xa49   :  { %v2197_v56 = vsub.f32 0.0, %v2193_v11  ;;  %v2150_v37 = vpop.f32.mrb[71].mxu0  ;;  %v2191_v32 = vpop.f32.mrb[71].mxu1  ;;  %v2199_v62 = vsub.f32 0.0, %v2195_v9 }
 0xa4a   :  { %v2198_v49 = vsub.f32 0.0, %v2194_v7 }
 0xa4b   :  { %v2200_v33 = vmul.f32 1.442695, %v2197_v56  ;;  %v2204_v30 = vmul.f32 1.442695, %v2199_v62 }
 0xa4c   :  { %v2202_v14 = vmul.f32 1.442695, %v2198_v49 }
 0xa4d   :  { %2814 = vpow2.f32 %v2200_v33 }
 0xa4e   :  { %2816 = vpow2.f32 %v2202_v14 }
 0xa4f   :  { %2818 = vtanh.f32 %v2196_v55 }
 0xa50   :  { %2820 = vpow2.f32 %v2204_v30 }
 0xa57   :  { %v2815_v42 = vpop.eup %2814 }
 0xa58   :  { %v2206_v0 = vadd.f32 1.0, %v2815_v42  ;;  %v2817_v24 = vpop.eup %2816 }
 0xa59   :  { %v2207_v5 = vadd.f32 1.0, %v2817_v24  ;;  %v2819_v44 = vpop.eup %2818 }
 0xa5a   :  { %2822 = vrcp.f32 %v2206_v0  ;;  %v2821_v61 = vpop.eup %2820 }
 0xa5b   :  { %2824 = vrcp.f32 %v2207_v5  ;;  %v2208_v36 = vadd.f32 1.0, %v2821_v61 }
 0xa5d   :  { %2826 = vrcp.f32 %v2208_v36 }
 0xa64   :  { %v2823_v43 = vpop.eup %2822 }
 0xa65   :  { %v2214_v25 = vmul.f32 %v2823_v43, %v2819_v44  ;;  %v2825_v41 = vpop.eup %2824 }
 0xa66   :  { %v2213_v28 = vmul.f32 %v2825_v41, %v6042_v2 }
 0xa67   :  { %v2827_v46 = vpop.eup %2826 }
 0xa68   :  { %v2215_v19 = vadd.f32 %v2214_v25, %v2213_v28 }
 0xa6a   :  { %2828 = vtanh.f32 %v2215_v19 }
 0xa74   :  { %v2829_v3 = vpop.eup %2828 }
 0xa75   :  { %v2217_v10 = vmul.f32 %v2829_v3, %v2827_v46 }
 0xa77   :  { %v2251_v27 = vpack.c.bf16 %v2217_v10, %v2217_v10 }
 0xa79   :  { %2284 = vmatprep.mubr.bf16.mxu0 %v2251_v27  ;;  %2325 = vmatprep.mubr.bf16.mxu1 %v2251_v27 }
 0xa7a   :  { %2285 = vmatmul.mubr.bf16.vlgmr.msra.gmra.mrb[72].mxu0 %v2250_v51  ;;  %2326 = vmatmul.mubr.bf16.vlgmr.msra.gmra.mrb[72].mxu1 %v2250_v51 }
 0xb4d   :  { %v2286_v34 = vpop.f32.mrb[72].mxu0  ;;  %v2327_v17 = vpop.f32.mrb[72].mxu1 }
 0xb4e   :  { %v2334_v58 = vadd.f32 %v2286_v34, %v6038_v26  ;;  %v2288_v47 = vpop.f32.mrb[73].mxu0  ;;  %v2329_v50 = vpop.f32.mrb[73].mxu1  ;;  %v2336_v16 = vadd.f32 %v2327_v17, %v6040_v48 }
 0xb4f   :  { %v2335_v57 = vadd.f32 %v2288_v47, %v6039_v23  ;;  %v2290_v60 = vpop.f32.mrb[74].mxu0  ;;  %v2331_v1 = vpop.f32.mrb[74].mxu1  ;;  %v2337_v63 = vadd.f32 %v2329_v50, %v6041_v12 }
 0xb50   :  { %v2338_v45 = vsub.f32 0.0, %v2334_v58  ;;  %v2291_v54 = vpop.f32.mrb[75].mxu0  ;;  %v2332_v4 = vpop.f32.mrb[75].mxu1  ;;  %v2340_v20 = vsub.f32 0.0, %v2336_v16 }
 0xb51   :  { %v2339_v38 = vsub.f32 0.0, %v2335_v57 }
 0xb52   :  { %v2341_v31 = vmul.f32 1.442695, %v2338_v45  ;;  %v2345_v35 = vmul.f32 1.442695, %v2340_v20 }
 0xb53   :  { %v2343_v6 = vmul.f32 1.442695, %v2339_v38 }
 0xb54   :  { %2830 = vpow2.f32 %v2341_v31 }
 0xb55   :  { %2832 = vpow2.f32 %v2343_v6 }
 0xb56   :  { %2834 = vtanh.f32 %v2337_v63 }
 0xb57   :  { %2836 = vpow2.f32 %v2345_v35 }
 0xb5e   :  { %v2831_v59 = vpop.eup %2830 }
 0xb5f   :  { %v2347_v22 = vadd.f32 1.0, %v2831_v59  ;;  %v2833_v39 = vpop.eup %2832 }
 0xb60   :  { %v2348_v40 = vadd.f32 1.0, %v2833_v39  ;;  %v2835_v15 = vpop.eup %2834 }
 0xb61   :  { %2838 = vrcp.f32 %v2347_v22  ;;  %v2837_v29 = vpop.eup %2836 }
 0xb62   :  { %2840 = vrcp.f32 %v2348_v40  ;;  %v2349_v11 = vadd.f32 1.0, %v2837_v29 }
 0xb64   :  { %2842 = vrcp.f32 %v2349_v11 }
 0xb6b   :  { %v2839_v8 = vpop.eup %2838 }
 0xb6c   :  { %v2355_v18 = vmul.f32 %v2839_v8, %v2835_v15  ;;  %v2841_v26 = vpop.eup %2840 }
 0xb6d   :  { %v2354_v13 = vmul.f32 %v2841_v26, %v2215_v19 }
 0xb6e   :  { %v2843_v23 = vpop.eup %2842 }
 0xb6f   :  { %v2356_v21 = vadd.f32 %v2355_v18, %v2354_v13 }
 0xb71   :  { %2844 = vtanh.f32 %v2356_v21 }
 0xb7b   :  { %v2845_v7 = vpop.eup %2844 }
 0xb7c   :  { %v2358_v53 = vmul.f32 %v2845_v7, %v2843_v23 }
 0xb7d   :  { %3196 = dma.done.wait [#allocation5 + $0x1], 1024 }
 0xb7e   :  { %3197 = vsyncadd [#allocation5 + $0x1], 4294966272  ;;  %v3217_v52 = vmov 0.0   ;;  %vm3218_vm0 = vmmov 0   ;;  %v2364_v56 = vld [vmem:[#allocation4] sm:$0xff]  ;;  %v2365_v37 = vld [vmem:[#allocation4 + $0x8] sm:$0xff]  ;;  %v2363_v62 = vpack.c.bf16 %v2358_v53, %v2358_v53 }
 0xb7f   :  { %2502 = vmatprep.subr.bf16.mxu0 %v3217_v52  ;;  %2518 = vmatprep.mubr.msk.bf16.mxu0 %vm3218_vm0, %v3217_v52  ;;  %v2366_v32 = vld [vmem:[#allocation4 + $0x10] sm:$0xff]  ;;  %v2367_v49 = vld [vmem:[#allocation4 + $0x18] sm:$0xff]  ;;  %v2368_v33 = vld [vmem:[#allocation4 + $0x20] sm:$0xff]  ;;  %s3219_s1 = smov [#allocation11]  }
 0xb80   :  { %2503 = vmatpush3.bf16.msra.mxu0 %v2364_v56  ;;  %v2369_v14 = vld [vmem:[#allocation4 + $0x28] sm:$0xff]  ;;  %v2370_v48 = vld [vmem:[#allocation4 + $0x30] sm:$0xff]  ;;  %v2371_v9 = vld [vmem:[#allocation4 + $0x38] sm:$0xff]  ;;  %s2426_s8 = sshll.u32 %s3219_s1, 4  ;;  %s2427_s8 = int_to_ptr.vmem [resolvable:$true] %s2426_s8 }
 0xb81   :  { %2504 = vmatprep.subr.bf16.mxu0 %v3217_v52  ;;  %v2490_v12 = vld [vmem:[%s5161_s4] ss:$0 sm:$0xff]  ;;  %s3168_s9 = scalar_lea.vmem %s2427_s8, 128  ;;  %p3173_p11 = scmp.lt.s32.totalorder %s2427_s8, %s2427_s8 }
 0xb82   :  { %p3169_p10 = scmp.ne.s32.totalorder %s2427_s8, %s3168_s9  ;;  %p3174_p12 = scmp.lt.s32.totalorder %s3168_s9, %s3168_s9 }
 0xb84   :  { %2505 = vmatpush3.bf16.msra.mxu0 %v2365_v37  ;;  %p3175_p13 = por %p3174_p12, %p3173_p11 }
 0xb85   :  { %2506 = vmatprep.subr.bf16.mxu0 %v3217_v52 }
 0xb86   :  { %p3176_p0 = pnand %p3175_p13, %p3169_p10 }
 0xb88   :  { %2507 = vmatpush3.bf16.msra.mxu0 %v2366_v32 }
 0xb89   :  { %2508 = vmatprep.subr.bf16.mxu0 %v3217_v52 }
 0xb8c   :  { %2509 = vmatpush3.bf16.msra.mxu0 %v2367_v49 }
 0xb8d   :  { %2510 = vmatprep.subr.bf16.mxu0 %v3217_v52 }
 0xb90   :  { %2511 = vmatpush3.bf16.msra.mxu0 %v2368_v33 }
 0xb91   :  { %2512 = vmatprep.subr.bf16.mxu0 %v3217_v52 }
 0xb94   :  { %2513 = vmatpush3.bf16.msra.mxu0 %v2369_v14 }
 0xb95   :  { %2514 = vmatprep.subr.bf16.mxu0 %v3217_v52 }
 0xb98   :  { %2515 = vmatpush3.bf16.msra.mxu0 %v2370_v48 }
 0xb99   :  { %2516 = vmatprep.subr.bf16.mxu0 %v3217_v52 }
 0xb9c   :  { %2517 = vmatpush3.bf16.msra.mxu0 %v2371_v9 }
 0xb9f   :  { %2519 = vmatmul.mubr.bf16.vlgmr.msra.gmra.mrb[76].mxu0 %v2363_v62 }
 0xc72   :  { %v2413_v55 = vpop.f32.mrb[76].mxu0 }
 0xc73   :  { %v2414_v30 = vadd.f32 %v2490_v12, %v2413_v55  ;;  %v2520_v42 = vpop.f32.mrb[77].mxu0 }
 0xc74   :  { %v2416_v0 = vpop.f32.mrb[78].mxu0 }
 0xc75   :  { %2419 = vst [vmem:[#allocation11] sm:$0xff] %v2414_v30  ;;  %v2521_v24 = vpop.f32.mrb[79].mxu0 }
 0xc76   :  { %3179 = shalt.err (!%p3176_p0)
}
 0xc77   :  { %s3180_s4 = scalar_lea.hbm %s5164_s7, 128 }
 0xc78   :  { %p3181_p1 = scmp.ne.s32.totalorder %s5164_s7, %s3180_s4  ;;  %p3184_p2 = scmp.lt.u32.totalorder %s3180_s4, %s5164_s7 }
 0xc7a   :  { %p3186_p3 = pnand %p3184_p2, %p3181_p1 }
 0xc7c   :  { %3189 = shalt.err (!%p3186_p3)
}
 0xc7d   :  { %2429 = dma.vmem_to_hbm [thread:$0]  %s2427_s8, 128, %s5164_s7, [#allocation8]  }
 0xc7e   :  { %3198 = dma.done.wait [#allocation8], 128  }
 0xc7f   :  { %3199 = vsyncadd [#allocation8], 4294967168 }
 0xc80   :  { %2433 = vsyncpa [#allocation7], 1 }
 0xc81   :  { %2434 = vsyncpa [#allocation10], 1 }
 0xc82   :  { %2435 = vsyncpa [#allocation8], 1 }
 0xc83   :  { %2436 = vsyncmov [#allocation5] }
 0xc86   :  { %s2437_s5 = vpop.sfrf %2436 }
 0xc87   :  { %p2491_p4 = scmp.ne.s32.totalorder %s2437_s5, 0 }
 0xc89   :  { %2441 = shalt.err (%p2491_p4)  }
 0xc8a   :  { %2443 = vsyncmov [#allocation5 + $0x1] }
 0xc8d   :  { %s2444_s11 = vpop.sfrf %2443 }
 0xc8e   :  { %p2492_p5 = scmp.ne.s32.totalorder %s2444_s11, 0 }
 0xc90   :  { %2448 = shalt.err (%p2492_p5)  }

</bundles_post_ra>
